<compile_context>
chip_gen: v7x
topology: tpu7x:2x2x1
jax: 0.10.0
libtpu: 0.0.40
codegen_flags: <defaults>
</compile_context>

<pallas_src>
import jax
import jax.numpy as jnp
from jax.experimental import pallas as pl
from jax.experimental.pallas import tpu as pltpu


# ---------------------------------------------------------------------------
# Fused Pallas kernel: one (batch, row-tile) per grid step
# ---------------------------------------------------------------------------
def _basic_block_kernel(xp_ref, w1_ref, s1_ref, b1_ref, w2_ref, s2_ref, b2_ref,
                        out_ref, mid_ref):
    """Fused BasicBlock forward for one (batch, row-tile) grid step.

    xp_ref     : (H+4, WPAD, Cp) bf16  zero-padded image (2-row halo, 8-col
                                       aligned left pad), resident across r.
    w{1,2}_ref : (3, 3*Cp, Cp)   bf16  conv weights, kw-major, kh packed into K.
    s*/b*_ref  : (1, Cp)         f32   folded BN scale / bias.
    out_ref    : (TH, W, Cp)     bf16  one row tile of the output.
    mid_ref    : (TH+2, WPAD, Cp) bf16 conv1 output for the tile + 1-row y1
                                       halo, zero column halo (= conv2 padding).
    """
    TH, W, Cp = out_ref.shape
    _, WPAD, _ = mid_ref.shape
    r = pl.program_id(1)
    n_rt = pl.num_programs(1)

    def conv3x3(src, w_ref, hout):
        # src: (hout+2, WPAD, Cp) bf16 -> (hout*W, Cp) f32 (MXU accumulation).
        # ky packing hoisted out of the kx loop: single concat per conv.
        packed = jnp.concatenate([src[ky:ky + hout] for ky in range(3)], axis=-1)
        acc = jnp.zeros((hout * W, Cp), jnp.float32)
        for kx in range(3):                       # static unroll: 3 MXU matmuls
            patch = packed[:, 7 + kx:7 + kx + W, :].reshape(hout * W, 3 * Cp)
            acc += jnp.dot(patch, w_ref[kx], preferred_element_type=jnp.float32)
        return acc

    row0 = pl.multiple_of(r * TH, TH)             # top of this tile's input slab
    x_slab = xp_ref[pl.ds(row0, TH + 4)]          # (TH+4, WPAD, Cp) bf16

    # conv1 -> BN1 -> ReLU for the TH tile rows plus a 1-row y1 halo each side.
    y1 = conv3x3(x_slab, w1_ref, TH + 2) * s1_ref[...] + b1_ref[...]
    y1 = jnp.maximum(y1, 0.0).reshape(TH + 2, W, Cp).astype(mid_ref.dtype)

    # Sublane-aligned interior store (column offset 8).  Re-zero only the
    # column halo every step (never gated on program_id: scratch is per-core).
    mid_ref[:, 8:8 + W, :] = y1
    mid_ref[:, 0:8, :] = jnp.zeros((TH + 2, 8, Cp), mid_ref.dtype)
    mid_ref[:, 8 + W:WPAD, :] = jnp.zeros((TH + 2, WPAD - 8 - W, Cp), mid_ref.dtype)

    # At the image top/bottom the y1 halo row lies outside the image; conv2's
    # zero padding requires it to be exactly zero (discard the recomputed row).
    @pl.when(r == 0)
    def _():
        mid_ref[0:1, :, :] = jnp.zeros((1, WPAD, Cp), mid_ref.dtype)

    @pl.when(r == n_rt - 1)
    def _():
        mid_ref[TH + 1:TH + 2, :, :] = jnp.zeros((1, WPAD, Cp), mid_ref.dtype)

    # conv2 -> BN2 -> residual add -> ReLU.
    y2 = conv3x3(mid_ref[...], w2_ref, TH) * s2_ref[...] + b2_ref[...]
    res = x_slab[2:2 + TH, 8:8 + W, :].astype(jnp.float32).reshape(TH * W, Cp)
    out = jnp.maximum(y2 + res, 0.0)
    out_ref[...] = out.reshape(TH, W, Cp).astype(out_ref.dtype)


# ---------------------------------------------------------------------------
# One-time parameter preparation (hoisted out of the per-call path)
# ---------------------------------------------------------------------------
def _round_up(x, m):
    return (x + m - 1) // m * m


def _pack_conv_weight(w_oihw, cp):
    """(Cout, Cin, 3, 3) torch layout -> (3, 3*Cp, Cp) bf16 (kw-major, kh packed)."""
    cout, cin = w_oihw.shape[:2]
    w = jnp.pad(w_oihw, ((0, cp - cout), (0, cp - cin), (0, 0), (0, 0)))
    w = jnp.transpose(w, (3, 2, 1, 0))            # (kw, kh, Cin_p, Cout_p)
    return w.reshape(3, 3 * cp, cp).astype(jnp.bfloat16)


def _fold_bn(gamma, beta, mean, var, cp, eps=1e-5):
    scale = gamma / jnp.sqrt(var + eps)
    bias = beta - mean * scale
    pad = (0, cp - scale.shape[0])
    return (jnp.pad(scale, pad).reshape(1, cp).astype(jnp.float32),
            jnp.pad(bias, pad).reshape(1, cp).astype(jnp.float32))


def prepare_basic_block_params(params, eps=1e-5):
    """Pack conv weights / fold BN once (parameter-load time, not per call)."""
    C = params["conv1_w"].shape[0]
    Cp = _round_up(C, 128)                        # lane-dense channel padding
    w1 = _pack_conv_weight(params["conv1_w"], Cp)
    s1, b1 = _fold_bn(params["bn1_gamma"], params["bn1_beta"],
                      params["bn1_mean"], params["bn1_var"], Cp, eps)
    w2 = _pack_conv_weight(params["conv2_w"], Cp)
    s2, b2 = _fold_bn(params["bn2_gamma"], params["bn2_beta"],
                      params["bn2_mean"], params["bn2_var"], Cp, eps)
    return {"C": C, "Cp": Cp, "w1": w1, "s1": s1, "b1": b1,
            "w2": w2, "s2": s2, "b2": b2}


# ---------------------------------------------------------------------------
# Wrapper: layout, padding, pallas_call
# ---------------------------------------------------------------------------
def basic_block_forward(x_nchw, prep, *, row_tile=8):
    """BasicBlock forward (stride=1, downsample=None), inference-mode BN."""
    N, C, H, W = x_nchw.shape
    assert C == prep["C"]
    Cp = prep["Cp"]
    TH = row_tile if (H % row_tile == 0) else H   # use 32-64 at real HRNet sizes
    n_rt = H // TH
    WPAD = _round_up(W + 9, 8)                    # 8-col aligned left halo + right halo

    # TODO(synk): in a full HRNet stage keep activations as padded NHWC bf16
    # end-to-end so this transpose/pad/cast and the tail slice/transpose are
    # paid once per network, not once per block.
    x = jnp.transpose(x_nchw, (0, 2, 3, 1))       # NCHW -> NHWC
    xp = jnp.pad(x, ((0, 0), (2, 2), (8, WPAD - 8 - W), (0, Cp - C))).astype(jnp.bfloat16)

    flops = int(2 * 2 * 9 * N * H * W * Cp * Cp)                    # two 3x3 convs
    bytes_accessed = int(xp.size * 2 + N * H * W * Cp * 2 + 2 * 9 * Cp * Cp * 2)

    out = pl.pallas_call(
        _basic_block_kernel,
        out_shape=jax.ShapeDtypeStruct((N, H, W, Cp), jnp.bfloat16),
        grid_spec=pltpu.PrefetchScalarGridSpec(
            num_scalar_prefetch=0,
            grid=(N, n_rt),
            in_specs=[
                # Padded image stays VMEM-resident across the row-tile axis
                # (block index independent of r); only intermediates scale with
                # TH.  TODO(synk): for very large images stream (TH+4)-row slabs
                # via manual make_async_copy double-buffering instead.
                pl.BlockSpec((None, H + 4, WPAD, Cp), lambda n, r: (n, 0, 0, 0)),
                pl.BlockSpec((3, 3 * Cp, Cp), lambda n, r: (0, 0, 0)),
                pl.BlockSpec((1, Cp), lambda n, r: (0, 0)),
                pl.BlockSpec((1, Cp), lambda n, r: (0, 0)),
                pl.BlockSpec((3, 3 * Cp, Cp), lambda n, r: (0, 0, 0)),
                pl.BlockSpec((1, Cp), lambda n, r: (0, 0)),
                pl.BlockSpec((1, Cp), lambda n, r: (0, 0)),
            ],
            out_specs=pl.BlockSpec((None, TH, W, Cp), lambda n, r: (n, r, 0, 0)),
            scratch_shapes=[pltpu.VMEM((TH + 2, WPAD, Cp), jnp.bfloat16)],
        ),
        compiler_params=pltpu.CompilerParams(
            dimension_semantics=("parallel", "parallel"),
            vmem_limit_bytes=48 * 1024 * 1024),
        cost_estimate=pl.CostEstimate(flops=flops, transcendentals=0,
                                      bytes_accessed=bytes_accessed),
    )(xp, prep["w1"], prep["s1"], prep["b1"], prep["w2"], prep["s2"], prep["b2"])

    # For the standalone test return NCHW f32; in a real network keep the
    # padded NHWC bf16 slab (padded lanes stay exactly zero) for the next block.
    out = out[..., :C].astype(jnp.float32)
    return jnp.transpose(out, (0, 3, 1, 2))


# ---------------------------------------------------------------------------
# Pure-JAX f32 reference (correctness check)
# ---------------------------------------------------------------------------
def _ref_conv3x3(x_nchw, w_oihw):
    return jax.lax.conv_general_dilated(
        x_nchw, w_oihw, window_strides=(1, 1), padding=((1, 1), (1, 1)),
        dimension_numbers=("NCHW", "OIHW", "NCHW"))


def basic_block_reference(x, p, eps=1e-5):
    def bn(y, g, b, m, v):
        return g[None, :, None, None] * (y - m[None, :, None, None]) / \
            jnp.sqrt(v[None, :, None, None] + eps) + b[None, :, None, None]
    out = jnp.maximum(bn(_ref_conv3x3(x, p["conv1_w"]),
                         p["bn1_gamma"], p["bn1_beta"], p["bn1_mean"], p["bn1_var"]), 0.0)
    out = bn(_ref_conv3x3(out, p["conv2_w"]),
             p["bn2_gamma"], p["bn2_beta"], p["bn2_mean"], p["bn2_var"])
    return jnp.maximum(out + x, 0.0)


# ---------------------------------------------------------------------------
if __name__ == "__main__":
    # Small shapes: batch=2, inplanes=planes=4, spatial=16x16 (stride=1).
    N, C, H, W = 2, 4, 16, 16
    key = jax.random.PRNGKey(0)
    k_x, k_w1, k_w2, k_b1, k_b2, k_m1, k_m2 = jax.random.split(key, 7)

    x = jax.random.normal(k_x, (N, C, H, W), dtype=jnp.float32)

    params = {
        "conv1_w": 0.1 * jax.random.normal(k_w1, (C, C, 3, 3), dtype=jnp.float32),
        "bn1_gamma": jnp.ones((C,), jnp.float32),
        "bn1_beta": 0.05 * jax.random.normal(k_b1, (C,), dtype=jnp.float32),
        "bn1_mean": 0.1 * jax.random.normal(k_m1, (C,), dtype=jnp.float32),
        "bn1_var": jnp.full((C,), 0.9, jnp.float32),
        "conv2_w": 0.1 * jax.random.normal(k_w2, (C, C, 3, 3), dtype=jnp.float32),
        "bn2_gamma": jnp.ones((C,), jnp.float32),
        "bn2_beta": 0.05 * jax.random.normal(k_b2, (C,), dtype=jnp.float32),
        "bn2_mean": 0.1 * jax.random.normal(k_m2, (C,), dtype=jnp.float32),
        "bn2_var": jnp.full((C,), 1.1, jnp.float32),
    }

    prep = prepare_basic_block_params(params)     # one-time packing / BN folding
    out = jax.block_until_ready(basic_block_forward(x, prep, row_tile=8))
    ref = jax.block_until_ready(basic_block_reference(x, params))

    assert out.shape == (N, C, H, W), out.shape
    # bf16 activations/weights/output (f32 MXU accumulation) vs f32 reference.
    max_err = float(jnp.max(jnp.abs(out - ref)))
    assert max_err < 1e-1, max_err
    print("KERNEL_OK")
</pallas_src>

<mosaic_0001>
module attributes {stable_mosaic.version = 11 : i64} {
  func.func @_basic_block_kernel(%arg0: i32, %arg1: i32, %arg2: memref<1x20x32x128xbf16, #tpu.memory_space<vmem>>, %arg3: memref<3x384x128xbf16, #tpu.memory_space<vmem>>, %arg4: memref<1x128xf32, #tpu.memory_space<vmem>>, %arg5: memref<1x128xf32, #tpu.memory_space<vmem>>, %arg6: memref<3x384x128xbf16, #tpu.memory_space<vmem>>, %arg7: memref<1x128xf32, #tpu.memory_space<vmem>>, %arg8: memref<1x128xf32, #tpu.memory_space<vmem>>, %arg9: memref<1x8x16x128xbf16, #tpu.memory_space<vmem>>, %arg10: memref<10x32x128xbf16, #tpu.memory_space<vmem>>) attributes {dimension_semantics = [#tpu.dimension_semantics<parallel>, #tpu.dimension_semantics<parallel>], iteration_bounds = array<i64: 2, 2>, scalar_prefetch = 0 : i64, scratch_operands = 1 : i64, tpu.core_type = #tpu.core_type<tc>, window_params = [{transform_indices = @transform_0, window_bounds = array<i64: 1, 20, 32, 128>}, {pipeline_mode = #tpu.pipeline_mode<synchronous>, transform_indices = @transform_1, window_bounds = array<i64: 3, 384, 128>}, {pipeline_mode = #tpu.pipeline_mode<synchronous>, transform_indices = @transform_2, window_bounds = array<i64: 1, 128>}, {pipeline_mode = #tpu.pipeline_mode<synchronous>, transform_indices = @transform_3, window_bounds = array<i64: 1, 128>}, {pipeline_mode = #tpu.pipeline_mode<synchronous>, transform_indices = @transform_4, window_bounds = array<i64: 3, 384, 128>}, {pipeline_mode = #tpu.pipeline_mode<synchronous>, transform_indices = @transform_5, window_bounds = array<i64: 1, 128>}, {pipeline_mode = #tpu.pipeline_mode<synchronous>, transform_indices = @transform_6, window_bounds = array<i64: 1, 128>}, {transform_indices = @transform_7, window_bounds = array<i64: 1, 8, 16, 128>}]} {
    %c8_i32 = arith.constant 8 : i32
    %0 = arith.muli %arg1, %c8_i32 : i32
    %1 = tpu.assume_multiple %0, 8 : i32
    %c0 = arith.constant 0 : index
    %2 = arith.index_cast %1 : i32 to index
    %c0_0 = arith.constant 0 : index
    %c0_1 = arith.constant 0 : index
    %3 = vector.load %arg2[%c0, %2, %c0_0, %c0_1] : memref<1x20x32x128xbf16, #tpu.memory_space<vmem>>, vector<1x12x32x128xbf16>
    %4 = vector.shape_cast %3 : vector<1x12x32x128xbf16> to vector<12x32x128xbf16>
    %5 = vector.extract_strided_slice %4 {offsets = [0, 0, 0], sizes = [10, 32, 128], strides = [1, 1, 1]} : vector<12x32x128xbf16> to vector<10x32x128xbf16>
    %6 = vector.extract_strided_slice %4 {offsets = [1, 0, 0], sizes = [10, 32, 128], strides = [1, 1, 1]} : vector<12x32x128xbf16> to vector<10x32x128xbf16>
    %7 = vector.extract_strided_slice %4 {offsets = [2, 0, 0], sizes = [10, 32, 128], strides = [1, 1, 1]} : vector<12x32x128xbf16> to vector<10x32x128xbf16>
    %8 = tpu.concatenate %5, %6, %7 in 2 : vector<10x32x128xbf16>, vector<10x32x128xbf16>, vector<10x32x128xbf16> -> vector<10x32x384xbf16>
    %cst = arith.constant 0.000000e+00 : f32
    %9 = vector.broadcast %cst : f32 to vector<160x128xf32>
    %10 = vector.extract_strided_slice %8 {offsets = [0, 7, 0], sizes = [10, 16, 384], strides = [1, 1, 1]} : vector<10x32x384xbf16> to vector<10x16x384xbf16>
    %11 = vector.shape_cast %10 : vector<10x16x384xbf16> to vector<160x384xbf16>
    %c0_2 = arith.constant 0 : index
    %c0_3 = arith.constant 0 : index
    %c0_4 = arith.constant 0 : index
    %12 = vector.load %arg3[%c0_2, %c0_3, %c0_4] : memref<3x384x128xbf16, #tpu.memory_space<vmem>>, vector<1x384x128xbf16>
    %13 = vector.shape_cast %12 : vector<1x384x128xbf16> to vector<384x128xbf16>
    %cst_5 = arith.constant dense<0.000000e+00> : vector<160x128xf32>
    %14 = tpu.matmul %11, %13, %cst_5 {dimension_numbers = #tpu.dot_dimension_numbers<[1], [0], [0], [1], [0, 0, 1, 1], [], []>} : vector<160x384xbf16>, vector<384x128xbf16>, vector<160x128xf32> -> vector<160x128xf32>
    %15 = arith.addf %9, %14 : vector<160x128xf32>
    %16 = vector.extract_strided_slice %8 {offsets = [0, 8, 0], sizes = [10, 16, 384], strides = [1, 1, 1]} : vector<10x32x384xbf16> to vector<10x16x384xbf16>
    %17 = vector.shape_cast %16 : vector<10x16x384xbf16> to vector<160x384xbf16>
    %c1 = arith.constant 1 : index
    %c0_6 = arith.constant 0 : index
    %c0_7 = arith.constant 0 : index
    %18 = vector.load %arg3[%c1, %c0_6, %c0_7] : memref<3x384x128xbf16, #tpu.memory_space<vmem>>, vector<1x384x128xbf16>
    %19 = vector.shape_cast %18 : vector<1x384x128xbf16> to vector<384x128xbf16>
    %cst_8 = arith.constant dense<0.000000e+00> : vector<160x128xf32>
    %20 = tpu.matmul %17, %19, %cst_8 {dimension_numbers = #tpu.dot_dimension_numbers<[1], [0], [0], [1], [0, 0, 1, 1], [], []>} : vector<160x384xbf16>, vector<384x128xbf16>, vector<160x128xf32> -> vector<160x128xf32>
    %21 = arith.addf %15, %20 : vector<160x128xf32>
    %22 = vector.extract_strided_slice %8 {offsets = [0, 9, 0], sizes = [10, 16, 384], strides = [1, 1, 1]} : vector<10x32x384xbf16> to vector<10x16x384xbf16>
    %23 = vector.shape_cast %22 : vector<10x16x384xbf16> to vector<160x384xbf16>
    %c2 = arith.constant 2 : index
    %c0_9 = arith.constant 0 : index
    %c0_10 = arith.constant 0 : index
    %24 = vector.load %arg3[%c2, %c0_9, %c0_10] : memref<3x384x128xbf16, #tpu.memory_space<vmem>>, vector<1x384x128xbf16>
    %25 = vector.shape_cast %24 : vector<1x384x128xbf16> to vector<384x128xbf16>
    %cst_11 = arith.constant dense<0.000000e+00> : vector<160x128xf32>
    %26 = tpu.matmul %23, %25, %cst_11 {dimension_numbers = #tpu.dot_dimension_numbers<[1], [0], [0], [1], [0, 0, 1, 1], [], []>} : vector<160x384xbf16>, vector<384x128xbf16>, vector<160x128xf32> -> vector<160x128xf32>
    %27 = arith.addf %21, %26 : vector<160x128xf32>
    %c0_12 = arith.constant 0 : index
    %c0_13 = arith.constant 0 : index
    %28 = vector.load %arg4[%c0_12, %c0_13] : memref<1x128xf32, #tpu.memory_space<vmem>>, vector<1x128xf32>
    %29 = vector.broadcast %28 : vector<1x128xf32> to vector<160x128xf32>
    %30 = arith.mulf %27, %29 : vector<160x128xf32>
    %c0_14 = arith.constant 0 : index
    %c0_15 = arith.constant 0 : index
    %31 = vector.load %arg5[%c0_14, %c0_15] : memref<1x128xf32, #tpu.memory_space<vmem>>, vector<1x128xf32>
    %32 = vector.broadcast %31 : vector<1x128xf32> to vector<160x128xf32>
    %33 = arith.addf %30, %32 : vector<160x128xf32>
    %cst_16 = arith.constant 0.000000e+00 : f32
    %34 = vector.broadcast %cst_16 : f32 to vector<160x128xf32>
    %35 = arith.maximumf %33, %34 : vector<160x128xf32>
    %36 = vector.shape_cast %35 : vector<160x128xf32> to vector<10x16x128xf32>
    %37 = arith.truncf %36 : vector<10x16x128xf32> to vector<10x16x128xbf16>
    %c0_17 = arith.constant 0 : index
    %c8 = arith.constant 8 : index
    %c0_18 = arith.constant 0 : index
    %38 = vector.load %arg10[%c0_17, %c8, %c0_18] : memref<10x32x128xbf16, #tpu.memory_space<vmem>>, vector<10x16x128xbf16>
    tpu.vector_store %arg10[%c0_17, %c8, %c0_18], %37 {strides = array<i32>} : memref<10x32x128xbf16, #tpu.memory_space<vmem>>, vector<10x16x128xbf16>,
    %cst_19 = arith.constant 0.000000e+00 : bf16
    %39 = vector.broadcast %cst_19 : bf16 to vector<10x8x128xbf16>
    %c0_20 = arith.constant 0 : index
    %c0_21 = arith.constant 0 : index
    %c0_22 = arith.constant 0 : index
    %40 = vector.load %arg10[%c0_20, %c0_21, %c0_22] : memref<10x32x128xbf16, #tpu.memory_space<vmem>>, vector<10x8x128xbf16>
    tpu.vector_store %arg10[%c0_20, %c0_21, %c0_22], %39 {strides = array<i32>} : memref<10x32x128xbf16, #tpu.memory_space<vmem>>, vector<10x8x128xbf16>,
    %cst_23 = arith.constant 0.000000e+00 : bf16
    %41 = vector.broadcast %cst_23 : bf16 to vector<10x8x128xbf16>
    %c0_24 = arith.constant 0 : index
    %c24 = arith.constant 24 : index
    %c0_25 = arith.constant 0 : index
    %42 = vector.load %arg10[%c0_24, %c24, %c0_25] : memref<10x32x128xbf16, #tpu.memory_space<vmem>>, vector<10x8x128xbf16>
    tpu.vector_store %arg10[%c0_24, %c24, %c0_25], %41 {strides = array<i32>} : memref<10x32x128xbf16, #tpu.memory_space<vmem>>, vector<10x8x128xbf16>,
    %c0_i32 = arith.constant 0 : i32
    %43 = arith.cmpi eq, %arg1, %c0_i32 : i32
    %44 = arith.extui %43 : i1 to i32
    %c0_i32_26 = arith.constant 0 : i32
    %45 = arith.cmpi ne, %44, %c0_i32_26 : i32
    scf.if %45 {
      %cst_53 = arith.constant 0.000000e+00 : bf16
      %90 = vector.broadcast %cst_53 : bf16 to vector<1x32x128xbf16>
      %c0_54 = arith.constant 0 : index
      %c0_55 = arith.constant 0 : index
      %c0_56 = arith.constant 0 : index
      %91 = vector.load %arg10[%c0_54, %c0_55, %c0_56] : memref<10x32x128xbf16, #tpu.memory_space<vmem>>, vector<1x32x128xbf16>
      tpu.vector_store %arg10[%c0_54, %c0_55, %c0_56], %90 {strides = array<i32>} : memref<10x32x128xbf16, #tpu.memory_space<vmem>>, vector<1x32x128xbf16>,
    } else {
    }
    %c1_i32 = arith.constant 1 : i32
    %46 = arith.cmpi eq, %arg1, %c1_i32 : i32
    %47 = arith.extui %46 : i1 to i32
    %c0_i32_27 = arith.constant 0 : i32
    %48 = arith.cmpi ne, %47, %c0_i32_27 : i32
    scf.if %48 {
      %cst_53 = arith.constant 0.000000e+00 : bf16
      %90 = vector.broadcast %cst_53 : bf16 to vector<1x32x128xbf16>
      %c9 = arith.constant 9 : index
      %c0_54 = arith.constant 0 : index
      %c0_55 = arith.constant 0 : index
      %91 = vector.load %arg10[%c9, %c0_54, %c0_55] : memref<10x32x128xbf16, #tpu.memory_space<vmem>>, vector<1x32x128xbf16>
      tpu.vector_store %arg10[%c9, %c0_54, %c0_55], %90 {strides = array<i32>} : memref<10x32x128xbf16, #tpu.memory_space<vmem>>, vector<1x32x128xbf16>,
    } else {
    }
    %c0_28 = arith.constant 0 : index
    %c0_29 = arith.constant 0 : index
    %c0_30 = arith.constant 0 : index
    %49 = vector.load %arg10[%c0_28, %c0_29, %c0_30] : memref<10x32x128xbf16, #tpu.memory_space<vmem>>, vector<10x32x128xbf16>
    %50 = vector.extract_strided_slice %49 {offsets = [0, 0, 0], sizes = [8, 32, 128], strides = [1, 1, 1]} : vector<10x32x128xbf16> to vector<8x32x128xbf16>
    %51 = vector.extract_strided_slice %49 {offsets = [1, 0, 0], sizes = [8, 32, 128], strides = [1, 1, 1]} : vector<10x32x128xbf16> to vector<8x32x128xbf16>
    %52 = vector.extract_strided_slice %49 {offsets = [2, 0, 0], sizes = [8, 32, 128], strides = [1, 1, 1]} : vector<10x32x128xbf16> to vector<8x32x128xbf16>
    %53 = tpu.concatenate %50, %51, %52 in 2 : vector<8x32x128xbf16>, vector<8x32x128xbf16>, vector<8x32x128xbf16> -> vector<8x32x384xbf16>
    %cst_31 = arith.constant 0.000000e+00 : f32
    %54 = vector.broadcast %cst_31 : f32 to vector<128x128xf32>
    %55 = vector.extract_strided_slice %53 {offsets = [0, 7, 0], sizes = [8, 16, 384], strides = [1, 1, 1]} : vector<8x32x384xbf16> to vector<8x16x384xbf16>
    %56 = vector.shape_cast %55 : vector<8x16x384xbf16> to vector<128x384xbf16>
    %c0_32 = arith.constant 0 : index
    %c0_33 = arith.constant 0 : index
    %c0_34 = arith.constant 0 : index
    %57 = vector.load %arg6[%c0_32, %c0_33, %c0_34] : memref<3x384x128xbf16, #tpu.memory_space<vmem>>, vector<1x384x128xbf16>
    %58 = vector.shape_cast %57 : vector<1x384x128xbf16> to vector<384x128xbf16>
    %cst_35 = arith.constant dense<0.000000e+00> : vector<128x128xf32>
    %59 = tpu.matmul %56, %58, %cst_35 {dimension_numbers = #tpu.dot_dimension_numbers<[1], [0], [0], [1], [0, 0, 1, 1], [], []>} : vector<128x384xbf16>, vector<384x128xbf16>, vector<128x128xf32> -> vector<128x128xf32>
    %60 = arith.addf %54, %59 : vector<128x128xf32>
    %61 = vector.extract_strided_slice %53 {offsets = [0, 8, 0], sizes = [8, 16, 384], strides = [1, 1, 1]} : vector<8x32x384xbf16> to vector<8x16x384xbf16>
    %62 = vector.shape_cast %61 : vector<8x16x384xbf16> to vector<128x384xbf16>
    %c1_36 = arith.constant 1 : index
    %c0_37 = arith.constant 0 : index
    %c0_38 = arith.constant 0 : index
    %63 = vector.load %arg6[%c1_36, %c0_37, %c0_38] : memref<3x384x128xbf16, #tpu.memory_space<vmem>>, vector<1x384x128xbf16>
    %64 = vector.shape_cast %63 : vector<1x384x128xbf16> to vector<384x128xbf16>
    %cst_39 = arith.constant dense<0.000000e+00> : vector<128x128xf32>
    %65 = tpu.matmul %62, %64, %cst_39 {dimension_numbers = #tpu.dot_dimension_numbers<[1], [0], [0], [1], [0, 0, 1, 1], [], []>} : vector<128x384xbf16>, vector<384x128xbf16>, vector<128x128xf32> -> vector<128x128xf32>
    %66 = arith.addf %60, %65 : vector<128x128xf32>
    %67 = vector.extract_strided_slice %53 {offsets = [0, 9, 0], sizes = [8, 16, 384], strides = [1, 1, 1]} : vector<8x32x384xbf16> to vector<8x16x384xbf16>
    %68 = vector.shape_cast %67 : vector<8x16x384xbf16> to vector<128x384xbf16>
    %c2_40 = arith.constant 2 : index
    %c0_41 = arith.constant 0 : index
    %c0_42 = arith.constant 0 : index
    %69 = vector.load %arg6[%c2_40, %c0_41, %c0_42] : memref<3x384x128xbf16, #tpu.memory_space<vmem>>, vector<1x384x128xbf16>
    %70 = vector.shape_cast %69 : vector<1x384x128xbf16> to vector<384x128xbf16>
    %cst_43 = arith.constant dense<0.000000e+00> : vector<128x128xf32>
    %71 = tpu.matmul %68, %70, %cst_43 {dimension_numbers = #tpu.dot_dimension_numbers<[1], [0], [0], [1], [0, 0, 1, 1], [], []>} : vector<128x384xbf16>, vector<384x128xbf16>, vector<128x128xf32> -> vector<128x128xf32>
    %72 = arith.addf %66, %71 : vector<128x128xf32>
    %c0_44 = arith.constant 0 : index
    %c0_45 = arith.constant 0 : index
    %73 = vector.load %arg7[%c0_44, %c0_45] : memref<1x128xf32, #tpu.memory_space<vmem>>, vector<1x128xf32>
    %74 = vector.broadcast %73 : vector<1x128xf32> to vector<128x128xf32>
    %75 = arith.mulf %72, %74 : vector<128x128xf32>
    %c0_46 = arith.constant 0 : index
    %c0_47 = arith.constant 0 : index
    %76 = vector.load %arg8[%c0_46, %c0_47] : memref<1x128xf32, #tpu.memory_space<vmem>>, vector<1x128xf32>
    %77 = vector.broadcast %76 : vector<1x128xf32> to vector<128x128xf32>
    %78 = arith.addf %75, %77 : vector<128x128xf32>
    %79 = vector.extract_strided_slice %4 {offsets = [2, 8, 0], sizes = [8, 16, 128], strides = [1, 1, 1]} : vector<12x32x128xbf16> to vector<8x16x128xbf16>
    %80 = arith.extf %79 : vector<8x16x128xbf16> to vector<8x16x128xf32>
    %81 = vector.shape_cast %80 : vector<8x16x128xf32> to vector<128x128xf32>
    %82 = arith.addf %78, %81 : vector<128x128xf32>
    %cst_48 = arith.constant 0.000000e+00 : f32
    %83 = vector.broadcast %cst_48 : f32 to vector<128x128xf32>
    %84 = arith.maximumf %82, %83 : vector<128x128xf32>
    %85 = vector.shape_cast %84 : vector<128x128xf32> to vector<8x16x128xf32>
    %86 = arith.truncf %85 : vector<8x16x128xf32> to vector<8x16x128xbf16>
    %c0_49 = arith.constant 0 : index
    %c0_50 = arith.constant 0 : index
    %c0_51 = arith.constant 0 : index
    %c0_52 = arith.constant 0 : index
    %87 = vector.load %arg9[%c0_49, %c0_50, %c0_51, %c0_52] : memref<1x8x16x128xbf16, #tpu.memory_space<vmem>>, vector<1x8x16x128xbf16>
    %88 = vector.shape_cast %87 : vector<1x8x16x128xbf16> to vector<8x16x128xbf16>
    %89 = vector.shape_cast %86 : vector<8x16x128xbf16> to vector<1x8x16x128xbf16>
    tpu.vector_store %arg9[%c0_49, %c0_50, %c0_51, %c0_52], %89 {strides = array<i32>} : memref<1x8x16x128xbf16, #tpu.memory_space<vmem>>, vector<1x8x16x128xbf16>,
    return
  }
  func.func @transform_0(%arg0: i32, %arg1: i32) -> (i32, i32, i32, i32) {
    %c0_i32 = arith.constant 0 : i32
    %c0_i32_0 = arith.constant 0 : i32
    %c0_i32_1 = arith.constant 0 : i32
    %c0_i32_2 = arith.constant 0 : i32
    return %arg0, %c0_i32, %c0_i32_0, %c0_i32_1 : i32, i32, i32, i32
  }
  func.func @transform_1(%arg0: i32, %arg1: i32) -> (i32, i32, i32) {
    %c0_i32 = arith.constant 0 : i32
    %c0_i32_0 = arith.constant 0 : i32
    %c0_i32_1 = arith.constant 0 : i32
    %c0_i32_2 = arith.constant 0 : i32
    return %c0_i32, %c0_i32_0, %c0_i32_1 : i32, i32, i32
  }
  func.func @transform_2(%arg0: i32, %arg1: i32) -> (i32, i32) {
    %c0_i32 = arith.constant 0 : i32
    %c0_i32_0 = arith.constant 0 : i32
    %c0_i32_1 = arith.constant 0 : i32
    return %c0_i32, %c0_i32_0 : i32, i32
  }
  func.func @transform_3(%arg0: i32, %arg1: i32) -> (i32, i32) {
    %c0_i32 = arith.constant 0 : i32
    %c0_i32_0 = arith.constant 0 : i32
    %c0_i32_1 = arith.constant 0 : i32
    return %c0_i32, %c0_i32_0 : i32, i32
  }
  func.func @transform_4(%arg0: i32, %arg1: i32) -> (i32, i32, i32) {
    %c0_i32 = arith.constant 0 : i32
    %c0_i32_0 = arith.constant 0 : i32
    %c0_i32_1 = arith.constant 0 : i32
    %c0_i32_2 = arith.constant 0 : i32
    return %c0_i32, %c0_i32_0, %c0_i32_1 : i32, i32, i32
  }
  func.func @transform_5(%arg0: i32, %arg1: i32) -> (i32, i32) {
    %c0_i32 = arith.constant 0 : i32
    %c0_i32_0 = arith.constant 0 : i32
    %c0_i32_1 = arith.constant 0 : i32
    return %c0_i32, %c0_i32_0 : i32, i32
  }
  func.func @transform_6(%arg0: i32, %arg1: i32) -> (i32, i32) {
    %c0_i32 = arith.constant 0 : i32
    %c0_i32_0 = arith.constant 0 : i32
    %c0_i32_1 = arith.constant 0 : i32
    return %c0_i32, %c0_i32_0 : i32, i32
  }
  func.func @transform_7(%arg0: i32, %arg1: i32) -> (i32, i32, i32, i32) {
    %c0_i32 = arith.constant 0 : i32
    %c0_i32_0 = arith.constant 0 : i32
    %c0_i32_1 = arith.constant 0 : i32
    return %arg0, %arg1, %c0_i32, %c0_i32_0 : i32, i32, i32, i32
  }
}

</mosaic_0001>

<bundles_post_ra>
// kernel: tpu_custom_call.1
= control target key start
LH: loop header
LB: loop body
LE: loop exit
PB: predicated region body
PF: predicated region fallthrough
CT: control target
= control target key end

     0   :  { %s7519_s0 = inlined_call_operand.hbm [shape: bf16[2,20,32,128], index: 0, kind: input, shape index: {}]   ;;  %s7520_s1 = inlined_call_operand.hbm [shape: bf16[3,384,128], index: 1, kind: input, shape index: {}]   ;;  %s7521_s2 = inlined_call_operand.vmem [shape: f32[1,128], index: 2, kind: input, shape index: {}]   ;;  %s7522_s3 = inlined_call_operand.vmem [shape: f32[1,128], index: 3, kind: input, shape index: {}]   ;;  %s7523_s4 = inlined_call_operand.hbm [shape: bf16[3,384,128], index: 4, kind: input, shape index: {}]   ;;  %s7524_s5 = inlined_call_operand.vmem [shape: f32[1,128], index: 5, kind: input, shape index: {}]   ;;  %s7525_s6 = inlined_call_operand.vmem [shape: f32[1,128], index: 6, kind: input, shape index: {}]   ;;  %s7526_s7 = inlined_call_operand.hbm [shape: bf16[2,16,16,128], index: 7, kind: output, shape index: {}]  }
   0x1   :  { %7622 = sst [smem:[#allocation27_spill]] %s7520_s1 }
   0x2   :  { %7623 = sst [smem:[#allocation28_spill]] %s7523_s4 }
   0x3   :  { %7624 = sst [smem:[#allocation29_spill]] %s7525_s6 }
   0x4   :  { %7625 = sst [smem:[#allocation30_spill]] %s7526_s7 }
   0x5   :  { %12 = vsyncpa [#allocation4], 0 }
   0x6   :  { %14 = vsyncpa [#allocation4 + $0x1], 0 }
   0x7   :  { %15 = vsyncpa [#allocation7], 0 }
   0x8   :  { %16 = vsyncpa [#allocation5], 0 }
   0x9   :  { %18 = vsyncpa [#allocation5 + $0x1], 0  ;;  %s5900_s24 = smov 0   ;;  %s5902_s25 = smov 0  }
   0xa   :  { %s5904_s26 = smov 0   ;;  %s5906_s27 = smov 0  }
   0xb   :  { %s5908_s28 = smov 0   ;;  %s5910_s29 = smov 0  }
   0xc   :  { %s5912_s30 = smov 0   ;;  %s5914_s8 = smov 0  }
   0xd   :  { %s5916_s9 = smov 0   ;;  %s5918_s10 = smov 0  }
   0xe   :  { %s5920_s11 = smov 0  }
   0xf LB: > { %7626 = sst [smem:[#allocation13_spill]] %s5807_s24  ;;  %s4135_s12 = sadd.s32 4294967295, %s5847_s11   ;;  %s5847_s11 = sphi %s5920_s11, %s24_s11   ;;  %s5843_s10 = sphi %s5918_s10, %s7765_s10   ;;  %s5839_s9 = sphi %s5916_s9, %s7757_s9   ;;  %s5835_s8 = sphi %s5914_s8, %s7764_s8   ;;  %s5831_s30 = sphi %s5912_s30, %s7756_s30   ;;  %s5827_s29 = sphi %s5910_s29, %s7763_s29   ;;  %s5823_s28 = sphi %s5908_s28, %s7762_s28   ;;  %s5819_s27 = sphi %s5906_s27, %s7761_s27   ;;  %s5815_s26 = sphi %s5904_s26, %s7760_s26   ;;  %s5811_s25 = sphi %s5902_s25, %s7759_s25   ;;  %s5807_s24 = sphi %s5900_s24, %s7758_s24  }
  0x10   : > { %7627 = sst [smem:[#allocation14_spill]] %s5835_s8  ;;  %s4136_s13 = sadd.s32 4294967294, %s5847_s11  }
  0x11   : > { %7628 = sst [smem:[#allocation15_spill]] %s5839_s9  ;;  %p56_p0 = scmp.ne.s32.totalorder %s5823_s28, %s5819_s27 }
  0x12   : > { %p5956_p1 = scmp.eq.s32.totalorder %s4135_s12, 0  ;;  %p207_p2 = scmp.ne.s32.totalorder %s5815_s26, %s5811_s25 }
  0x13   : > { %p208_p4 = scmp.eq.s32.totalorder %s4135_s12, 3  ;;  %p213_p5 = scmp.ne.s32.totalorder %s5811_s25, %s5807_s24 }
  0x14   : > { %s7629_s14 = scalar_select %p5956_p1, 1, 0 }
  0x15   : > { %p5965_p3 = por %p5956_p1, %p56_p0  ;;  %p214_p6 = scmp.eq.s32.totalorder %s4136_s13, 3 }
  0x16   : > { %p5971_p7 = por %p208_p4, %p207_p2  ;;  %p4137_p8 = scmp.ge.s32.totalorder %s5847_s11, 1 }
  0x17   : > { %s7630_s16 = scalar_select %p5965_p3, 1, 0 }
  0x18   : > { %s7631_s17 = scalar_select %p5971_p7, 1, 0 }
  0x19   : > { %p5976_p9 = por %p214_p6, %p213_p5  ;;  %p221_p10 = scmp.lt.s32.totalorder %s5847_s11, 5 }
  0x1a   : > { %7632 = sst [smem:[#allocation16_spill]] %s7631_s17  ;;  %s5849_s20 = smov [#allocation6]  }
  0x1b   : > { %s7633_s18 = scalar_select %p5976_p9, 1, 0 }
  0x1c   : > { %p5981_p11 = pnand %p4137_p8, %p221_p10  ;;  %s233_s21 = sshll.u32 %s5849_s20, 4  ;;  %s234_s21 = int_to_ptr.vmem [resolvable:$true] %s233_s21 }
  0x1d   : > { %7634 = sst [smem:[#allocation17_spill]] %s7633_s18  ;;  %s5850_s23 = smov [#allocation8]  }
  0x1e   : > { %s7635_s19 = scalar_select %p5981_p11, 1, 0 }
  0x1f   : > { %p5333_p12 = pneg %p5981_p11  ;;  %s252_s27 = sshll.u32 %s5850_s23, 4  ;;  %s5993_s27 = int_to_ptr.vmem [resolvable:$true] %s252_s27 }
  0x20   : > { %s7637_s1 = sld [smem:[#allocation27_spill]] }
  0x21   : > { %p5989_p13 = pnand %p5333_p12, %p5956_p1 }
  0x23   : > { %p5637_p2 = pneg %p5989_p13 }
  0x26   : > { %s5635_s15 = scalar_lea.hbm %s7637_s1, 9216 }
  0x27   : > { %p5636_p0 = scmp.ne.s32.totalorder %s7637_s1, %s5635_s15  ;;  %p5642_p6 = scmp.lt.u32.totalorder %s5635_s15, %s7637_s1 }
  0x29   : > { %p5638_p4 = pnand %p5637_p2, %p5636_p0 }
  0x2b   : > { %p5639_p5 = pneg %p5638_p4 }
  0x2d   : > { %p5644_p8 = pnand %p5642_p6, %p5639_p5 }
  0x2f   : > { %5647 = shalt.err (!%p5644_p8)
}
  0x30   : > { %s5648_s23 = scalar_lea.vmem %s234_s21, 9216  ;;  %p5656_p7 = scmp.lt.s32.totalorder %s234_s21, %s234_s21 }
  0x31   : > { %p5649_p10 = scmp.ne.s32.totalorder %s234_s21, %s5648_s23  ;;  %p5657_p1 = scmp.lt.s32.totalorder %s5648_s23, %s5648_s23 }
  0x33   : > { %p5651_p12 = pnand %p5649_p10, %p5637_p2  ;;  %p5658_p3 = por %p5657_p1, %p5656_p7 }
  0x35   : > { %p5652_p9 = pneg %p5651_p12 }
  0x37   : > { %p5659_p11 = pnand %p5658_p3, %p5652_p9 }
  0x39   : > { %5662 = shalt.err (!%p5659_p11)
}
  0x3a   : > { %s7537_s18 = smov 64   ;;  %s7538_s12 = smov 4  }
  0x3b   : > { %5336 = dma.hbm_to_vmem [thread:$0]  (!%p5989_p13), %s7637_s1, 9216, %s234_s21, [#allocation7], %s7537_s18, %s7537_s18, %s7538_s12  }
  0x3c   : > { %s7638_s4 = sld [smem:[#allocation28_spill]] }
  0x42   : > { %s5663_s20 = scalar_lea.hbm %s7638_s4, 9216 }
  0x43   : > { %p5664_p1 = scmp.ne.s32.totalorder %s7638_s4, %s5663_s20  ;;  %p5670_p9 = scmp.lt.u32.totalorder %s5663_s20, %s7638_s4 }
  0x45   : > { %p5666_p3 = pnand %p5664_p1, %p5637_p2 }
  0x47   : > { %p5667_p7 = pneg %p5666_p3 }
  0x49   : > { %p5672_p11 = pnand %p5670_p9, %p5667_p7 }
  0x4b   : > { %5675 = shalt.err (!%p5672_p11)
}
  0x4c   : > { %s5676_s21 = scalar_lea.vmem %s5993_s27, 9216  ;;  %p5684_p6 = scmp.lt.s32.totalorder %s5993_s27, %s5993_s27 }
  0x4d   : > { %p5677_p0 = scmp.ne.s32.totalorder %s5993_s27, %s5676_s21  ;;  %p5685_p8 = scmp.lt.s32.totalorder %s5676_s21, %s5676_s21 }
  0x4f   : > { %p5679_p4 = pnand %p5677_p0, %p5637_p2  ;;  %p5686_p10 = por %p5685_p8, %p5684_p6 }
  0x51   : > { %p5680_p5 = pneg %p5679_p4 }
  0x53   : > { %p5687_p12 = pnand %p5686_p10, %p5680_p5 }
  0x55   : > { %5690 = shalt.err (!%p5687_p12)
}
  0x56   : > { %5339 = dma.hbm_to_vmem [thread:$0]  (!%p5989_p13), %s7638_s4, 9216, %s5993_s27, [#allocation7], %s7537_s18, %s7537_s18, %s7538_s12  }
  0x57   : > { %s33_s17 = sadd.s32 1, %s5839_s9  ;;  %s36_s22 = sadd.s32 1, %s5843_s10 }
  0x58   : > { %p34_p2 = scmp.ge.s32.totalorder %s33_s17, 2  ;;  %s43_s7 = sadd.s32 1, %s5827_s29 }
  0x59   : > { %p50_p1 = scmp.ne.s32.totalorder %s5827_s29, %s5823_s28  ;;  %p51_p3 = scmp.eq.s32.totalorder %s5847_s11, 0 }
  0x5a   : > { %s7767_s17 = smov (%p34_p2, %s33_s17), 0  ;;  %s7769_s22 = smov (!%p34_p2, %s36_s22), %s5843_s10 }
  0x5b   : > { %7639 = sst [smem:[#allocation18_spill]] %s7767_s17  ;;  %p6057_p7 = por %p51_p3, %p50_p1 }
  0x5c   : > { %s193_s15 = ssub.s32 %s5839_s9, %s7767_s17  ;;  %p38_p13 = scmp.ge.s32.totalorder %s7769_s22, 2 }
  0x5d   : > { %p5350_p9 = scmp.lt.s32.totalorder %s5847_s11, 4  ;;  %s272_s27 = sand.u32 1, %s5827_s29  }
  0x5e   : > { %s5319_s13 = smul.u32 5120, %s5843_s10  ;;  %s7771_s22 = smov (%p38_p13, %s7769_s22), 0 }
  0x5f   : > { %s5318_s20 = smul.u32 320, %s272_s27  ;;  %s40_s23 = ssub.s32 %s5843_s10, %s7771_s22 }
  0x60   : > { %s6073_s8 = scalar_lea.hbm %s7519_s0, %s5319_s13  ;;  %p41_p11 = scmp.eq.s32.totalorder %s40_s23, 0 }
  0x61   : > { %s194_s18 = sor.u32 %s193_s15, %s40_s23  ;;  %s7641_s1 = sadd.s32 1, %s5815_s26 }
  0x62   : > { %p195_p0 = scmp.eq.s32.totalorder %s194_s18, 0  ;;  %s276_s17 = scalar_lea.vmem [#allocation3], %s5318_s20 }
  0x63   : > { %s6076_s12 = scalar_select %p41_p11, %s5827_s29, %s43_s7  }
  0x64   : > { %s6081_s4 = scalar_select %p195_p0, %s5815_s26, %s7641_s1  }
  0x65   : > { %s283_s9 = sshll.u32 %s276_s17, 4  ;;  %p6087_p4 = pnand %p5350_p9, %p6057_p7  ;;  %s6091_s9 = int_to_ptr.vmem [resolvable:$true] %s283_s9 }
  0x66   : > { %s6093_s15 = scalar_lea.sflag [#allocation4], %s272_s27  ;;  %s5691_s18 = scalar_lea.hbm %s6073_s8, 5120 }
  0x67   : > { %p5692_p5 = scmp.ne.s32.totalorder %s6073_s8, %s5691_s18  ;;  %p5693_p6 = pneg %p6087_p4 }
  0x68   : > { %s5696_s7 = scalar_lea.hbm %s7519_s0, 10240  ;;  %p5697_p12 = scmp.lt.u32.totalorder %s6073_s8, %s7519_s0 }
  0x69   : > { %p5694_p8 = pnand %p5693_p6, %p5692_p5  ;;  %p5698_p2 = scmp.lt.u32.totalorder %s5696_s7, %s5691_s18 }
  0x6a   : > { %p5700_p3 = scmp.lt.u32.totalorder %s5691_s18, %s6073_s8 }
  0x6b   : > { %p5695_p10 = pneg %p5694_p8  ;;  %p5699_p1 = por %p5698_p2, %p5697_p12 }
  0x6d   : > { %p5701_p7 = por %p5700_p3, %p5699_p1 }
  0x6f   : > { %p5702_p13 = pnand %p5701_p7, %p5695_p10 }
  0x71   : > { %5705 = shalt.err (!%p5702_p13)
}
  0x72   : > { %s5706_s27 = scalar_lea.vmem %s6091_s9, 5120  ;;  %s5853_s20 = smov [#allocation3]  }
  0x73   : > { %p5707_p9 = scmp.ne.s32.totalorder %s6091_s9, %s5706_s27  ;;  %s5711_s23 = sshll.u32 %s5853_s20, 4  ;;  %s5712_s23 = int_to_ptr.vmem [resolvable:$false] %s5711_s23 }
  0x74   : > { %s5713_s6 = scalar_lea.vmem %s5712_s23, 10240  ;;  %p5714_p5 = scmp.lt.s32.totalorder %s6091_s9, %s5712_s23 }
  0x75   : > { %p5709_p11 = pnand %p5707_p9, %p5693_p6  ;;  %p5715_p8 = scmp.lt.s32.totalorder %s5713_s6, %s5706_s27 }
  0x77   : > { %p5710_p0 = pneg %p5709_p11  ;;  %p5716_p12 = por %p5715_p8, %p5714_p5 }
  0x79   : > { %p5717_p2 = pnand %p5716_p12, %p5710_p0 }
  0x7b   : > { %5720 = shalt.err (!%p5717_p2)
}
  0x7c   : > { %s7643_s18 = smov 4   ;;  %s7644_s1 = smov 64  }
  0x7d   : > { %5343 = dma.hbm_to_vmem [thread:$0]  (!%p6087_p4), %s6073_s8, 5120, %s6091_s9, %s6093_s15, %s7644_s1, %s7644_s1, %s7643_s18  }
  0x7e   : > { %p7645_p6 = scmp.ne.s32.totalorder %s7635_s19, 0 }
  0x80   : > { %295 = sbr.rel (%p7645_p6) target bundleno = 1037 (0x40d), region = 48 }
  0x87   : > { %s297_s17 = sand.u32 1, %s5823_s28   ;;  %p7646_p10 = scmp.ne.s32.totalorder %s7630_s16, 0 }
  0x88   : > { %s6127_s7 = smul.u32 320, %s297_s17  ;;  %s298_s24 = scalar_lea.sflag [#allocation4], %s297_s17 }
  0x8a   : > { %s301_s13 = scalar_lea.vmem [#allocation3], %s6127_s7 }
  0x8b   : > { %5794 = dma.done.wait (%p7646_p10), %s298_s24, 5120  }
  0x8c   : > { %5796 = vsyncadd (%p7646_p10), %s298_s24, 4294962176  ;;  %p7647_p1 = scmp.ne.s32.totalorder %s7629_s14, 0 }
  0x8e   : > { %5798 = dma.done.wait (%p7647_p1), [#allocation7], 18432  }
  0x8f   : > { %5800 = vsyncadd (%p7647_p1), [#allocation7], 4294948864  ;;  %s337_s9 = sand.u32 1, %s5811_s25   ;;  %v5854_v0 = vmov 0   ;;  %v5451_v1 = vld [vmem:[#allocation6 + $0x100] sm:$0xff]   ;;  %v5455_v5 = vld [vmem:[#allocation6 + $0x108] sm:$0xff]  }
  0x90   : > { %2287 = vst [vmem:[#allocation2] sm:$0xf] %v5854_v0  ;;  %2288 = vst [vmem:[#allocation2 + $0x10] sm:$0xf] %v5854_v0  ;;  %s6141_s14 = sshll.u32 %s337_s9, 6  ;;  %v5452_v2 = vld [vmem:[#allocation6 + $0xc0] sm:$0xff]   ;;  %4412 = vmatprep.subr.bf16.mxu0 %v5451_v1 }
  0x91   : > { %2289 = vst [vmem:[#allocation2 + $0x20] sm:$0xf] %v5854_v0  ;;  %2290 = vst [vmem:[#allocation2 + $0x30] sm:$0xf] %v5854_v0  ;;  %v5453_v3 = vld [vmem:[#allocation6 + $0x40] sm:$0xff]   ;;  %4413 = vmatpush3.bf16.msra.mxu0 %v5452_v2  ;;  %v5456_v6 = vld [vmem:[#allocation6 + $0xc8] sm:$0xff]  }
  0x92   : > { %2291 = vst [vmem:[#allocation2 + $0x40] sm:$0xf] %v5854_v0  ;;  %2292 = vst [vmem:[#allocation2 + $0x50] sm:$0xf] %v5854_v0  ;;  %v5454_v4 = vld [vmem:[#allocation6] sm:$0xff]   ;;  %4506 = vmatprep.subr.bf16.mxu1 %v5453_v3  ;;  %4414 = vmatprep.subr.bf16.mxu0 %v5455_v5  ;;  %v5457_v7 = vld [vmem:[#allocation6 + $0x48] sm:$0xff]  }
  0x93   : > { %2293 = vst [vmem:[#allocation2 + $0x60] sm:$0xf] %v5854_v0  ;;  %2294 = vst [vmem:[#allocation2 + $0x70] sm:$0xf] %v5854_v0  ;;  %4507 = vmatpush3.bf16.msra.mxu1 %v5454_v4  ;;  %v5458_v8 = vld [vmem:[#allocation6 + $0x8] sm:$0xff]   ;;  %v5459_v9 = vld [vmem:[#allocation6 + $0x110] sm:$0xff]  }
  0x94   : > { %2295 = vst [vmem:[#allocation2 + $0x80] sm:$0xf] %v5854_v0  ;;  %2296 = vst [vmem:[#allocation2 + $0x90] sm:$0xf] %v5854_v0  ;;  %4508 = vmatprep.subr.bf16.mxu1 %v5457_v7  ;;  %v5460_v10 = vld [vmem:[#allocation6 + $0xd0] sm:$0xff]   ;;  %v5463_v13 = vld [vmem:[#allocation6 + $0x118] sm:$0xff]  }
  0x95   : > { %2297 = vst [vmem:[#allocation2 + $0x8] sm:$0xf0] %v5854_v0  ;;  %2298 = vst [vmem:[#allocation2 + $0x18] sm:$0xf0] %v5854_v0  ;;  %4415 = vmatpush3.bf16.msra.mxu0 %v5456_v6  ;;  %v5461_v11 = vld [vmem:[#allocation6 + $0x50] sm:$0xff]   ;;  %v5464_v14 = vld [vmem:[#allocation6 + $0xd8] sm:$0xff]  }
  0x96   : > { %2299 = vst [vmem:[#allocation2 + $0x28] sm:$0xf0] %v5854_v0  ;;  %2300 = vst [vmem:[#allocation2 + $0x38] sm:$0xf0] %v5854_v0  ;;  %4416 = vmatprep.subr.bf16.mxu0 %v5459_v9  ;;  %v5462_v12 = vld [vmem:[#allocation6 + $0x10] sm:$0xff]   ;;  %v5465_v15 = vld [vmem:[#allocation6 + $0x58] sm:$0xff]  }
  0x97   : > { %2301 = vst [vmem:[#allocation2 + $0x48] sm:$0xf0] %v5854_v0  ;;  %2302 = vst [vmem:[#allocation2 + $0x58] sm:$0xf0] %v5854_v0  ;;  %4509 = vmatpush3.bf16.msra.mxu1 %v5458_v8  ;;  %v5466_v16 = vld [vmem:[#allocation6 + $0x18] sm:$0xff]   ;;  %v5467_v17 = vld [vmem:[#allocation6 + $0x120] sm:$0xff]  }
  0x98   : > { %2303 = vst [vmem:[#allocation2 + $0x68] sm:$0xf0] %v5854_v0  ;;  %2304 = vst [vmem:[#allocation2 + $0x78] sm:$0xf0] %v5854_v0  ;;  %4510 = vmatprep.subr.bf16.mxu1 %v5461_v11  ;;  %v5468_v18 = vld [vmem:[#allocation6 + $0xe0] sm:$0xff]   ;;  %v5471_v21 = vld [vmem:[#allocation6 + $0x128] sm:$0xff]  }
  0x99   : > { %2305 = vst [vmem:[#allocation2 + $0x88] sm:$0xf0] %v5854_v0  ;;  %2306 = vst [vmem:[#allocation2 + $0x98] sm:$0xf0] %v5854_v0  ;;  %4417 = vmatpush3.bf16.msra.mxu0 %v5460_v10  ;;  %v5469_v19 = vld [vmem:[#allocation6 + $0x60] sm:$0xff]   ;;  %v5472_v22 = vld [vmem:[#allocation6 + $0xe8] sm:$0xff]  }
  0x9a   : > { %4418 = vmatprep.subr.bf16.mxu0 %v5463_v13  ;;  %v5470_v20 = vld [vmem:[#allocation6 + $0x20] sm:$0xff]   ;;  %v5473_v23 = vld [vmem:[#allocation6 + $0x68] sm:$0xff]   ;;  %v5475_v25 = vld [vmem:[#allocation6 + $0x130] sm:$0xff]   ;;  %s4347_s16 = sshll.u32 %s5831_s30, 7  ;;  %vm514_vm0 = vsmask.f32 4352 }
  0x9b   : > { %4511 = vmatpush3.bf16.msra.mxu1 %v5462_v12  ;;  %v5474_v24 = vld [vmem:[#allocation6 + $0x28] sm:$0xff]   ;;  %v5476_v26 = vld [vmem:[#allocation6 + $0xf0] sm:$0xff]   ;;  %v5479_v29 = vld [vmem:[#allocation6 + $0x138] sm:$0xff]   ;;  %s6146_s19 = scalar_lea.vmem %s301_s13, %s4347_s16 [#allocation3]  ;;  %vm779_vm1 = vcmask 1043456   ;;  %vm1617_vm2 = vsmask.f32 3328 }
  0x9c   : > { %4512 = vmatprep.subr.bf16.mxu1 %v5465_v15  ;;  %v5477_v27 = vld [vmem:[#allocation6 + $0x70] sm:$0xff]   ;;  %v5480_v30 = vld [vmem:[#allocation6 + $0xf8] sm:$0xff]   ;;  %v6157_v37 = vld [vmem:[%s6146_s19] sm:$0xff]   ;;  %s6921_s20 = scalar_lea.vmem [#allocation9], %s6141_s14  ;;  %p4247_p4 = scmp.ne.s32.totalorder %s5831_s30, 0 }
  0x9d   : > { %4419 = vmatpush3.bf16.msra.mxu0 %v5464_v14  ;;  %v5478_v28 = vld [vmem:[#allocation6 + $0x30] sm:$0xff]   ;;  %v5481_v31 = vld [vmem:[#allocation6 + $0x78] sm:$0xff]   ;;  %v6164_v40 = vld [vmem:[%s6146_s19 + $0x8] sm:$0xff]   ;;  %v780_v42 = vrot.slane %v6157_v37, 4  ;;  %v516_v50 = vshrl.u32 %v6157_v37, 16  ;;  %v519_v51 = vshll.u32 %v6157_v37, 16 }
  0x9e   : > { %4420 = vmatprep.subr.bf16.mxu0 %v5467_v17  ;;  %v6149_v32 = vld [vmem:[%s6146_s19 + $0x10] sm:$0xff]   ;;  %v6152_v33 = vld [vmem:[%s6146_s19 + $0x18] sm:$0xff]   ;;  %v5487_v43 = vld [vmem:[#allocation6 + $0x140] sm:$0xff]   ;;  %v781_v48 = vrot.slane %v6164_v40, 4  ;;  %v7567_v56 = vshrl.u32 %v6164_v40, 16  ;;  %v7566_v57 = vshll.u32 %v6164_v40, 16 }
  0x9f   : > { %4513 = vmatpush3.bf16.msra.mxu1 %v5466_v16  ;;  %v5484_v34 = vld [vmem:[#allocation6 + $0x38] sm:$0xff]   ;;  %v783_v35 = vrot.slane %v6149_v32, 4  ;;  %v784_v36 = vrot.slane %v6152_v33, 4  ;;  %v533_v38 = vshrl.u32 %v6149_v32, 16  ;;  %v536_v41 = vshll.u32 %v6149_v32, 16  ;;  %v6174_v47 = vld [vmem:[%s6146_s19 + $0x20] sm:$0xff]  }
  0xa0   : > { %4514 = vmatprep.subr.bf16.mxu1 %v5469_v19  ;;  %v541_v45 = vshrl.u32 %v6152_v33, 16  ;;  %v544_v46 = vshll.u32 %v6152_v33, 16  ;;  %v6182_v52 = vld [vmem:[%s6146_s19 + $0x28] sm:$0xff]   ;;  %v782_v58 = vsel %vm779_vm1, %v780_v42, %v781_v48  ;;  %v518_v60 = vrot.slane %v516_v50, 3  ;;  %v6196_v62 = vld [vmem:[%s6146_s19 + $0x30] sm:$0xff]   ;;  %v6199_v63 = vld [vmem:[%s6146_s19 + $0x38] sm:$0xff]  }
  0xa1   : > { %4421 = vmatpush3.bf16.msra.mxu0 %v5468_v18  ;;  %v6161_v39 = vsel %vm779_vm1, %v783_v35, %v784_v36  ;;  %v535_v44 = vrot.slane %v533_v38, 3  ;;  %v538_v49 = vrot.slane %v536_v41, 4  ;;  %v5490_v53 = vld [vmem:[#allocation6 + $0x148] sm:$0xff]   ;;  %v521_v61 = vrot.slane %v519_v51, 4  ;;  %v5493_v4 = vld [vmem:[#allocation6 + $0x150] sm:$0xff]   ;;  %v6218_v17 = vld [vmem:[%s6146_s19 + $0x40] sm:$0xff]  }
  0xa2   : > { %4422 = vmatprep.subr.bf16.mxu0 %v5471_v21  ;;  %1053 = vmatprep.mubr.bf16.mxu0 %v6161_v39  ;;  %v543_v54 = vrot.slane %v541_v45, 3  ;;  %v546_v55 = vrot.slane %v544_v46, 4  ;;  %v526_v1 = vrot.slane %v7567_v56, 3  ;;  %v529_v2 = vrot.slane %v7566_v57, 4  ;;  %v6221_v18 = vld [vmem:[%s6146_s19 + $0x48] sm:$0xff]  }
  0xa3   : > { %4515 = vmatpush3.bf16.msra.mxu1 %v5470_v20  ;;  %v539_v59 = vor.u32 %v538_v49, %v535_v44  ;;  %v522_v3 = vor.u32 %v521_v61, %v518_v60  ;;  %v786_v7 = vrot.slane %v6174_v47, 4  ;;  %v7565_v8 = vshrl.u32 %v6174_v47, 16  ;;  %7648 = vst [vmem:[#allocation19_spill] sm:$0xff] %v6221_v18  ;;  %v5506_v60 = vld [vmem:[#allocation6 + $0x88] sm:$0xff]  }
  0xa4   : > { %4516 = vmatprep.subr.bf16.mxu1 %v5473_v23  ;;  %v547_v0 = vor.u32 %v546_v55, %v543_v54  ;;  %v530_v6 = vor.u32 %v529_v2, %v526_v1  ;;  %v787_v9 = vrot.slane %v6182_v52, 4  ;;  %v7563_v10 = vshll.u32 %v6174_v47, 16  ;;  %v5496_v23 = vld [vmem:[#allocation6 + $0x158] sm:$0xff]  }
  0xa5   : > { %4423 = vmatpush3.bf16.msra.mxu0 %v5472_v22  ;;  %v7562_v11 = vshrl.u32 %v6182_v52, 16  ;;  %v7561_v12 = vshll.u32 %v6182_v52, 16  ;;  %v552_v14 = vrot.slane %v7565_v8, 3  ;;  %v789_v15 = vrot.slane %v6196_v62, 4 }
  0xa6   : > { %4424 = vmatprep.subr.bf16.mxu0 %v5475_v25  ;;  %v548_v5 = vsel %vm514_vm0, %v539_v59, %v547_v0  ;;  %v531_v13 = vsel %vm514_vm0, %v522_v3, %v530_v6  ;;  %v790_v16 = vrot.slane %v6199_v63, 4  ;;  %v6224_v19 = vsel %vm779_vm1, %v786_v7, %v787_v9  ;;  %v6278_v7 = vld [vmem:[%s6146_s19 + $0x60] sm:$0xff]   ;;  %v5509_v9 = vld [vmem:[#allocation6 + $0x90] sm:$0xff]  }
  0xa7   : > { %4517 = vmatpush3.bf16.msra.mxu1 %v5474_v24  ;;  %1423 = vmatprep.mubr.bf16.mxu1 %v548_v5  ;;  %v555_v20 = vrot.slane %v7563_v10, 4  ;;  %v560_v21 = vrot.slane %v7562_v11, 3  ;;  %v563_v22 = vrot.slane %v7561_v12, 4  ;;  %v7560_v25 = vshrl.u32 %v6196_v62, 16 }
  0xa8   : > { %4518 = vmatprep.subr.bf16.mxu1 %v5477_v27  ;;  %v6234_v24 = vsel %vm779_vm1, %v789_v15, %v790_v16  ;;  %v7557_v27 = vshrl.u32 %v6199_v63, 16  ;;  %v792_v48 = vrot.slane %v6218_v17, 4  ;;  %v7552_v49 = vshrl.u32 %v6218_v17, 16  ;;  %v6287_v15 = vld [vmem:[%s6146_s19 + $0x68] sm:$0xff]  }
  0xa9   : > { %4425 = vmatpush3.bf16.msra.mxu0 %v5476_v26  ;;  %v7559_v26 = vshll.u32 %v6196_v62, 16  ;;  %v569_v35 = vrot.slane %v7560_v25, 3  ;;  %v793_v55 = vrot.slane %v6221_v18, 4  ;;  %v7549_v59 = vshrl.u32 %v6221_v18, 16  ;;  %7650 = vst [vmem:[#allocation21_spill] sm:$0xff] %v6287_v15  ;;  %v5505_v16 = vld [vmem:[#allocation6 + $0x168] sm:$0xff]  }
  0xaa   : > { %4426 = vmatprep.subr.bf16.mxu0 %v5479_v29  ;;  %v556_v29 = vor.u32 %v555_v20, %v552_v14  ;;  %v577_v42 = vrot.slane %v7557_v27, 3  ;;  %v586_v0 = vrot.slane %v7552_v49, 3  ;;  %v7548_v1 = vshll.u32 %v6221_v18, 16  ;;  %v6368_v49 = vld [vmem:[%s6146_s19 + $0xa8] sm:$0xff]  }
  0xab   : > { %4519 = vmatpush3.bf16.msra.mxu1 %v5478_v28  ;;  %v5502_v28 = vld [vmem:[#allocation6 + $0x80] sm:$0xff]   ;;  %v572_v36 = vrot.slane %v7559_v26, 4  ;;  %v594_v3 = vrot.slane %v7549_v59, 3  ;;  %v7569_v11 = vshrl.u32 %v6368_v49, 16  ;;  %v7570_v10 = vshll.u32 %v6368_v49, 16 }
  0xac   : > { %4520 = vmatprep.subr.bf16.mxu1 %v5481_v31  ;;  %v7553_v31 = vshll.u32 %v6199_v63, 16  ;;  %v597_v6 = vrot.slane %v7548_v1, 4  ;;  %v7656_v33 = vshrl.u32 %v6164_v40, 16 }
  0xad   : > { %4427 = vmatpush3.bf16.msra.mxu0 %v5480_v30  ;;  %v564_v30 = vor.u32 %v563_v22, %v560_v21  ;;  %v573_v54 = vor.u32 %v572_v36, %v569_v35  ;;  %v6298_v35 = vld [vmem:[%s6146_s19 + $0x78] sm:$0xff]  }
  0xae   : > { %4934 = vmatprep.subr.bf16.mxu0 %v5487_v43  ;;  %v598_v21 = vor.u32 %v597_v6, %v594_v3  ;;  %7651 = vst [vmem:[#allocation22_spill] sm:$0xff] %v6298_v35  ;;  %v6321_v6 = vld [vmem:[%s6146_s19 + $0x80] sm:$0xff]  }
  0xaf   : > { %4521 = vmatpush3.bf16.msra.mxu1 %v5484_v34  ;;  %v6241_v34 = vld [vmem:[%s6146_s19 + $0x50] sm:$0xff]   ;;  %v6254_v44 = vsel %vm514_vm0, %v556_v29, %v564_v30  ;;  %7652 = vst [vmem:[#allocation23_spill] sm:$0xff] %v6321_v6  ;;  %v7582_v27 = vshll.u32 %v6321_v6, 16 }
  0xb0   : > { %1054 = vmatmul.mubr.bf16.vlgmr.msra.gmra.mrb[0].mxu0 %v782_v58  ;;  %4970 = vmatprep.subr.bf16.mxu1 %v5502_v28  ;;  %v7550_v58 = vshll.u32 %v6218_v17, 16  ;;  %v7544_v14 = vshrl.u32 %v6241_v34, 16  ;;  %v795_v29 = vrot.slane %v6241_v34, 4  ;;  %v6295_v30 = vld [vmem:[%s6146_s19 + $0x70] sm:$0xff]  }
  0xb1   : > { %4935 = vmatpush3.bf16.msra.mxu0 %v5487_v43  ;;  %1061 = vmatprep.mubr.bf16.mxu0 %v6224_v19  ;;  %v6251_v43 = vld [vmem:[%s6146_s19 + $0x58] sm:$0xff]   ;;  %v801_v59 = vrot.slane %v6295_v30, 4 }
  0xb2   : > { %4936 = vmatprep.subr.bf16.mxu0 %v5490_v53  ;;  %1424 = vmatmul.mubr.bf16.vlgmr.msra.gmra.mrb[0].mxu1 %v531_v13  ;;  %7649 = vst [vmem:[#allocation20_spill] sm:$0xff] %v6251_v43  ;;  %v589_v2 = vrot.slane %v7550_v58, 4  ;;  %v6282_v13 = vsel %vm779_vm1, %v792_v48, %v793_v55  ;;  %v7542_v22 = vshrl.u32 %v6251_v43, 16  ;;  %v796_v36 = vrot.slane %v6251_v43, 4  ;;  %v5510_v48 = vld [vmem:[#allocation6 + $0x170] sm:$0xff]   ;;  %v6354_v58 = vld [vmem:[%s6146_s19 + $0xa0] sm:$0xff]  }
  0xb3   : > { %1431 = vmatprep.mubr.bf16.mxu1 %v6254_v44  ;;  %4971 = vmatpush3.bf16.msra.mxu1 %v5502_v28  ;;  %v5511_v28 = vld [vmem:[#allocation6 + $0x98] sm:$0xff]   ;;  %v7571_v26 = vshrl.u32 %v6354_v58, 16  ;;  %v7568_v25 = vshll.u32 %v6354_v58, 16 }
  0xb4   : > { %4972 = vmatprep.subr.bf16.mxu1 %v5506_v60  ;;  %v590_v20 = vor.u32 %v589_v2, %v586_v0  ;;  %v7546_v0 = vshll.u32 %v6278_v7, 16  ;;  %v7547_v2 = vshrl.u32 %v6287_v15, 16  ;;  %v6318_v3 = vsel %vm779_vm1, %v795_v29, %v796_v36 }
  0xb5   : > { %4937 = vmatpush3.bf16.msra.mxu0 %v5490_v53  ;;  %v5501_v53 = vld [vmem:[#allocation6 + $0x160] sm:$0xff]   ;;  %v688_v8 = vrot.slane %v7571_v26, 3  ;;  %v691_v57 = vrot.slane %v7568_v25, 4  ;;  %v1625_v25 = vrot.slane %v533_v38, 4  ;;  %v1628_v38 = vrot.slane %v541_v45, 4 }
  0xb6   : > { %4938 = vmatprep.subr.bf16.mxu0 %v5493_v4  ;;  %v623_v36 = vrot.slane %v7546_v0, 4  ;;  %v1618_v45 = vrot.slane %v516_v50, 4 }
  0xb7   : > { %4973 = vmatpush3.bf16.msra.mxu1 %v5506_v60  ;;  %v5514_v60 = vld [vmem:[#allocation6 + $0xa0] sm:$0xff]  }
  0xb8   : > { %1062 = vmatmul.mubr.bf16.gmra.mrb[4].mxu0 %v6161_v39  ;;  %v580_v39 = vrot.slane %v7553_v31, 4  ;;  %4974 = vmatprep.subr.bf16.mxu1 %v5509_v9 }
  0xb9   : > { %1069 = vmatprep.mubr.bf16.mxu0 %v6234_v24  ;;  %4939 = vmatpush3.bf16.msra.mxu0 %v5493_v4 }
  0xba   : > { %4940 = vmatprep.subr.bf16.mxu0 %v5496_v23  ;;  %v581_v61 = vor.u32 %v580_v39, %v577_v42  ;;  %1432 = vmatmul.mubr.bf16.gmra.mrb[4].mxu1 %v548_v5  ;;  %v7543_v5 = vshll.u32 %v6241_v34, 16  ;;  %v603_v42 = vrot.slane %v7544_v14, 3  ;;  %v5521_v14 = vld [vmem:[#allocation6 + $0x1c0] sm:$0xff]  }
  0xbb   : > { %4975 = vmatpush3.bf16.msra.mxu1 %v5509_v9  ;;  %v5515_v9 = vld [vmem:[#allocation6 + $0x178] sm:$0xff]  }
  0xbc   : > { %v6273_v4 = vsel %vm514_vm0, %v573_v54, %v581_v61  ;;  %v606_v39 = vrot.slane %v7543_v5, 4  ;;  %v6306_v54 = vsel %vm514_vm0, %v590_v20, %v598_v21  ;;  %4976 = vmatprep.subr.bf16.mxu1 %v5511_v28  ;;  %v7545_v61 = vshrl.u32 %v6278_v7, 16  ;;  %v5516_v5 = vld [vmem:[#allocation6 + $0xa8] sm:$0xff]  }
  0xbd   : > { %4941 = vmatpush3.bf16.msra.mxu0 %v5496_v23  ;;  %1439 = vmatprep.mubr.bf16.mxu1 %v6273_v4  ;;  %v7541_v23 = vshll.u32 %v6251_v43, 16 }
  0xbe   : > { %4942 = vmatprep.subr.bf16.mxu0 %v5501_v53  ;;  %v607_v20 = vor.u32 %v606_v39, %v603_v42  ;;  %v620_v29 = vrot.slane %v7545_v61, 3  ;;  %v628_v42 = vrot.slane %v7547_v2, 3  ;;  %v7554_v39 = vshrl.u32 %v6295_v30, 16 }
  0xbf   : > { %v614_v55 = vrot.slane %v7541_v23, 4  ;;  %v7551_v23 = vshll.u32 %v6287_v15, 16  ;;  %4977 = vmatpush3.bf16.msra.mxu1 %v5511_v28  ;;  %v6335_v28 = vld [vmem:[%s6146_s19 + $0x88] sm:$0xff]   ;;  %v7558_v2 = vshll.u32 %v6298_v35, 16 }
  0xc0   : > { %1070 = vmatmul.mubr.bf16.gmra.mrb[8].mxu0 %v6224_v19  ;;  %4978 = vmatprep.subr.bf16.mxu1 %v5514_v60  ;;  %7653 = vst [vmem:[#allocation24_spill] sm:$0xff] %v6335_v28 }
  0xc1   : > { %1077 = vmatprep.mubr.bf16.mxu0 %v6282_v13  ;;  %4943 = vmatpush3.bf16.msra.mxu0 %v5501_v53  ;;  %v611_v53 = vrot.slane %v7542_v22, 3  ;;  %v798_v22 = vrot.slane %v6278_v7, 4  ;;  %v631_v0 = vrot.slane %v7551_v23, 4  ;;  %v6359_v23 = vrot.slane %v7554_v39, 3 }
  0xc2   : > { %4944 = vmatprep.subr.bf16.mxu0 %v5505_v16  ;;  %1440 = vmatmul.mubr.bf16.gmra.mrb[8].mxu1 %v6254_v44  ;;  %v810_v39 = vrot.slane %v6354_v58, 4 }
  0xc3   : > { %1447 = vmatprep.mubr.bf16.mxu1 %v6306_v54  ;;  %v615_v21 = vor.u32 %v614_v55, %v611_v53  ;;  %v7555_v53 = vshll.u32 %v6295_v30, 16  ;;  %v7556_v55 = vshrl.u32 %v6298_v35, 16  ;;  %4979 = vmatpush3.bf16.msra.mxu1 %v5514_v60  ;;  %v624_v60 = vor.u32 %v623_v36, %v620_v29  ;;  %v6374_v36 = vld [vmem:[%s6146_s19 + $0x90] sm:$0xff]   ;;  %v6398_v29 = vld [vmem:[#allocation6 + $0x200] sm:$0xff]  }
  0xc4   : > { %4980 = vmatprep.subr.bf16.mxu1 %v5516_v5  ;;  %v632_v31 = vor.u32 %v631_v0, %v628_v42  ;;  %7654 = vst [vmem:[#allocation25_spill] sm:$0xff] %v6374_v36  ;;  %v811_v0 = vrot.slane %v6368_v49, 4 }
  0xc5   : > { %4945 = vmatpush3.bf16.msra.mxu0 %v5505_v16  ;;  %v799_v16 = vrot.slane %v6287_v15, 4  ;;  %v6341_v61 = vsel %vm514_vm0, %v607_v20, %v615_v21  ;;  %v802_v20 = vrot.slane %v6298_v35, 4  ;;  %v7564_v21 = vshrl.u32 %v6321_v6, 16 }
  0xc6   : > { %4946 = vmatprep.subr.bf16.mxu0 %v5510_v48  ;;  %v6394_v12 = vsel %vm779_vm1, %v810_v39, %v811_v0  ;;  %v696_v39 = vrot.slane %v7569_v11, 3  ;;  %v699_v0 = vrot.slane %v7570_v10, 4  ;;  %v1626_v10 = vrot.slane %v536_v41, 5 }
  0xc7   : > { %v6348_v1 = vsel %vm779_vm1, %v798_v22, %v799_v16  ;;  %v6363_v22 = vrot.slane %v7555_v53, 4  ;;  %v645_v16 = vrot.slane %v7556_v55, 3  ;;  %4981 = vmatpush3.bf16.msra.mxu1 %v5516_v5  ;;  %v5520_v53 = vld [vmem:[#allocation6 + $0xb8] sm:$0xff]   ;;  %v805_v55 = vrot.slane %v6335_v28, 4 }
  0xc8   : > { %1078 = vmatmul.mubr.bf16.gmra.mrb[12].mxu0 %v6234_v24  ;;  %v6385_v42 = vrot.slane %v7564_v21, 3  ;;  %v7580_v5 = vshll.u32 %v6335_v28, 16  ;;  %v6401_v21 = vsel %vm514_vm0, %v624_v60, %v632_v31  ;;  %v6413_v56 = vsel %vm779_vm1, %v801_v59, %v802_v20 }
  0xc9   : > { %1085 = vmatprep.mubr.bf16.mxu0 %v6318_v3  ;;  %4947 = vmatpush3.bf16.msra.mxu0 %v5510_v48  ;;  %v5519_v48 = vld [vmem:[#allocation6 + $0xb0] sm:$0xff]   ;;  %v657_v31 = vrot.slane %v7582_v27, 4  ;;  %v692_v60 = vor.u32 %v691_v57, %v688_v8  ;;  %v700_v11 = vor.u32 %v699_v0, %v696_v39  ;;  %v641_v59 = vor.u32 %v6363_v22, %v6359_v23 }
  0xca   : > { %4948 = vmatprep.subr.bf16.mxu0 %v5515_v9  ;;  %1448 = vmatmul.mubr.bf16.gmra.mrb[12].mxu1 %v6273_v4  ;;  %v665_v26 = vrot.slane %v7580_v5, 4  ;;  %v7578_v57 = vshrl.u32 %v6374_v36, 16  ;;  %v1627_v32 = vor.u32 %v1626_v10, %v1625_v25  ;;  %v1629_v41 = vrot.slane %v544_v46, 5 }
  0xcb   : > { %1455 = vmatprep.mubr.bf16.mxu1 %v6341_v61  ;;  %4982 = vmatprep.subr.bf16.mxu1 %v5519_v48  ;;  %v6433_v8 = vsel %vm514_vm0, %v692_v60, %v700_v11  ;;  %v7574_v23 = vshll.u32 %v6374_v36, 16  ;;  %v1619_v11 = vrot.slane %v519_v51, 5  ;;  %v1621_v46 = vrot.slane %v7656_v33, 4 }
  0xcc   : > { %4983 = vmatpush3.bf16.msra.mxu1 %v5519_v48  ;;  %v1630_v22 = vor.u32 %v1629_v41, %v1628_v38  ;;  %v671_v25 = vrot.slane %v7578_v57, 3  ;;  %v7657_v39 = vshll.u32 %v6164_v40, 16  ;;  %v7658_v51 = vshrl.u32 %v6174_v47, 16 }
  0xcd   : > { %4949 = vmatpush3.bf16.msra.mxu0 %v5515_v9  ;;  %v648_v9 = vrot.slane %v7558_v2, 4  ;;  %v6389_v2 = vld [vmem:[%s6146_s19 + $0x98] sm:$0xff]   ;;  %4984 = vmatprep.subr.bf16.mxu1 %v5520_v53  ;;  %v1620_v50 = vor.u32 %v1619_v11, %v1618_v45  ;;  %v674_v37 = vrot.slane %v7574_v23, 4  ;;  %v658_v45 = vor.u32 %v657_v31, %v6385_v42 }
  0xce   : > { %4600 = vmatprep.subr.bf16.mxu0 %v5521_v14  ;;  %v7581_v14 = vshrl.u32 %v6335_v28, 16  ;;  %7655 = vst [vmem:[#allocation26_spill] sm:$0xff] %v6389_v2  ;;  %v7572_v10 = vshll.u32 %v6389_v2, 16  ;;  %v1622_v0 = vrot.slane %v7657_v39, 5  ;;  %v1632_v60 = vrot.slane %v7658_v51, 4 }
  0xcf   : > { %v649_v20 = vor.u32 %v648_v9, %v645_v16  ;;  %v6454_v9 = vsel %vm1617_vm2, %v1627_v32, %v1630_v22  ;;  %v7660_v32 = vshll.u32 %v6174_v47, 16  ;;  %v7661_v33 = vshrl.u32 %v6182_v52, 16 }
  0xd0   : > { %1086 = vmatmul.mubr.bf16.gmra.mrb[16].mxu0 %v6282_v13  ;;  %v662_v48 = vrot.slane %v7581_v14, 3  ;;  %4985 = vmatpush3.bf16.msra.mxu1 %v5520_v53  ;;  %v7573_v53 = vshrl.u32 %v6389_v2, 16  ;;  %v1623_v40 = vor.u32 %v1622_v0, %v1621_v46  ;;  %v682_v11 = vrot.slane %v7572_v10, 4 }
  0xd1   : > { %1093 = vmatprep.mubr.bf16.mxu0 %v6348_v1  ;;  %5006 = vmatprep.subr.bf16.mxu1 %v6398_v29  ;;  %v6446_v16 = vsel %vm514_vm0, %v641_v59, %v649_v20  ;;  %v7659_v59 = vrot.slane %v6321_v6, 4  ;;  %v1633_v41 = vrot.slane %v7660_v32, 5  ;;  %v1635_v39 = vrot.slane %v7661_v33, 4 }
  0xd2   : > { %1456 = vmatmul.mubr.bf16.gmra.mrb[16].mxu1 %v6306_v54  ;;  %v679_v38 = vrot.slane %v7573_v53, 3  ;;  %v666_v22 = vor.u32 %v665_v26, %v662_v48  ;;  %v6481_v46 = vsel %vm1617_vm2, %v1620_v50, %v1623_v40  ;;  %v7662_v51 = vshll.u32 %v6182_v52, 16  ;;  %v6500_v53 = vld [vmem:[%s6146_s19 + $0xb8] sm:$0xff]  }
  0xd3   : > { %1463 = vmatprep.mubr.bf16.mxu1 %v6401_v21  ;;  %v6467_v20 = vsel %vm779_vm1, %v7659_v59, %v805_v55  ;;  %v807_v55 = vrot.slane %v6374_v36, 4  ;;  %v1634_v0 = vor.u32 %v1633_v41, %v1632_v60  ;;  %v808_v26 = vrot.slane %v6389_v2, 4  ;;  %v6495_v60 = vld [vmem:[%s6146_s19 + $0xb0] sm:$0xff]  }
  0xd4   : > { %v1636_v42 = vrot.slane %v7662_v51, 5  ;;  %v7663_v31 = vshrl.u32 %v6196_v62, 16  ;;  %v7664_v32 = vshll.u32 %v6196_v62, 16  ;;  %v6492_v10 = vsel %vm514_vm0, %v658_v45, %v666_v22 }
  0xd5   : > { %v675_v50 = vor.u32 %v674_v37, %v671_v25  ;;  %v683_v40 = vor.u32 %v682_v11, %v679_v38  ;;  %v7665_v41 = vshrl.u32 %v6199_v63, 16  ;;  %v6509_v45 = vsel %vm779_vm1, %v807_v55, %v808_v26 }
  0xd6   : > { %v1639_v48 = vrot.slane %v7663_v31, 4  ;;  %v1637_v59 = vor.u32 %v1636_v42, %v1635_v39  ;;  %v1640_v33 = vrot.slane %v7664_v32, 5  ;;  %v7666_v39 = vshll.u32 %v6199_v63, 16 }
  0xd7   : > { %v1642_v51 = vrot.slane %v7665_v41, 4  ;;  %v813_v25 = vrot.slane %v6495_v60, 4  ;;  %v7576_v37 = vshrl.u32 %v6495_v60, 16  ;;  %v7575_v38 = vshll.u32 %v6495_v60, 16 }
  0xd8   : > { %1094 = vmatmul.mubr.bf16.gmra.mrb[20].mxu0 %v6318_v3  ;;  %v6503_v23 = vsel %vm1617_vm2, %v1634_v0, %v1637_v59  ;;  %v1641_v31 = vor.u32 %v1640_v33, %v1639_v48  ;;  %v1643_v42 = vrot.slane %v7666_v39, 5  ;;  %v814_v22 = vrot.slane %v6500_v53, 4 }
  0xd9   : > { %1101 = vmatprep.mubr.bf16.mxu0 %v6413_v56  ;;  %v7577_v11 = vshrl.u32 %v6500_v53, 16  ;;  %v7579_v0 = vshll.u32 %v6500_v53, 16  ;;  %v6519_v59 = vsel %vm514_vm0, %v675_v50, %v683_v40  ;;  %v705_v55 = vrot.slane %v7576_v37, 3 }
  0xda   : > { %1464 = vmatmul.mubr.bf16.gmra.mrb[20].mxu1 %v6341_v61  ;;  %v1644_v48 = vor.u32 %v1643_v42, %v1642_v51  ;;  %v708_v26 = vrot.slane %v7575_v38, 4  ;;  %v6527_v32 = vsel %vm779_vm1, %v813_v25, %v814_v22  ;;  %v7667_v51 = vshrl.u32 %v6218_v17, 16 }
  0xdb   : > { %1471 = vmatprep.mubr.bf16.mxu1 %v6446_v16  ;;  %v713_v33 = vrot.slane %v7577_v11, 3  ;;  %v716_v41 = vrot.slane %v7579_v0, 4  ;;  %v7668_v42 = vshll.u32 %v6218_v17, 16  ;;  %v7669_v25 = vshrl.u32 %v6221_v18, 16 }
  0xdc   : > { %v6534_v50 = vsel %vm1617_vm2, %v1641_v31, %v1644_v48  ;;  %v709_v40 = vor.u32 %v708_v26, %v705_v55  ;;  %v1646_v39 = vrot.slane %v7667_v51, 4  ;;  %v7670_v11 = vshll.u32 %v6221_v18, 16 }
  0xdd   : > { %v1647_v38 = vrot.slane %v7668_v42, 5  ;;  %v1649_v22 = vrot.slane %v7669_v25, 4  ;;  %v717_v37 = vor.u32 %v716_v41, %v713_v33  ;;  %v7671_v0 = vshrl.u32 %v6241_v34, 16 }
  0xde   : > { %v1650_v57 = vrot.slane %v7670_v11, 5  ;;  %v7672_v48 = vshll.u32 %v6241_v34, 16  ;;  %v7673_v26 = vshrl.u32 %v6251_v43, 16  ;;  %v7674_v14 = vshll.u32 %v6251_v43, 16 }
  0xdf   : > { %v1653_v31 = vrot.slane %v7671_v0, 4  ;;  %v1648_v55 = vor.u32 %v1647_v38, %v1646_v39  ;;  %v7675_v27 = vshrl.u32 %v6278_v7, 16  ;;  %v6556_v33 = vsel %vm514_vm0, %v709_v40, %v717_v37 }
  0xe0   : > { %1102 = vmatmul.mubr.bf16.gmra.mrb[24].mxu0 %v6348_v1  ;;  %v1654_v5 = vrot.slane %v7672_v48, 5  ;;  %v1656_v51 = vrot.slane %v7673_v26, 4  ;;  %v1657_v42 = vrot.slane %v7674_v14, 5  ;;  %v1651_v11 = vor.u32 %v1650_v57, %v1649_v22 }
  0xe1   : > { %1109 = vmatprep.mubr.bf16.mxu0 %v6467_v20  ;;  %v1660_v25 = vrot.slane %v7675_v27, 4  ;;  %v7676_v0 = vshll.u32 %v6278_v7, 16  ;;  %v7677_v39 = vshrl.u32 %v6287_v15, 16  ;;  %v7678_v26 = vshll.u32 %v6287_v15, 16 }
  0xe2   : > { %1472 = vmatmul.mubr.bf16.gmra.mrb[24].mxu1 %v6401_v21  ;;  %v1655_v41 = vor.u32 %v1654_v5, %v1653_v31  ;;  %v1658_v38 = vor.u32 %v1657_v42, %v1656_v51  ;;  %v7679_v43 = vshrl.u32 %v6295_v30, 16  ;;  %v6569_v57 = vsel %vm1617_vm2, %v1648_v55, %v1651_v11 }
  0xe3   : > { %1479 = vmatprep.mubr.bf16.mxu1 %v6492_v10  ;;  %v1661_v18 = vrot.slane %v7676_v0, 5  ;;  %v1663_v48 = vrot.slane %v7677_v39, 4  ;;  %v1664_v14 = vrot.slane %v7678_v26, 5  ;;  %v7680_v37 = vshll.u32 %v6295_v30, 16 }
  0xe4   : > { %v1667_v27 = vrot.slane %v7679_v43, 4  ;;  %v7681_v22 = vshrl.u32 %v6298_v35, 16  ;;  %v6576_v51 = vsel %vm1617_vm2, %v1655_v41, %v1658_v38  ;;  %v7682_v0 = vshll.u32 %v6298_v35, 16 }
  0xe5   : > { %v1662_v5 = vor.u32 %v1661_v18, %v1660_v25  ;;  %v1668_v40 = vrot.slane %v7680_v37, 5  ;;  %v1665_v42 = vor.u32 %v1664_v14, %v1663_v48  ;;  %v7683_v43 = vshrl.u32 %v6321_v6, 16 }
  0xe6   : > { %v1670_v31 = vrot.slane %v7681_v22, 4  ;;  %v1671_v39 = vrot.slane %v7682_v0, 5  ;;  %v7684_v18 = vshll.u32 %v6321_v6, 16  ;;  %v7685_v11 = vshrl.u32 %v6335_v28, 16 }
  0xe7   : > { %v1674_v26 = vrot.slane %v7683_v43, 4  ;;  %v1669_v55 = vor.u32 %v1668_v40, %v1667_v27  ;;  %v7686_v22 = vshll.u32 %v6335_v28, 16  ;;  %v6591_v38 = vsel %vm1617_vm2, %v1662_v5, %v1665_v42 }
  0xe8   : > { %1110 = vmatmul.mubr.bf16.gmra.mrb[28].mxu0 %v6413_v56  ;;  %v1675_v25 = vrot.slane %v7684_v18, 5  ;;  %v1677_v37 = vrot.slane %v7685_v11, 4  ;;  %v1672_v48 = vor.u32 %v1671_v39, %v1670_v31  ;;  %v7687_v14 = vshrl.u32 %v6374_v36, 16 }
  0xe9   : > { %1117 = vmatprep.mubr.bf16.mxu0 %v6509_v45  ;;  %v1678_v41 = vrot.slane %v7686_v22, 5  ;;  %v7688_v27 = vshll.u32 %v6374_v36, 16  ;;  %v7689_v6 = vshrl.u32 %v6389_v2, 16  ;;  %v7690_v28 = vshll.u32 %v6389_v2, 16 }
  0xea   : > { %1480 = vmatmul.mubr.bf16.gmra.mrb[28].mxu1 %v6446_v16  ;;  %v1681_v0 = vrot.slane %v7687_v14, 4  ;;  %v1676_v43 = vor.u32 %v1675_v25, %v1674_v26  ;;  %v6602_v15 = vsel %vm1617_vm2, %v1669_v55, %v1672_v48  ;;  %v7691_v31 = vshrl.u32 %v6354_v58, 16 }
  0xeb   : > { %1487 = vmatprep.mubr.bf16.mxu1 %v6519_v59  ;;  %v1682_v40 = vrot.slane %v7688_v27, 5  ;;  %v1679_v18 = vor.u32 %v1678_v41, %v1677_v37  ;;  %v1684_v11 = vrot.slane %v7689_v6, 4  ;;  %v1685_v22 = vrot.slane %v7690_v28, 5 }
  0xec   : > { %v1688_v42 = vrot.slane %v7691_v31, 4  ;;  %v7692_v39 = vshll.u32 %v6354_v58, 16  ;;  %v7693_v25 = vshrl.u32 %v6368_v49, 16  ;;  %v7694_v37 = vshll.u32 %v6368_v49, 16  ;;  %v5522_v49 = vld [vmem:[#allocation6 + $0x180] sm:$0xff]   ;;  %v5546_v31 = vld [vmem:[#allocation6 + $0x238] sm:$0xff]  }
  0xed   : > { %v1683_v5 = vor.u32 %v1682_v40, %v1681_v0  ;;  %v6609_v27 = vsel %vm1617_vm2, %v1676_v43, %v1679_v18  ;;  %v1686_v26 = vor.u32 %v1685_v22, %v1684_v11  ;;  %v5523_v0 = vld [vmem:[#allocation6 + $0x1c8] sm:$0xff]   ;;  %v5525_v43 = vld [vmem:[#allocation6 + $0x1d0] sm:$0xff]  }
  0xee   : > { %v1689_v14 = vrot.slane %v7692_v39, 5  ;;  %v1691_v6 = vrot.slane %v7693_v25, 4  ;;  %v1692_v28 = vrot.slane %v7694_v37, 5  ;;  %v5524_v40 = vld [vmem:[#allocation6 + $0x188] sm:$0xff]   ;;  %v5527_v11 = vld [vmem:[#allocation6 + $0x190] sm:$0xff]  }
  0xef   : > { %v6618_v41 = vsel %vm1617_vm2, %v1683_v5, %v1686_v26  ;;  %v5528_v18 = vld [vmem:[#allocation6 + $0x208] sm:$0xff]   ;;  %v5538_v22 = vld [vmem:[#allocation6 + $0x1f0] sm:$0xff]   ;;  %v5544_v5 = vld [vmem:[#allocation6 + $0x1f8] sm:$0xff]  }
  0xf0   : > { %1118 = vmatmul.mubr.bf16.gmra.mrb[32].mxu0 %v6467_v20  ;;  %v1690_v55 = vor.u32 %v1689_v14, %v1688_v42  ;;  %v1693_v58 = vor.u32 %v1692_v28, %v1691_v6 }
  0xf1   : > { %1125 = vmatprep.mubr.bf16.mxu0 %v6394_v12 }
  0xf2   : > { %1488 = vmatmul.mubr.bf16.gmra.mrb[32].mxu1 %v6492_v10  ;;  %v6622_v48 = vsel %vm1617_vm2, %v1690_v55, %v1693_v58 }
  0xf3   : > { %1495 = vmatprep.mubr.bf16.mxu1 %v6433_v8 }
  0xf8   : > { %1126 = vmatmul.mubr.bf16.gmra.mrb[36].mxu0 %v6509_v45 }
  0xf9   : > { %4950 = vmatprep.mubr.bf16.mxu0 %v6224_v19  ;;  %v5529_v19 = vld [vmem:[#allocation6 + $0x1d8] sm:$0xff]  }
  0xfa   : > { %1496 = vmatmul.mubr.bf16.gmra.mrb[36].mxu1 %v6519_v59 }
  0xfb   : > { %4986 = vmatprep.mubr.bf16.mxu1 %v6254_v44  ;;  %v5530_v44 = vld [vmem:[#allocation6 + $0x198] sm:$0xff]  }
 0x100   : > { %4951 = vmatmul.mubr.bf16.vlgmr.msra.gmra.mrb[40].mxu0 %v6234_v24  ;;  %v5531_v24 = vld [vmem:[#allocation6 + $0x210] sm:$0xff]  }
 0x101   : > { %4601 = vmatpush3.bf16.msra.mxu0 %v5522_v49  ;;  %4954 = vmatprep.mubr.bf16.mxu0 %v6282_v13  ;;  %v5532_v13 = vld [vmem:[#allocation6 + $0x1e0] sm:$0xff]  }
 0x102   : > { %4602 = vmatprep.subr.bf16.mxu0 %v5523_v0  ;;  %4987 = vmatmul.mubr.bf16.vlgmr.msra.gmra.mrb[40].mxu1 %v6273_v4  ;;  %v5534_v4 = vld [vmem:[#allocation6 + $0x218] sm:$0xff]  }
 0x103   : > { %4990 = vmatprep.mubr.bf16.mxu1 %v6306_v54  ;;  %5007 = vmatpush3.bf16.msra.mxu1 %v6398_v29  ;;  %v5533_v54 = vld [vmem:[#allocation6 + $0x1a0] sm:$0xff]   ;;  %v5535_v29 = vld [vmem:[#allocation6 + $0x1e8] sm:$0xff]  }
 0x104   : > { %5008 = vmatprep.subr.bf16.mxu1 %v5528_v18 }
 0x105   : > { %4603 = vmatpush3.bf16.msra.mxu0 %v5524_v40 }
 0x106   : > { %4604 = vmatprep.subr.bf16.mxu0 %v5525_v43 }
 0x107   : > { %5009 = vmatpush3.bf16.msra.mxu1 %v5528_v18 }
 0x108   : > { %4955 = vmatmul.mubr.bf16.gmra.mrb[44].mxu0 %v6318_v3  ;;  %5010 = vmatprep.subr.bf16.mxu1 %v5531_v24  ;;  %v5537_v3 = vld [vmem:[#allocation6 + $0x220] sm:$0xff]  }
 0x109   : > { %4605 = vmatpush3.bf16.msra.mxu0 %v5527_v11  ;;  %4958 = vmatprep.mubr.bf16.mxu0 %v6348_v1  ;;  %v5536_v1 = vld [vmem:[#allocation6 + $0x1a8] sm:$0xff]  }
 0x10a   : > { %4606 = vmatprep.subr.bf16.mxu0 %v5529_v19  ;;  %4991 = vmatmul.mubr.bf16.gmra.mrb[44].mxu1 %v6341_v61  ;;  %v5539_v61 = vld [vmem:[#allocation6 + $0x228] sm:$0xff]  }
 0x10b   : > { %4994 = vmatprep.mubr.bf16.mxu1 %v6401_v21  ;;  %5011 = vmatpush3.bf16.msra.mxu1 %v5531_v24  ;;  %v5540_v21 = vld [vmem:[#allocation6 + $0x1b0] sm:$0xff]  }
 0x10c   : > { %5012 = vmatprep.subr.bf16.mxu1 %v5534_v4 }
 0x10d   : > { %4607 = vmatpush3.bf16.msra.mxu0 %v5530_v44 }
 0x10e   : > { %4608 = vmatprep.subr.bf16.mxu0 %v5532_v13 }
 0x10f   : > { %5013 = vmatpush3.bf16.msra.mxu1 %v5534_v4 }
 0x110   : > { %4959 = vmatmul.mubr.bf16.gmra.mrb[48].mxu0 %v6413_v56  ;;  %5014 = vmatprep.subr.bf16.mxu1 %v5537_v3  ;;  %v5543_v56 = vld [vmem:[#allocation6 + $0x230] sm:$0xff]  }
 0x111   : > { %4609 = vmatpush3.bf16.msra.mxu0 %v5533_v54  ;;  %4962 = vmatprep.mubr.bf16.mxu0 %v6467_v20  ;;  %v5545_v20 = vld [vmem:[#allocation6 + $0x1b8] sm:$0xff]  }
 0x112   : > { %4610 = vmatprep.subr.bf16.mxu0 %v5535_v29  ;;  %4995 = vmatmul.mubr.bf16.gmra.mrb[48].mxu1 %v6446_v16  ;;  %v7696_v16 = vshll.u32 %v6495_v60, 16 }
 0x113   : > { %4998 = vmatprep.mubr.bf16.mxu1 %v6492_v10  ;;  %5015 = vmatpush3.bf16.msra.mxu1 %v5537_v3 }
 0x114   : > { %5016 = vmatprep.subr.bf16.mxu1 %v5539_v61  ;;  %v1696_v10 = vrot.slane %v7696_v16, 5 }
 0x115   : > { %4611 = vmatpush3.bf16.msra.mxu0 %v5536_v1 }
 0x116   : > { %4612 = vmatprep.subr.bf16.mxu0 %v5538_v22 }
 0x117   : > { %5017 = vmatpush3.bf16.msra.mxu1 %v5539_v61 }
 0x118   : > { %4963 = vmatmul.mubr.bf16.gmra.mrb[52].mxu0 %v6509_v45  ;;  %5018 = vmatprep.subr.bf16.mxu1 %v5543_v56 }
 0x119   : > { %4966 = vmatprep.mubr.bf16.mxu0 %v6394_v12  ;;  %4613 = vmatpush3.bf16.msra.mxu0 %v5540_v21  ;;  %v7695_v12 = vshrl.u32 %v6495_v60, 16 }
 0x11a   : > { %4614 = vmatprep.subr.bf16.mxu0 %v5544_v5  ;;  %4999 = vmatmul.mubr.bf16.gmra.mrb[52].mxu1 %v6519_v59 }
 0x11b   : > { %5002 = vmatprep.mubr.bf16.mxu1 %v6433_v8  ;;  %5019 = vmatpush3.bf16.msra.mxu1 %v5543_v56  ;;  %v1695_v8 = vrot.slane %v7695_v12, 4 }
 0x11c   : > { %5020 = vmatprep.subr.bf16.mxu1 %v5546_v31 }
 0x11d   : > { %4615 = vmatpush3.bf16.msra.mxu0 %v5545_v20  ;;  %v1697_v59 = vor.u32 %v1696_v10, %v1695_v8 }
 0x11f   : > { %5021 = vmatpush3.bf16.msra.mxu1 %v5546_v31 }
 0x120   : > { %4967 = vmatmul.mubr.bf16.gmra.mrb[56].mxu0 %v6527_v32 }
 0x121   : > { %1939 = vmatprep.mubr.bf16.mxu0 %v6454_v9 }
 0x122   : > { %5003 = vmatmul.mubr.bf16.gmra.mrb[56].mxu1 %v6556_v33 }
 0x123   : > { %5022 = vmatprep.mubr.bf16.mxu1 %v6503_v23 }
 0x128   : > { %1940 = vmatmul.mubr.bf16.vlgmr.msra.gmra.mrb[60].mxu0 %v6481_v46 }
 0x129   : > { %1947 = vmatprep.mubr.bf16.mxu0 %v6503_v23 }
 0x12a   : > { %5023 = vmatmul.mubr.bf16.vlgmr.msra.gmra.mrb[40].mxu1 %v6534_v50 }
 0x12b   : > { %5026 = vmatprep.mubr.bf16.mxu1 %v6569_v57 }
 0x130   : > { %1948 = vmatmul.mubr.bf16.gmra.mrb[64].mxu0 %v6454_v9  ;;  %v7697_v9 = vshrl.u32 %v6500_v53, 16 }
 0x131   : > { %1955 = vmatprep.mubr.bf16.mxu0 %v6534_v50 }
 0x132   : > { %5027 = vmatmul.mubr.bf16.gmra.mrb[44].mxu1 %v6576_v51  ;;  %v1698_v46 = vrot.slane %v7697_v9, 4 }
 0x133   : > { %5030 = vmatprep.mubr.bf16.mxu1 %v6591_v38 }
 0x138   : > { %1956 = vmatmul.mubr.bf16.gmra.mrb[68].mxu0 %v6503_v23  ;;  %v7698_v23 = vshll.u32 %v6500_v53, 16 }
 0x139   : > { %1963 = vmatprep.mubr.bf16.mxu0 %v6569_v57 }
 0x13a   : > { %5031 = vmatmul.mubr.bf16.gmra.mrb[48].mxu1 %v6602_v15  ;;  %v1699_v45 = vrot.slane %v7698_v23, 5 }
 0x13b   : > { %5034 = vmatprep.mubr.bf16.mxu1 %v6609_v27 }
 0x13c   : > { %v1700_v32 = vor.u32 %v1699_v45, %v1698_v46 }
 0x140   : > { %1964 = vmatmul.mubr.bf16.gmra.mrb[72].mxu0 %v6534_v50  ;;  %v1701_v50 = vsel %vm1617_vm2, %v1697_v59, %v1700_v32 }
 0x141   : > { %1971 = vmatprep.mubr.bf16.mxu0 %v6576_v51 }
 0x142   : > { %5035 = vmatmul.mubr.bf16.gmra.mrb[52].mxu1 %v6618_v41 }
 0x143   : > { %5038 = vmatprep.mubr.bf16.mxu1 %v6622_v48 }
 0x148   : > { %1972 = vmatmul.mubr.bf16.gmra.mrb[76].mxu0 %v6569_v57 }
 0x149   : > { %1979 = vmatprep.mubr.bf16.mxu0 %v6591_v38 }
 0x14a   : > { %5039 = vmatmul.mubr.bf16.gmra.mrb[56].mxu1 %v1701_v50 }
 0x150   : > { %1980 = vmatmul.mubr.bf16.gmra.mrb[80].mxu0 %v6576_v51 }
 0x151   : > { %1987 = vmatprep.mubr.bf16.mxu0 %v6602_v15 }
 0x158   : > { %1988 = vmatmul.mubr.bf16.gmra.mrb[84].mxu0 %v6591_v38 }
 0x159   : > { %1995 = vmatprep.mubr.bf16.mxu0 %v6609_v27 }
 0x160   : > { %1996 = vmatmul.mubr.bf16.gmra.mrb[88].mxu0 %v6602_v15 }
 0x161   : > { %2003 = vmatprep.mubr.bf16.mxu0 %v6618_v41 }
 0x168   : > { %2004 = vmatmul.mubr.bf16.gmra.mrb[92].mxu0 %v6609_v27 }
 0x169   : > { %2011 = vmatprep.mubr.bf16.mxu0 %v6622_v48 }
 0x170   : > { %2012 = vmatmul.mubr.bf16.gmra.mrb[96].mxu0 %v6618_v41 }
 0x183   : > { %v4428_v53 = vpop.f32.mrb[0].mxu0 }
 0x184   : > { %v4429_v60 = vpop.f32.mrb[1].mxu0 }
 0x185   : > { %v6684_v33 = vadd.f32 %v4429_v60, %v4428_v53  ;;  %v4431_v57 = vpop.f32.mrb[2].mxu0  ;;  %v4522_v38 = vpop.f32.mrb[0].mxu1 }
 0x186   : > { %v4432_v51 = vpop.f32.mrb[3].mxu0  ;;  %v4523_v39 = vpop.f32.mrb[1].mxu1 }
 0x187   : > { %v6686_v42 = vadd.f32 %v4432_v51, %v4431_v57  ;;  %v6688_v14 = vadd.f32 %v4523_v39, %v4522_v38  ;;  %v4525_v15 = vpop.f32.mrb[2].mxu1 }
 0x188   : > { %v4526_v25 = vpop.f32.mrb[3].mxu1 }
 0x189   : > { %v6690_v6 = vadd.f32 %v4526_v25, %v4525_v15 }
 0x18b   : > { %v4434_v26 = vpop.f32.mrb[4].mxu0 }
 0x18c   : > { %v4435_v27 = vpop.f32.mrb[5].mxu0 }
 0x18d   : > { %v6692_v37 = vadd.f32 %v4435_v27, %v4434_v26  ;;  %v4437_v28 = vpop.f32.mrb[6].mxu0  ;;  %v4528_v58 = vpop.f32.mrb[4].mxu1 }
 0x18e   : > { %v4438_v55 = vpop.f32.mrb[7].mxu0  ;;  %v4529_v48 = vpop.f32.mrb[5].mxu1 }
 0x18f   : > { %v6694_v41 = vadd.f32 %v4438_v55, %v4437_v28  ;;  %v6696_v49 = vadd.f32 %v4529_v48, %v4528_v58  ;;  %v4531_v0 = vpop.f32.mrb[6].mxu1 }
 0x190   : > { %v4532_v43 = vpop.f32.mrb[7].mxu1 }
 0x191   : > { %v6698_v11 = vadd.f32 %v4532_v43, %v4531_v0 }
 0x193   : > { %v4440_v40 = vpop.f32.mrb[8].mxu0 }
 0x194   : > { %v4441_v18 = vpop.f32.mrb[9].mxu0 }
 0x195   : > { %v6700_v19 = vadd.f32 %v4441_v18, %v4440_v40  ;;  %v4443_v24 = vpop.f32.mrb[10].mxu0  ;;  %v4534_v4 = vpop.f32.mrb[8].mxu1 }
 0x196   : > { %v4444_v44 = vpop.f32.mrb[11].mxu0  ;;  %v4535_v54 = vpop.f32.mrb[9].mxu1 }
 0x197   : > { %v6702_v13 = vadd.f32 %v4444_v44, %v4443_v24  ;;  %v6704_v29 = vadd.f32 %v4535_v54, %v4534_v4  ;;  %v4537_v3 = vpop.f32.mrb[10].mxu1 }
 0x198   : > { %v4538_v22 = vpop.f32.mrb[11].mxu1 }
 0x199   : > { %v6706_v21 = vadd.f32 %v4538_v22, %v4537_v3 }
 0x19b   : > { %v4446_v1 = vpop.f32.mrb[12].mxu0 }
 0x19c   : > { %v4447_v61 = vpop.f32.mrb[13].mxu0 }
 0x19d   : > { %v6708_v5 = vadd.f32 %v4447_v61, %v4446_v1  ;;  %v4449_v56 = vpop.f32.mrb[14].mxu0  ;;  %v4540_v12 = vpop.f32.mrb[12].mxu1 }
 0x19e   : > { %v4450_v20 = vpop.f32.mrb[15].mxu0  ;;  %v4541_v8 = vpop.f32.mrb[13].mxu1 }
 0x19f   : > { %v6710_v31 = vadd.f32 %v4450_v20, %v4449_v56  ;;  %v6712_v16 = vadd.f32 %v4541_v8, %v4540_v12  ;;  %v4543_v10 = vpop.f32.mrb[14].mxu1 }
 0x1a0   : > { %v4544_v46 = vpop.f32.mrb[15].mxu1 }
 0x1a1   : > { %v6714_v45 = vadd.f32 %v4544_v46, %v4543_v10 }
 0x1a3   : > { %v4452_v9 = vpop.f32.mrb[16].mxu0 }
 0x1a4   : > { %v4453_v23 = vpop.f32.mrb[17].mxu0 }
 0x1a5   : > { %v6716_v59 = vadd.f32 %v4453_v23, %v4452_v9  ;;  %v4455_v32 = vpop.f32.mrb[18].mxu0  ;;  %v4546_v60 = vpop.f32.mrb[16].mxu1 }
 0x1a6   : > { %v4456_v50 = vpop.f32.mrb[19].mxu0  ;;  %v4547_v57 = vpop.f32.mrb[17].mxu1 }
 0x1a7   : > { %v6718_v53 = vadd.f32 %v4456_v50, %v4455_v32  ;;  %v6720_v51 = vadd.f32 %v4547_v57, %v4546_v60  ;;  %v4549_v38 = vpop.f32.mrb[18].mxu1 }
 0x1a8   : > { %v4550_v15 = vpop.f32.mrb[19].mxu1 }
 0x1a9   : > { %v6722_v25 = vadd.f32 %v4550_v15, %v4549_v38 }
 0x1ab   : > { %v4458_v39 = vpop.f32.mrb[20].mxu0 }
 0x1ac   : > { %v4459_v26 = vpop.f32.mrb[21].mxu0 }
 0x1ad   : > { %v6724_v27 = vadd.f32 %v4459_v26, %v4458_v39  ;;  %v4461_v28 = vpop.f32.mrb[22].mxu0  ;;  %v4552_v48 = vpop.f32.mrb[20].mxu1 }
 0x1ae   : > { %v4462_v55 = vpop.f32.mrb[23].mxu0  ;;  %v4553_v0 = vpop.f32.mrb[21].mxu1 }
 0x1af   : > { %v6726_v58 = vadd.f32 %v4462_v55, %v4461_v28  ;;  %v6728_v40 = vadd.f32 %v4553_v0, %v4552_v48  ;;  %v4555_v43 = vpop.f32.mrb[22].mxu1 }
 0x1b0   : > { %v4556_v24 = vpop.f32.mrb[23].mxu1 }
 0x1b1   : > { %v6730_v4 = vadd.f32 %v4556_v24, %v4555_v43 }
 0x1b3   : > { %v4464_v18 = vpop.f32.mrb[24].mxu0 }
 0x1b4   : > { %v4465_v44 = vpop.f32.mrb[25].mxu0 }
 0x1b5   : > { %v6732_v54 = vadd.f32 %v4465_v44, %v4464_v18  ;;  %v4467_v3 = vpop.f32.mrb[26].mxu0  ;;  %v4558_v61 = vpop.f32.mrb[24].mxu1 }
 0x1b6   : > { %v4468_v1 = vpop.f32.mrb[27].mxu0  ;;  %v4559_v56 = vpop.f32.mrb[25].mxu1 }
 0x1b7   : > { %v6734_v22 = vadd.f32 %v4468_v1, %v4467_v3  ;;  %v6736_v20 = vadd.f32 %v4559_v56, %v4558_v61  ;;  %v4561_v12 = vpop.f32.mrb[26].mxu1 }
 0x1b8   : > { %v4562_v10 = vpop.f32.mrb[27].mxu1 }
 0x1b9   : > { %v6738_v46 = vadd.f32 %v4562_v10, %v4561_v12 }
 0x1bb   : > { %v4470_v8 = vpop.f32.mrb[28].mxu0 }
 0x1bc   : > { %v4471_v9 = vpop.f32.mrb[29].mxu0 }
 0x1bd   : > { %v6740_v23 = vadd.f32 %v4471_v9, %v4470_v8  ;;  %v4473_v32 = vpop.f32.mrb[30].mxu0  ;;  %v4564_v57 = vpop.f32.mrb[28].mxu1 }
 0x1be   : > { %v4474_v50 = vpop.f32.mrb[31].mxu0  ;;  %v4565_v38 = vpop.f32.mrb[29].mxu1 }
 0x1bf   : > { %v6742_v60 = vadd.f32 %v4474_v50, %v4473_v32  ;;  %v6744_v39 = vadd.f32 %v4565_v38, %v4564_v57  ;;  %v4567_v15 = vpop.f32.mrb[30].mxu1 }
 0x1c0   : > { %v4568_v28 = vpop.f32.mrb[31].mxu1 }
 0x1c1   : > { %v6746_v48 = vadd.f32 %v4568_v28, %v4567_v15 }
 0x1c3   : > { %v4476_v26 = vpop.f32.mrb[32].mxu0 }
 0x1c4   : > { %v4477_v55 = vpop.f32.mrb[33].mxu0 }
 0x1c5   : > { %v6748_v0 = vadd.f32 %v4477_v55, %v4476_v26  ;;  %v4479_v43 = vpop.f32.mrb[34].mxu0  ;;  %v4570_v44 = vpop.f32.mrb[32].mxu1 }
 0x1c6   : > { %v4480_v18 = vpop.f32.mrb[35].mxu0  ;;  %v4571_v3 = vpop.f32.mrb[33].mxu1 }
 0x1c7   : > { %v6750_v24 = vadd.f32 %v4480_v18, %v4479_v43  ;;  %v6752_v1 = vadd.f32 %v4571_v3, %v4570_v44  ;;  %v4573_v61 = vpop.f32.mrb[34].mxu1 }
 0x1c8   : > { %v4574_v12 = vpop.f32.mrb[35].mxu1 }
 0x1c9   : > { %v6754_v10 = vadd.f32 %v4574_v12, %v4573_v61 }
 0x1cb   : > { %v4482_v56 = vpop.f32.mrb[36].mxu0 }
 0x1cc   : > { %v4483_v8 = vpop.f32.mrb[37].mxu0 }
 0x1cd   : > { %v4484_v9 = vadd.f32 %v4483_v8, %v4482_v56  ;;  %v4485_v32 = vpop.f32.mrb[38].mxu0  ;;  %v4576_v38 = vpop.f32.mrb[36].mxu1 }
 0x1ce   : > { %v4486_v50 = vpop.f32.mrb[39].mxu0  ;;  %v4577_v15 = vpop.f32.mrb[37].mxu1 }
 0x1cf   : > { %v4487_v57 = vadd.f32 %v4486_v50, %v4485_v32  ;;  %v4578_v26 = vadd.f32 %v4577_v15, %v4576_v38  ;;  %v4579_v28 = vpop.f32.mrb[38].mxu1 }
 0x1d0   : > { %v4580_v43 = vpop.f32.mrb[39].mxu1 }
 0x1d1   : > { %v4581_v3 = vadd.f32 %v4580_v43, %v4579_v28 }
 0x1d3   : > { %v4952_v55 = vpop.f32.mrb[40].mxu0 }
 0x1d4   : > { %v1177_v18 = vadd.f32 %v4952_v55, %v6692_v37  ;;  %v1168_v44 = vpop.f32.mrb[41].mxu0 }
 0x1d5   : > { %v1169_v2 = vadd.f32 %v6684_v33, %v1168_v44  ;;  %v4953_v36 = vpop.f32.mrb[42].mxu0 }
 0x1d6   : > { %v6759_v61 = vadd.f32 %v6696_v49, %v1177_v18  ;;  %v1180_v56 = vadd.f32 %v4953_v36, %v6694_v41  ;;  %v1171_v12 = vpop.f32.mrb[43].mxu0 }
 0x1d7   : > { %v1426_v8 = vadd.f32 %v6688_v14, %v1169_v2  ;;  %v1172_v32 = vadd.f32 %v6686_v42, %v1171_v12 }
 0x1d8   : > { %v6765_v50 = vadd.f32 %v6698_v11, %v1180_v56 }
 0x1d9   : > { %v1429_v37 = vadd.f32 %v6690_v6, %v1172_v32 }
 0x1db   : > { %v4956_v38 = vpop.f32.mrb[44].mxu0 }
 0x1dc   : > { %v1193_v15 = vadd.f32 %v4956_v38, %v6708_v5  ;;  %v1184_v33 = vpop.f32.mrb[45].mxu0 }
 0x1dd   : > { %v1185_v28 = vadd.f32 %v6700_v19, %v1184_v33  ;;  %v4957_v49 = vpop.f32.mrb[46].mxu0 }
 0x1de   : > { %v6771_v55 = vadd.f32 %v6712_v16, %v1193_v15  ;;  %v1196_v36 = vadd.f32 %v4957_v49, %v6710_v31  ;;  %v1187_v2 = vpop.f32.mrb[47].mxu0 }
 0x1df   : > { %v6775_v42 = vadd.f32 %v6704_v29, %v1185_v28  ;;  %v1188_v14 = vadd.f32 %v6702_v13, %v1187_v2 }
 0x1e0   : > { %v6779_v6 = vadd.f32 %v6714_v45, %v1196_v36 }
 0x1e1   : > { %v6782_v41 = vadd.f32 %v6706_v21, %v1188_v14 }
 0x1e3   : > { %v4960_v11 = vpop.f32.mrb[48].mxu0 }
 0x1e4   : > { %v1209_v19 = vadd.f32 %v4960_v11, %v6724_v27  ;;  %v1200_v5 = vpop.f32.mrb[49].mxu0 }
 0x1e5   : > { %v1201_v16 = vadd.f32 %v6716_v59, %v1200_v5  ;;  %v4961_v43 = vpop.f32.mrb[50].mxu0 }
 0x1e6   : > { %v6787_v31 = vadd.f32 %v6728_v40, %v1209_v19  ;;  %v1212_v29 = vadd.f32 %v4961_v43, %v6726_v58  ;;  %v1203_v18 = vpop.f32.mrb[51].mxu0 }
 0x1e7   : > { %v6791_v13 = vadd.f32 %v6720_v51, %v1201_v16  ;;  %v1204_v45 = vadd.f32 %v6718_v53, %v1203_v18 }
 0x1e8   : > { %v6795_v21 = vadd.f32 %v6730_v4, %v1212_v29 }
 0x1e9   : > { %v6798_v27 = vadd.f32 %v6722_v25, %v1204_v45 }
 0x1eb   : > { %v4964_v44 = vpop.f32.mrb[52].mxu0 }
 0x1ec   : > { %v1225_v59 = vadd.f32 %v4964_v44, %v6740_v23  ;;  %v1216_v56 = vpop.f32.mrb[53].mxu0 }
 0x1ed   : > { %v1217_v40 = vadd.f32 %v6732_v54, %v1216_v56  ;;  %v4965_v12 = vpop.f32.mrb[54].mxu0 }
 0x1ee   : > { %v6803_v58 = vadd.f32 %v6744_v39, %v1225_v59  ;;  %v1228_v51 = vadd.f32 %v4965_v12, %v6742_v60  ;;  %v1219_v32 = vpop.f32.mrb[55].mxu0 }
 0x1ef   : > { %v6807_v53 = vadd.f32 %v6736_v20, %v1217_v40  ;;  %v1220_v4 = vadd.f32 %v6734_v22, %v1219_v32 }
 0x1f0   : > { %v6811_v25 = vadd.f32 %v6746_v48, %v1228_v51 }
 0x1f1   : > { %v6814_v23 = vadd.f32 %v6738_v46, %v1220_v4 }
 0x1f3   : > { %v4968_v38 = vpop.f32.mrb[56].mxu0 }
 0x1f4   : > { %v1241_v54 = vadd.f32 %v4968_v38, %v4484_v9  ;;  %v1232_v15 = vpop.f32.mrb[57].mxu0 }
 0x1f5   : > { %v1233_v39 = vadd.f32 %v6748_v0, %v1232_v15  ;;  %v4969_v33 = vpop.f32.mrb[58].mxu0 }
 0x1f6   : > { %v6817_v28 = vadd.f32 %v4578_v26, %v1241_v54  ;;  %v1244_v60 = vadd.f32 %v4969_v33, %v4487_v57  ;;  %v1235_v49 = vpop.f32.mrb[59].mxu0 }
 0x1f7   : > { %v6820_v20 = vadd.f32 %v6752_v1, %v1233_v39  ;;  %v1236_v22 = vadd.f32 %v6750_v24, %v1235_v49  ;;  %v6831_v1 = vld [vmem:[%s7521_s2] ss:$0 sm:$0xff] }
 0x1f8   : > { %v6823_v48 = vadd.f32 %v4581_v3, %v1244_v60 }
 0x1f9   : > { %v6826_v46 = vadd.f32 %v6754_v10, %v1236_v22  ;;  %v6836_v10 = vld [vmem:[%s7522_s3] ss:$0 sm:$0xff] }
 0x1fb   : > { %v4616_v36 = vpop.f32.mrb[60].mxu0 }
 0x1fc   : > { %v4617_v9 = vpop.f32.mrb[61].mxu0 }
 0x1fd   : > { %v4618_v2 = vadd.f32 %v4617_v9, %v4616_v36  ;;  %v4619_v14 = vpop.f32.mrb[62].mxu0  ;;  %v5024_v19 = vpop.f32.mrb[40].mxu1 }
 0x1fe   : > { %v4620_v0 = vpop.f32.mrb[63].mxu0  ;;  %v2054_v57 = vpop.f32.mrb[41].mxu1 }
 0x1ff   : > { %v4621_v11 = vadd.f32 %v4620_v0, %v4619_v14  ;;  %v5144_v26 = vadd.f32 %v4618_v2, %v1426_v8  ;;  %v5025_v5 = vpop.f32.mrb[42].mxu1 }
 0x200   : > { %v2057_v16 = vpop.f32.mrb[43].mxu1 }
 0x201   : > { %v5152_v24 = vadd.f32 %v4621_v11, %v1429_v37  ;;  %v5145_v3 = vadd.f32 %v5144_v26, %v2054_v57 }
 0x203   : > { %v4622_v43 = vpop.f32.mrb[64].mxu0  ;;  %v2160_v29 = vmul.f32 %v5145_v3, %v6831_v1  ;;  %v5153_v8 = vadd.f32 %v5152_v24, %v2057_v16 }
 0x204   : > { %v4623_v18 = vpop.f32.mrb[65].mxu0 }
 0x205   : > { %v4624_v45 = vadd.f32 %v4623_v18, %v4622_v43  ;;  %v4625_v44 = vpop.f32.mrb[66].mxu0  ;;  %v2187_v59 = vadd.f32 %v6836_v10, %v2160_v29  ;;  %v2161_v56 = vmul.f32 %v5153_v8, %v6831_v1  ;;  %v5028_v32 = vpop.f32.mrb[44].mxu1 }
 0x206   : > { %v4626_v37 = vpop.f32.mrb[67].mxu0  ;;  %v2070_v54 = vpop.f32.mrb[45].mxu1 }
 0x207   : > { %v5140_v40 = vadd.f32 %v4624_v45, %v6759_v61  ;;  %v4627_v12 = vadd.f32 %v4626_v37, %v4625_v44  ;;  %v2188_v51 = vadd.f32 %v6836_v10, %v2161_v56  ;;  %v2207_v15 = vmax.f32 %v2187_v59, 0.0  ;;  %v5029_v33 = vpop.f32.mrb[46].mxu1 }
 0x208   : > { %v2073_v22 = vpop.f32.mrb[47].mxu1 }
 0x209   : > { %v5141_v4 = vadd.f32 %v5140_v40, %v5024_v19  ;;  %v5148_v38 = vadd.f32 %v4627_v12, %v6765_v50  ;;  %v2208_v39 = vmax.f32 %v2188_v51, 0.0 }
 0x20b   : > { %v2162_v60 = vmul.f32 %v5141_v4, %v6831_v1  ;;  %v5149_v49 = vadd.f32 %v5148_v38, %v5025_v5  ;;  %v4628_v36 = vpop.f32.mrb[68].mxu0  ;;  %v2227_v9 = vpack.c.bf16 %v2208_v39, %v2207_v15 }
 0x20c   : > { %v4629_v2 = vpop.f32.mrb[69].mxu0 }
 0x20d   : > { %v2189_v61 = vadd.f32 %v6836_v10, %v2162_v60  ;;  %v2163_v14 = vmul.f32 %v5149_v49, %v6831_v1  ;;  %v4630_v0 = vadd.f32 %v4629_v2, %v4628_v36  ;;  %v4631_v11 = vpop.f32.mrb[70].mxu0  ;;  %v2247_v26 = vrot.slane %v2227_v9, 4  ;;  %v6849_v3 = vpop.f32.mrb[48].mxu1 }
 0x20e   : > { %v4632_v19 = vpop.f32.mrb[71].mxu0  ;;  %v2086_v8 = vpop.f32.mrb[49].mxu1 }
 0x20f   : > { %v2190_v50 = vadd.f32 %v6836_v10, %v2163_v14  ;;  %v5160_v57 = vadd.f32 %v4630_v0, %v6775_v42  ;;  %v4633_v24 = vadd.f32 %v4632_v19, %v4631_v11  ;;  %2267 = vst [vmem:[#allocation2 + $0x8] ss:$-4 sps:$4 sm:$0xff] %v2247_v26   ;;  %v2209_v5 = vmax.f32 %v2189_v61, 0.0  ;;  %v6852_v18 = vpop.f32.mrb[50].mxu1 }
 0x210   : > { %v2089_v56 = vpop.f32.mrb[51].mxu1 }
 0x211   : > { %v2210_v16 = vmax.f32 %v2190_v50, 0.0  ;;  %v5161_v43 = vadd.f32 %v5160_v57, %v2070_v54  ;;  %v5168_v29 = vadd.f32 %v4633_v24, %v6782_v41 }
 0x213   : > { %v2228_v45 = vpack.c.bf16 %v2210_v16, %v2209_v5  ;;  %v2164_v44 = vmul.f32 %v5161_v43, %v6831_v1  ;;  %v5169_v59 = vadd.f32 %v5168_v29, %v2073_v22  ;;  %v4634_v37 = vpop.f32.mrb[72].mxu0 }
 0x214   : > { %v4635_v40 = vpop.f32.mrb[73].mxu0 }
 0x215   : > { %v2248_v42 = vrot.slane %v2228_v45, 4  ;;  %v2191_v12 = vadd.f32 %v6836_v10, %v2164_v44  ;;  %v2165_v51 = vmul.f32 %v5169_v59, %v6831_v1  ;;  %v4636_v4 = vadd.f32 %v4635_v40, %v4634_v37  ;;  %v4637_v38 = vpop.f32.mrb[74].mxu0  ;;  %v6859_v60 = vpop.f32.mrb[52].mxu1 }
 0x216   : > { %v4638_v54 = vpop.f32.mrb[75].mxu0  ;;  %v2102_v2 = vpop.f32.mrb[53].mxu1 }
 0x217   : > { %2269 = vst [vmem:[#allocation2 + $0x18] ss:$-4 sps:$4 sm:$0xff] %v2248_v42   ;;  %v2192_v41 = vadd.f32 %v6836_v10, %v2165_v51  ;;  %v5156_v15 = vadd.f32 %v4636_v4, %v6771_v55  ;;  %v4639_v39 = vadd.f32 %v4638_v54, %v4637_v38  ;;  %v2211_v49 = vmax.f32 %v2191_v12, 0.0  ;;  %v6862_v61 = vpop.f32.mrb[54].mxu1 }
 0x218   : > { %v2105_v26 = vpop.f32.mrb[55].mxu1 }
 0x219   : > { %v2212_v22 = vmax.f32 %v2192_v41, 0.0  ;;  %v5157_v36 = vadd.f32 %v5156_v15, %v5028_v32  ;;  %v5164_v9 = vadd.f32 %v4639_v39, %v6779_v6 }
 0x21b   : > { %v2229_v14 = vpack.c.bf16 %v2212_v22, %v2211_v49  ;;  %v2166_v0 = vmul.f32 %v5157_v36, %v6831_v1  ;;  %v5165_v11 = vadd.f32 %v5164_v9, %v5029_v33  ;;  %v4640_v19 = vpop.f32.mrb[76].mxu0 }
 0x21c   : > { %v4641_v50 = vpop.f32.mrb[77].mxu0 }
 0x21d   : > { %v2249_v57 = vrot.slane %v2229_v14, 4  ;;  %v2193_v55 = vadd.f32 %v6836_v10, %v2166_v0  ;;  %v2167_v24 = vmul.f32 %v5165_v11, %v6831_v1  ;;  %v4642_v5 = vadd.f32 %v4641_v50, %v4640_v19  ;;  %v4643_v16 = vpop.f32.mrb[78].mxu0  ;;  %v6869_v45 = vpop.f32.mrb[56].mxu1 }
 0x21e   : > { %v4644_v32 = vpop.f32.mrb[79].mxu0  ;;  %v6872_v40 = vpop.f32.mrb[57].mxu1 }
 0x21f   : > { %2271 = vst [vmem:[#allocation2 + $0x28] ss:$-4 sps:$4 sm:$0xff] %v2249_v57   ;;  %v2194_v6 = vadd.f32 %v6836_v10, %v2167_v24  ;;  %v5176_v43 = vadd.f32 %v4642_v5, %v6791_v13  ;;  %v4645_v29 = vadd.f32 %v4644_v32, %v4643_v16  ;;  %v2213_v33 = vmax.f32 %v2193_v55, 0.0  ;;  %v6874_v42 = vpop.f32.mrb[58].mxu1 }
 0x220   : > { %v6877_v38 = vpop.f32.mrb[59].mxu1 }
 0x221   : > { %v2214_v44 = vmax.f32 %v2194_v6, 0.0  ;;  %v5177_v59 = vadd.f32 %v5176_v43, %v2086_v8  ;;  %v5184_v37 = vadd.f32 %v4645_v29, %v6798_v27 }
 0x223   : > { %v2230_v12 = vpack.c.bf16 %v2214_v44, %v2213_v33  ;;  %v2168_v51 = vmul.f32 %v5177_v59, %v6831_v1  ;;  %v5185_v4 = vadd.f32 %v5184_v37, %v2089_v56  ;;  %v4646_v54 = vpop.f32.mrb[80].mxu0 }
 0x224   : > { %v4647_v13 = vpop.f32.mrb[81].mxu0 }
 0x225   : > { %v2250_v41 = vrot.slane %v2230_v12, 4  ;;  %v2195_v15 = vadd.f32 %v6836_v10, %v2168_v51  ;;  %v2169_v39 = vmul.f32 %v5185_v4, %v6831_v1  ;;  %v4648_v8 = vadd.f32 %v4647_v13, %v4646_v54  ;;  %v4649_v49 = vpop.f32.mrb[82].mxu0 }
 0x226   : > { %v4650_v27 = vpop.f32.mrb[83].mxu0 }
 0x227   : > { %2273 = vst [vmem:[#allocation2 + $0x38] ss:$-4 sps:$4 sm:$0xff] %v2250_v41   ;;  %v2196_v22 = vadd.f32 %v6836_v10, %v2169_v39  ;;  %v5172_v36 = vadd.f32 %v4648_v8, %v6787_v31  ;;  %v4651_v9 = vadd.f32 %v4650_v27, %v4649_v49  ;;  %v2215_v14 = vmax.f32 %v2195_v15, 0.0 }
 0x229   : > { %v2216_v56 = vmax.f32 %v2196_v22, 0.0  ;;  %v5173_v0 = vadd.f32 %v5172_v36, %v6849_v3  ;;  %v5180_v11 = vadd.f32 %v4651_v9, %v6795_v21 }
 0x22b   : > { %v2231_v19 = vpack.c.bf16 %v2216_v56, %v2215_v14  ;;  %v2170_v50 = vmul.f32 %v5173_v0, %v6831_v1  ;;  %v5181_v57 = vadd.f32 %v5180_v11, %v6852_v18  ;;  %v4652_v55 = vpop.f32.mrb[84].mxu0 }
 0x22c   : > { %v4653_v24 = vpop.f32.mrb[85].mxu0 }
 0x22d   : > { %v2251_v5 = vrot.slane %v2231_v19, 4  ;;  %v2197_v16 = vadd.f32 %v6836_v10, %v2170_v50  ;;  %v2171_v32 = vmul.f32 %v5181_v57, %v6831_v1  ;;  %v4654_v31 = vadd.f32 %v4653_v24, %v4652_v55  ;;  %v4655_v6 = vpop.f32.mrb[86].mxu0 }
 0x22e   : > { %v4656_v43 = vpop.f32.mrb[87].mxu0 }
 0x22f   : > { %2275 = vst [vmem:[#allocation2 + $0x48] ss:$-4 sps:$4 sm:$0xff] %v2251_v5   ;;  %v2198_v3 = vadd.f32 %v6836_v10, %v2171_v32  ;;  %v5192_v21 = vadd.f32 %v4654_v31, %v6807_v53  ;;  %v4657_v29 = vadd.f32 %v4656_v43, %v4655_v6  ;;  %v2217_v33 = vmax.f32 %v2197_v16, 0.0 }
 0x231   : > { %v2218_v44 = vmax.f32 %v2198_v3, 0.0  ;;  %v5193_v59 = vadd.f32 %v5192_v21, %v2102_v2  ;;  %v5200_v18 = vadd.f32 %v4657_v29, %v6814_v23 }
 0x233   : > { %v2232_v37 = vpack.c.bf16 %v2218_v44, %v2217_v33  ;;  %v2172_v12 = vmul.f32 %v5193_v59, %v6831_v1  ;;  %v5201_v51 = vadd.f32 %v5200_v18, %v2105_v26  ;;  %v4658_v4 = vpop.f32.mrb[88].mxu0 }
 0x234   : > { %v4659_v54 = vpop.f32.mrb[89].mxu0 }
 0x235   : > { %v2252_v13 = vrot.slane %v2232_v37, 4  ;;  %v2199_v41 = vadd.f32 %v6836_v10, %v2172_v12  ;;  %v2173_v15 = vmul.f32 %v5201_v51, %v6831_v1  ;;  %v4660_v39 = vadd.f32 %v4659_v54, %v4658_v4  ;;  %v4661_v8 = vpop.f32.mrb[90].mxu0 }
 0x236   : > { %v4662_v53 = vpop.f32.mrb[91].mxu0 }
 0x237   : > { %2277 = vst [vmem:[#allocation2 + $0x58] ss:$-4 sps:$4 sm:$0xff] %v2252_v13   ;;  %v2200_v49 = vadd.f32 %v6836_v10, %v2173_v15  ;;  %v5188_v2 = vadd.f32 %v4660_v39, %v6803_v58  ;;  %v4663_v23 = vadd.f32 %v4662_v53, %v4661_v8  ;;  %v2219_v27 = vmax.f32 %v2199_v41, 0.0 }
 0x239   : > { %v2220_v22 = vmax.f32 %v2200_v49, 0.0  ;;  %v5189_v26 = vadd.f32 %v5188_v2, %v6859_v60  ;;  %v5196_v36 = vadd.f32 %v4663_v23, %v6811_v25 }
 0x23b   : > { %v2233_v9 = vpack.c.bf16 %v2220_v22, %v2219_v27  ;;  %v2174_v14 = vmul.f32 %v5189_v26, %v6831_v1  ;;  %v5197_v56 = vadd.f32 %v5196_v36, %v6862_v61  ;;  %v4664_v0 = vpop.f32.mrb[92].mxu0 }
 0x23c   : > { %v4665_v11 = vpop.f32.mrb[93].mxu0 }
 0x23d   : > { %v2253_v19 = vrot.slane %v2233_v9, 4  ;;  %v2201_v50 = vadd.f32 %v6836_v10, %v2174_v14  ;;  %v2175_v57 = vmul.f32 %v5197_v56, %v6831_v1  ;;  %v4666_v58 = vadd.f32 %v4665_v11, %v4664_v0  ;;  %v4667_v55 = vpop.f32.mrb[94].mxu0 }
 0x23e   : > { %v4668_v24 = vpop.f32.mrb[95].mxu0 }
 0x23f   : > { %2279 = vst [vmem:[#allocation2 + $0x68] ss:$-4 sps:$4 sm:$0xff] %v2253_v19   ;;  %v2202_v60 = vadd.f32 %v6836_v10, %v2175_v57  ;;  %v5208_v25 = vadd.f32 %v4666_v58, %v6820_v20  ;;  %v4669_v5 = vadd.f32 %v4668_v24, %v4667_v55  ;;  %v2221_v16 = vmax.f32 %v2201_v50, 0.0 }
 0x241   : > { %v2222_v32 = vmax.f32 %v2202_v60, 0.0  ;;  %v5209_v61 = vadd.f32 %v5208_v25, %v6872_v40  ;;  %v5216_v31 = vadd.f32 %v4669_v5, %v6826_v46 }
 0x243   : > { %v2234_v6 = vpack.c.bf16 %v2222_v32, %v2221_v16  ;;  %v2176_v43 = vmul.f32 %v5209_v61, %v6831_v1  ;;  %v5217_v3 = vadd.f32 %v5216_v31, %v6877_v38  ;;  %v4670_v21 = vpop.f32.mrb[96].mxu0 }
 0x244   : > { %v4671_v29 = vpop.f32.mrb[97].mxu0 }
 0x245   : > { %v2254_v33 = vrot.slane %v2234_v6, 4  ;;  %v2203_v44 = vadd.f32 %v6836_v10, %v2176_v43  ;;  %v2177_v59 = vmul.f32 %v5217_v3, %v6831_v1  ;;  %v4672_v20 = vadd.f32 %v4671_v29, %v4670_v21  ;;  %v4673_v18 = vpop.f32.mrb[98].mxu0 }
 0x246   : > { %v4674_v37 = vpop.f32.mrb[99].mxu0 }
 0x247   : > { %2281 = vst [vmem:[#allocation2 + $0x78] ss:$-4 sps:$4 sm:$0xff] %v2254_v33   ;;  %v2204_v40 = vadd.f32 %v6836_v10, %v2177_v59  ;;  %v5204_v46 = vadd.f32 %v4672_v20, %v6817_v28  ;;  %v4675_v12 = vadd.f32 %v4674_v37, %v4673_v18  ;;  %v2223_v51 = vmax.f32 %v2203_v44, 0.0 }
 0x249   : > { %v2224_v4 = vmax.f32 %v2204_v40, 0.0  ;;  %v5205_v38 = vadd.f32 %v5204_v46, %v6869_v45  ;;  %v5212_v54 = vadd.f32 %v4675_v12, %v6823_v48  ;;  %v5855_v48 = vmov (!%p4247_p4), 0  }
 0x24a   : > { %2311 = vst [vmem:[#allocation2] sm:$0xff] (!%p4247_p4), %v5855_v48  ;;  %2312 = vst [vmem:[#allocation2 + $0x8] sm:$0xff] (!%p4247_p4), %v5855_v48 }
 0x24b   : > { %v2235_v13 = vpack.c.bf16 %v2224_v4, %v2223_v51  ;;  %v2178_v41 = vmul.f32 %v5205_v38, %v6831_v1  ;;  %v5213_v15 = vadd.f32 %v5212_v54, %v6874_v42 }
 0x24d   : > { %v2255_v39 = vrot.slane %v2235_v13, 4  ;;  %v2205_v8 = vadd.f32 %v6836_v10, %v2178_v41  ;;  %v2179_v53 = vmul.f32 %v5213_v15, %v6831_v1 }
 0x24f   : > { %2283 = vst [vmem:[#allocation2 + $0x88] ss:$-4 sps:$4 sm:$0xff] %v2255_v39   ;;  %v2206_v28 = vadd.f32 %v6836_v10, %v2179_v53  ;;  %v2225_v49 = vmax.f32 %v2205_v8, 0.0 }
 0x251   : > { %v2226_v2 = vmax.f32 %v2206_v28, 0.0  ;;  %2310 = sbr.rel (%p4247_p4) target bundleno = 600 (0x258), region = 64 }
 0x253   : > { %v2236_v23 = vpack.c.bf16 %v2226_v2, %v2225_v49 }
 0x255   : > { %v2256_v27 = vrot.slane %v2236_v23, 4 }
 0x257   : > { %2285 = vst [vmem:[#allocation2 + $0x98] ss:$-4 sps:$4 sm:$0xff] %v2256_v27  }
 0x258 PF: > { %p4248_p3 = scmp.ne.s32.totalorder %s5831_s30, 1 }
 0x259   : > { %v5856_v1 = vmov (!%p4248_p3), 0  }
 0x25a   : > { %2316 = sbr.rel (%p4248_p3) target bundleno = 609 (0x261), region = 68  ;;  %2318 = vst [vmem:[#allocation2 + $0x90] sm:$0xff] (!%p4248_p3), %v5856_v1  ;;  %2319 = vst [vmem:[#allocation2 + $0x98] sm:$0xff] (!%p4248_p3), %v5856_v1 }
 0x261 PF: > { %v5563_v10 = vld [vmem:[#allocation8 + $0x100] sm:$0xff]   ;;  %v5566_v22 = vld [vmem:[#allocation8 + $0x108] sm:$0xff]   ;;  %v5569_v9 = vld [vmem:[#allocation8 + $0x110] sm:$0xff]   ;;  %s7740_s17 = sld [smem:[#allocation29_spill]]  ;;  %s7745_s7 = sld [smem:[#allocation14_spill]] }
 0x262   : > { %v5564_v45 = vld [vmem:[#allocation8 + $0x140] sm:$0xff]   ;;  %4694 = vmatprep.subr.bf16.mxu0 %v5563_v10  ;;  %v5567_v26 = vld [vmem:[#allocation8 + $0x148] sm:$0xff]   ;;  %v5570_v14 = vld [vmem:[#allocation8 + $0x150] sm:$0xff]   ;;  %s4364_s24 = sshll.u32 %s5831_s30, 4  ;;  %s7750_s14 = sld [smem:[#allocation16_spill]] }
 0x263   : > { %v5565_v42 = vld [vmem:[#allocation8 + $0xc0] sm:$0xff]   ;;  %5042 = vmatprep.subr.bf16.mxu1 %v5564_v45  ;;  %v5568_v36 = vld [vmem:[#allocation8 + $0xc8] sm:$0xff]   ;;  %v5571_v56 = vld [vmem:[#allocation8 + $0xd0] sm:$0xff]   ;;  %s4027_s19 = sshll.u32 %s6921_s20, 4  ;;  %s7751_s15 = sld [smem:[#allocation30_spill]]  ;;  %s7452_s19 = int_to_ptr.vmem [resolvable:$true] %s4027_s19 }
 0x264   : > { %4695 = vmatpush3.bf16.msra.mxu0 %v5565_v42  ;;  %5043 = vmatpush3.bf16.msra.mxu1 %v5564_v45  ;;  %v5572_v0 = vld [vmem:[#allocation8 + $0x118] sm:$0xff]   ;;  %v5575_v50 = vld [vmem:[#allocation8 + $0x120] sm:$0xff]   ;;  %v5578_v55 = vld [vmem:[#allocation8 + $0x128] sm:$0xff]   ;;  %s7458_s23 = scalar_lea.sflag [#allocation5], %s337_s9  ;;  %s5721_s6 = scalar_lea.vmem %s7452_s19, 1024 }
 0x265   : > { %4696 = vmatprep.subr.bf16.mxu0 %v5566_v22  ;;  %5044 = vmatprep.subr.bf16.mxu1 %v5567_v26  ;;  %v5573_v11 = vld [vmem:[#allocation8 + $0x158] sm:$0xff]   ;;  %v5576_v57 = vld [vmem:[#allocation8 + $0x160] sm:$0xff]   ;;  %v5579_v24 = vld [vmem:[#allocation8 + $0x168] sm:$0xff]   ;;  %p5722_p7 = scmp.ne.s32.totalorder %s7452_s19, %s5721_s6  ;;  %s5857_s18 = smov [#allocation9]  }
 0x266   : > { %v5574_v19 = vld [vmem:[#allocation8 + $0xd8] sm:$0xff]   ;;  %v5577_v58 = vld [vmem:[#allocation8 + $0xe0] sm:$0xff]   ;;  %v5580_v60 = vld [vmem:[#allocation8 + $0xe8] sm:$0xff]   ;;  %s5725_s1 = sshll.u32 %s5857_s18, 4  ;;  %s5726_s1 = int_to_ptr.vmem [resolvable:$false] %s5725_s1 }
 0x267   : > { %v5581_v25 = vld [vmem:[#allocation8 + $0x130] sm:$0xff]   ;;  %v5584_v32 = vld [vmem:[#allocation8 + $0x138] sm:$0xff]   ;;  %v6929_v6 = vld [vmem:[#allocation2 + $0x20] sm:$0xff]  ;;  %s4342_s13 = sshll.u32 %s7745_s7, 5  ;;  %p5728_p0 = scmp.lt.s32.totalorder %s7452_s19, %s5726_s1 }
 0x268   : > { %4697 = vmatpush3.bf16.msra.mxu0 %v5568_v36  ;;  %5045 = vmatpush3.bf16.msra.mxu1 %v5567_v26  ;;  %v5582_v5 = vld [vmem:[#allocation8 + $0x170] sm:$0xff]   ;;  %v6927_v31 = vld [vmem:[#allocation2 + $0x18] sm:$0xff]  ;;  %v6931_v3 = vld [vmem:[#allocation2 + $0x28] sm:$0xff]  ;;  %v2594_v44 = vrot.slane %v6929_v6, 4  ;;  %s4024_s30 = sadd.s32 %s4364_s24, %s4342_s13  ;;  %p7752_p13 = scmp.ne.s32.totalorder %s7750_s14, 0 }
 0x269   : > { %4698 = vmatprep.subr.bf16.mxu0 %v5569_v9  ;;  %5046 = vmatprep.subr.bf16.mxu1 %v5570_v14  ;;  %v5583_v16 = vld [vmem:[#allocation8 + $0xf0] sm:$0xff]   ;;  %v5585_v43 = vld [vmem:[#allocation8 + $0x178] sm:$0xff]   ;;  %v6933_v21 = vld [vmem:[#allocation2] sm:$0xff]  ;;  %v2592_v33 = vrot.slane %v6927_v31, 4  ;;  %v2595_v59 = vrot.slane %v6931_v3, 4  ;;  %s4343_s16 = sshll.u32 %s4024_s30, 6 }
 0x26a   : > { %v6925_v61 = vld [vmem:[#allocation2 + $0x10] sm:$0xff]  ;;  %v6939_v20 = vld [vmem:[#allocation2 + $0x8] sm:$0xff]  ;;  %v5586_v18 = vld [vmem:[#allocation8 + $0xf8] sm:$0xff]   ;;  %v2588_v51 = vrot.slane %v6933_v21, 4  ;;  %s7450_s27 = scalar_lea.hbm %s7751_s15, %s4343_s16  ;;  %p5723_p9 = pnand %p5722_p7, %p7752_p13 }
 0x26b   : > { %v2591_v29 = vrot.slane %v6925_v61, 4  ;;  %v6941_v37 = vld [vmem:[#allocation2 + $0x30] sm:$0xff]  ;;  %v6943_v40 = vld [vmem:[#allocation2 + $0x38] sm:$0xff]  ;;  %v6947_v12 = vsel %vm779_vm1, %v2594_v44, %v2595_v59  ;;  %v2589_v4 = vrot.slane %v6939_v20, 4  ;;  %v5587_v38 = vld [vmem:[#allocation8 + $0x80] sm:$0xff]   ;;  %v7594_v59 = vshrl.u32 %v6931_v3, 16 }
 0x26c   : > { %4699 = vmatpush3.bf16.msra.mxu0 %v5571_v56  ;;  %5047 = vmatpush3.bf16.msra.mxu1 %v5570_v14  ;;  %v2597_v54 = vrot.slane %v6941_v37, 4  ;;  %v2598_v13 = vrot.slane %v6943_v40, 4  ;;  %v6954_v41 = vld [vmem:[#allocation2 + $0x40] sm:$0xff]  ;;  %v5588_v15 = vld [vmem:[#allocation8 + $0x88] sm:$0xff]   ;;  %v6964_v2 = vld [vmem:[#allocation2 + $0x50] sm:$0xff]  ;;  %v7590_v22 = vshrl.u32 %v6941_v37, 16  ;;  %p5724_p11 = pneg %p5723_p9 }
 0x26d   : > { %4700 = vmatprep.subr.bf16.mxu0 %v5572_v0  ;;  %5048 = vmatprep.subr.bf16.mxu1 %v5573_v11  ;;  %v2593_v46 = vsel %vm779_vm1, %v2591_v29, %v2592_v33  ;;  %v6956_v39 = vld [vmem:[#allocation2 + $0x48] sm:$0xff]  ;;  %v2600_v8 = vrot.slane %v6954_v41, 4  ;;  %v2590_v53 = vsel %vm779_vm1, %v2588_v51, %v2589_v4  ;;  %v6966_v23 = vld [vmem:[#allocation2 + $0x58] sm:$0xff]  ;;  %v6972_v48 = vld [vmem:[#allocation2 + $0x60] sm:$0xff]  ;;  %v2603_v45 = vrot.slane %v6964_v2, 4 }
 0x26e   : > { %2853 = vmatprep.mubr.bf16.mxu0 %v2593_v46  ;;  %5058 = vmatprep.mubr.bf16.mxu1 %v6947_v12  ;;  %v6961_v28 = vsel %vm779_vm1, %v2597_v54, %v2598_v13  ;;  %v2601_v49 = vrot.slane %v6956_v39, 4  ;;  %v6974_v1 = vld [vmem:[#allocation2 + $0x68] sm:$0xff]  ;;  %v2604_v42 = vrot.slane %v6966_v23, 4  ;;  %v5589_v26 = vld [vmem:[#allocation8 + $0x90] sm:$0xff]   ;;  %v7592_v36 = vshll.u32 %v6941_v37, 16  ;;  %v5595_v33 = vld [vmem:[#allocation8] sm:$0xff]  }
 0x26f   : > { %v2606_v9 = vrot.slane %v6972_v48, 4  ;;  %v2607_v14 = vrot.slane %v6974_v1, 4  ;;  %v7601_v56 = vshrl.u32 %v6929_v6, 16  ;;  %v7593_v0 = vshrl.u32 %v6943_v40, 16  ;;  %v7008_v29 = vld [vmem:[#allocation2 + $0x88] sm:$0xff] }
 0x270   : > { %4701 = vmatpush3.bf16.msra.mxu0 %v5574_v19  ;;  %5049 = vmatpush3.bf16.msra.mxu1 %v5573_v11  ;;  %v6969_v27 = vsel %vm779_vm1, %v2600_v8, %v2601_v49  ;;  %v7595_v11 = vshll.u32 %v6943_v40, 16  ;;  %v5590_v19 = vld [vmem:[#allocation8 + $0x98] sm:$0xff]   ;;  %v2613_v51 = vrot.slane %v7008_v29, 4  ;;  %v5599_v4 = vld [vmem:[#allocation8 + $0x48] sm:$0xff]   ;;  %v7027_v8 = vrot.slane %v7590_v22, 3 }
 0x271   : > { %4702 = vmatprep.subr.bf16.mxu0 %v5575_v50  ;;  %5050 = vmatprep.subr.bf16.mxu1 %v5576_v57  ;;  %v6988_v50 = vld [vmem:[#allocation2 + $0x70] sm:$0xff]  ;;  %v7596_v49 = vshrl.u32 %v6954_v41, 16 }
 0x274   : > { %4703 = vmatpush3.bf16.msra.mxu0 %v5577_v58  ;;  %5051 = vmatpush3.bf16.msra.mxu1 %v5576_v57  ;;  %v6990_v57 = vld [vmem:[#allocation2 + $0x78] sm:$0xff]  ;;  %v6993_v58 = vsel %vm779_vm1, %v2603_v45, %v2604_v42 }
 0x275   : > { %4704 = vmatprep.subr.bf16.mxu0 %v5578_v55  ;;  %5052 = vmatprep.subr.bf16.mxu1 %v5579_v24  ;;  %v6995_v55 = vld [vmem:[#allocation2 + $0x80] sm:$0xff] }
 0x276   : > { %v2612_v44 = vrot.slane %v6995_v55, 4 }
 0x278   : > { %4705 = vmatpush3.bf16.msra.mxu0 %v5580_v60  ;;  %5053 = vmatpush3.bf16.msra.mxu1 %v5579_v24  ;;  %v7597_v24 = vshll.u32 %v6929_v6, 16  ;;  %v6999_v60 = vsel %vm779_vm1, %v2606_v9, %v2607_v14  ;;  %v7032_v45 = vsel %vm779_vm1, %v2612_v44, %v2613_v51  ;;  %v5600_v14 = vld [vmem:[#allocation8 + $0x8] sm:$0xff]   ;;  %v2402_v44 = vrot.slane %v7593_v0, 3 }
 0x279   : > { %4706 = vmatprep.subr.bf16.mxu0 %v5581_v25  ;;  %5054 = vmatprep.subr.bf16.mxu1 %v5582_v5  ;;  %v5594_v25 = vld [vmem:[#allocation8 + $0x40] sm:$0xff]   ;;  %v2411_v51 = vrot.slane %v7596_v49, 3  ;;  %v7602_v49 = vshrl.u32 %v6964_v2, 16 }
 0x27a   : > { %v2380_v54 = vrot.slane %v7597_v24, 4  ;;  %v7603_v24 = vshll.u32 %v6964_v2, 16 }
 0x27c   : > { %4707 = vmatpush3.bf16.msra.mxu0 %v5583_v16  ;;  %5055 = vmatpush3.bf16.msra.mxu1 %v5582_v5  ;;  %v7003_v5 = vrot.slane %v7601_v56, 3  ;;  %v2609_v16 = vrot.slane %v6988_v50, 4 }
 0x27d   : > { %4708 = vmatprep.subr.bf16.mxu0 %v5584_v32  ;;  %5056 = vmatprep.subr.bf16.mxu1 %v5585_v43  ;;  %v2610_v32 = vrot.slane %v6990_v57, 4 }
 0x27e   : > { %v2381_v22 = vor.u32 %v2380_v54, %v7003_v5  ;;  %v7604_v5 = vshrl.u32 %v6966_v23, 16  ;;  %v7605_v54 = vshll.u32 %v6966_v23, 16 }
 0x27f   : > { %v7023_v13 = vsel %vm779_vm1, %v2609_v16, %v2610_v32  ;;  %v7598_v16 = vshrl.u32 %v6956_v39, 16  ;;  %v5603_v32 = vld [vmem:[#allocation8 + $0x50] sm:$0xff]  }
 0x280   : > { %4709 = vmatpush3.bf16.msra.mxu0 %v5586_v18  ;;  %5057 = vmatpush3.bf16.msra.mxu1 %v5585_v43  ;;  %v5591_v43 = vld [vmem:[#allocation8 + $0xa0] sm:$0xff]   ;;  %v7014_v18 = vld [vmem:[#allocation2 + $0x90] sm:$0xff] }
 0x281   : > { %5074 = vmatprep.subr.bf16.mxu1 %v5587_v38  ;;  %4774 = vmatprep.subr.bf16.mxu0 %v5594_v25  ;;  %v7600_v25 = vshll.u32 %v6954_v41, 16 }
 0x283   : > { %2854 = vmatmul.mubr.bf16.vlgmr.msra.gmra.mrb[100].mxu0 %v2590_v53  ;;  %5059 = vmatmul.mubr.bf16.vlgmr.msra.gmra.mrb[60].mxu1 %v6961_v28  ;;  %v2615_v53 = vrot.slane %v7014_v18, 4  ;;  %v2414_v0 = vrot.slane %v7600_v25, 4  ;;  %v5611_v25 = vld [vmem:[#allocation8 + $0x60] sm:$0xff]  }
 0x284   : > { %5075 = vmatpush3.bf16.msra.mxu1 %v5587_v38  ;;  %2861 = vmatprep.mubr.bf16.mxu0 %v6947_v12  ;;  %v7018_v38 = vld [vmem:[#allocation2 + $0x98] sm:$0xff] }
 0x285   : > { %5076 = vmatprep.subr.bf16.mxu1 %v5588_v15  ;;  %5062 = vmatprep.mubr.bf16.mxu1 %v6969_v27  ;;  %v2616_v42 = vrot.slane %v7018_v38, 4 }
 0x286   : > { %4775 = vmatpush3.bf16.msra.mxu0 %v5595_v33  ;;  %v2397_v33 = vrot.slane %v7592_v36, 4  ;;  %v5596_v36 = vld [vmem:[#allocation8 + $0xb8] sm:$0xff]  }
 0x287   : > { %4776 = vmatprep.subr.bf16.mxu0 %v5599_v4  ;;  %v7599_v4 = vshll.u32 %v6956_v39, 16 }
 0x288   : > { %5077 = vmatpush3.bf16.msra.mxu1 %v5588_v15  ;;  %v5592_v15 = vld [vmem:[#allocation8 + $0xa8] sm:$0xff]  }
 0x289   : > { %5078 = vmatprep.subr.bf16.mxu1 %v5589_v26 }
 0x28a   : > { %4777 = vmatpush3.bf16.msra.mxu0 %v5600_v14  ;;  %v5607_v14 = vld [vmem:[#allocation8 + $0x58] sm:$0xff]  }
 0x28b   : > { %2862 = vmatmul.mubr.bf16.gmra.mrb[104].mxu0 %v2593_v46  ;;  %5063 = vmatmul.mubr.bf16.gmra.mrb[64].mxu1 %v6993_v58  ;;  %v7591_v46 = vshll.u32 %v6931_v3, 16 }
 0x28c   : > { %5079 = vmatpush3.bf16.msra.mxu1 %v5589_v26  ;;  %2869 = vmatprep.mubr.bf16.mxu0 %v6961_v28  ;;  %v2385_v26 = vrot.slane %v7594_v59, 3  ;;  %v2419_v59 = vrot.slane %v7598_v16, 3 }
 0x28d   : > { %5080 = vmatprep.subr.bf16.mxu1 %v5590_v19  ;;  %5066 = vmatprep.mubr.bf16.mxu1 %v6999_v60  ;;  %v2388_v9 = vrot.slane %v7591_v46, 4 }
 0x28e   : > { %4778 = vmatprep.subr.bf16.mxu0 %v5603_v32  ;;  %v7606_v32 = vshrl.u32 %v6974_v1, 16 }
 0x28f   : > { %v2389_v46 = vor.u32 %v2388_v9, %v2385_v26  ;;  %v2422_v9 = vrot.slane %v7599_v4, 4  ;;  %v7607_v4 = vshll.u32 %v6974_v1, 16 }
 0x290   : > { %5081 = vmatpush3.bf16.msra.mxu1 %v5590_v19  ;;  %v5593_v19 = vld [vmem:[#allocation8 + $0xb0] sm:$0xff]  }
 0x291   : > { %5082 = vmatprep.subr.bf16.mxu1 %v5591_v43  ;;  %v7065_v26 = vsel %vm514_vm0, %v2381_v22, %v2389_v46  ;;  %v2398_v22 = vor.u32 %v2397_v33, %v7027_v8  ;;  %v2439_v8 = vrot.slane %v7605_v54, 4  ;;  %v5598_v33 = vld [vmem:[#allocation8 + $0x180] sm:$0xff]  }
 0x293   : > { %2870 = vmatmul.mubr.bf16.gmra.mrb[108].mxu0 %v6947_v12  ;;  %5067 = vmatmul.mubr.bf16.gmra.mrb[68].mxu1 %v7023_v13  ;;  %v2405_v12 = vrot.slane %v7595_v11, 4  ;;  %v2617_v11 = vsel %vm779_vm1, %v2615_v53, %v2616_v42  ;;  %v7608_v53 = vshll.u32 %v6972_v48, 16  ;;  %v5609_v42 = vld [vmem:[#allocation8 + $0x18] sm:$0xff]  }
 0x294   : > { %5083 = vmatpush3.bf16.msra.mxu1 %v5591_v43  ;;  %2877 = vmatprep.mubr.bf16.mxu0 %v6969_v27  ;;  %v5605_v43 = vld [vmem:[#allocation8 + $0x10] sm:$0xff]  }
 0x295   : > { %5084 = vmatprep.subr.bf16.mxu1 %v5592_v15  ;;  %5070 = vmatprep.mubr.bf16.mxu1 %v7032_v45  ;;  %v2406_v46 = vor.u32 %v2405_v12, %v2402_v44  ;;  %v2415_v44 = vor.u32 %v2414_v0, %v2411_v51  ;;  %v2423_v12 = vor.u32 %v2422_v9, %v2419_v59  ;;  %v2448_v16 = vrot.slane %v7608_v53, 4  ;;  %v5613_v9 = vld [vmem:[#allocation8 + $0x20] sm:$0xff]  }
 0x296   : > { %4779 = vmatpush3.bf16.msra.mxu0 %v5605_v43  ;;  %v5597_v43 = vld [vmem:[#allocation8 + $0x1c0] sm:$0xff]   ;;  %v2456_v0 = vrot.slane %v7607_v4, 4  ;;  %v7611_v59 = vshll.u32 %v6988_v50, 16  ;;  %v7610_v51 = vshrl.u32 %v6990_v57, 16 }
 0x297   : > { %4780 = vmatprep.subr.bf16.mxu0 %v5607_v14  ;;  %v7094_v54 = vsel %vm514_vm0, %v2398_v22, %v2406_v46  ;;  %v7101_v14 = vsel %vm514_vm0, %v2415_v44, %v2423_v12  ;;  %v5602_v46 = vld [vmem:[#allocation8 + $0x188] sm:$0xff]   ;;  %v5606_v22 = vld [vmem:[#allocation8 + $0x190] sm:$0xff]  }
 0x298   : > { %5085 = vmatpush3.bf16.msra.mxu1 %v5592_v15  ;;  %v7609_v15 = vshrl.u32 %v6972_v48, 16  ;;  %v2470_v10 = vrot.slane %v7610_v51, 3  ;;  %v7619_v51 = vshll.u32 %v7014_v18, 16 }
 0x299   : > { %5086 = vmatprep.subr.bf16.mxu1 %v5593_v19 }
 0x29a   : > { %v2445_v56 = vrot.slane %v7609_v15, 3  ;;  %4781 = vmatpush3.bf16.msra.mxu0 %v5609_v42  ;;  %v7612_v42 = vshll.u32 %v6990_v57, 16  ;;  %v2465_v15 = vrot.slane %v7611_v59, 4  ;;  %v7618_v59 = vshrl.u32 %v7018_v38, 16 }
 0x29b   : > { %2878 = vmatmul.mubr.bf16.gmra.mrb[112].mxu0 %v6961_v28  ;;  %5071 = vmatmul.mubr.bf16.gmra.mrb[72].mxu1 %v2617_v11  ;;  %v2428_v28 = vrot.slane %v7602_v49, 3  ;;  %v2431_v11 = vrot.slane %v7603_v24, 4  ;;  %v5601_v49 = vld [vmem:[#allocation8 + $0x1c8] sm:$0xff]   ;;  %v2453_v24 = vrot.slane %v7606_v32, 3 }
 0x29c   : > { %5087 = vmatpush3.bf16.msra.mxu1 %v5593_v19  ;;  %2885 = vmatprep.mubr.bf16.mxu0 %v6993_v58  ;;  %v2436_v19 = vrot.slane %v7604_v5, 3  ;;  %v7613_v5 = vshrl.u32 %v6988_v50, 16  ;;  %v5615_v32 = vld [vmem:[#allocation8 + $0x68] sm:$0xff]   ;;  %v2449_v4 = vor.u32 %v2448_v16, %v2445_v56  ;;  %v2473_v56 = vrot.slane %v7612_v42, 4  ;;  %v5610_v42 = vld [vmem:[#allocation8 + $0x198] sm:$0xff]  }
 0x29d   : > { %5088 = vmatprep.subr.bf16.mxu1 %v5596_v36  ;;  %5090 = vmatprep.mubr.bf16.mxu1 %v7065_v26 }
 0x29e   : > { %4782 = vmatprep.subr.bf16.mxu0 %v5611_v25  ;;  %v7615_v25 = vshll.u32 %v6995_v55, 16  ;;  %v2440_v44 = vor.u32 %v2439_v8, %v2436_v19  ;;  %v2462_v53 = vrot.slane %v7613_v5, 3  ;;  %v5608_v19 = vld [vmem:[#allocation8 + $0x1d8] sm:$0xff]   ;;  %v7620_v8 = vshrl.u32 %v7014_v18, 16 }
 0x29f   : > { %4783 = vmatpush3.bf16.msra.mxu0 %v5613_v9  ;;  %v5619_v9 = vld [vmem:[#allocation8 + $0x70] sm:$0xff]  }
 0x2a0   : > { %5089 = vmatpush3.bf16.msra.mxu1 %v5596_v36  ;;  %v7617_v36 = vshrl.u32 %v6995_v55, 16  ;;  %4784 = vmatprep.subr.bf16.mxu0 %v5615_v32 }
 0x2a1   : > { %4854 = vmatprep.subr.bf16.mxu1 %v5597_v43  ;;  %v2432_v43 = vor.u32 %v2431_v11, %v2428_v28  ;;  %v5617_v28 = vld [vmem:[#allocation8 + $0x28] sm:$0xff]   ;;  %v7614_v11 = vshrl.u32 %v7008_v29, 16 }
 0x2a2   : > { %v2479_v16 = vrot.slane %v7617_v36, 3  ;;  %v5614_v36 = vld [vmem:[#allocation8 + $0x1a0] sm:$0xff]  }
 0x2a3   : > { %2886 = vmatmul.mubr.bf16.gmra.mrb[116].mxu0 %v6969_v27  ;;  %5091 = vmatmul.mubr.bf16.vlgmr.msra.gmra.mrb[60].mxu1 %v7094_v54  ;;  %v5604_v27 = vld [vmem:[#allocation8 + $0x1d0] sm:$0xff]   ;;  %v2487_v5 = vrot.slane %v7614_v11, 3  ;;  %v2344_v11 = vshll.u32 %v6933_v21, 16 }
 0x2a4   : > { %4855 = vmatpush3.bf16.msra.mxu1 %v5598_v33  ;;  %2893 = vmatprep.mubr.bf16.mxu0 %v6999_v60  ;;  %v2457_v33 = vor.u32 %v2456_v0, %v2453_v24  ;;  %v2482_v24 = vrot.slane %v7615_v25, 4  ;;  %v7128_v0 = vsel %vm514_vm0, %v2432_v43, %v2440_v44  ;;  %v5621_v44 = vld [vmem:[#allocation8 + $0x30] sm:$0xff]   ;;  %v2349_v25 = vshrl.u32 %v6939_v20, 16 }
 0x2a5   : > { %4856 = vmatprep.subr.bf16.mxu1 %v5601_v49  ;;  %5094 = vmatprep.mubr.bf16.mxu1 %v7101_v14  ;;  %v7616_v49 = vshll.u32 %v7008_v29, 16  ;;  %v2346_v35 = vrot.slane %v2344_v11, 4 }
 0x2a6   : > { %v7133_v32 = vsel %vm514_vm0, %v2449_v4, %v2457_v33  ;;  %4785 = vmatpush3.bf16.msra.mxu0 %v5617_v28  ;;  %v2466_v4 = vor.u32 %v2465_v15, %v2462_v53  ;;  %v2474_v33 = vor.u32 %v2473_v56, %v2470_v10  ;;  %v5623_v28 = vld [vmem:[#allocation8 + $0x78] sm:$0xff]   ;;  %v2483_v12 = vor.u32 %v2482_v24, %v2479_v16  ;;  %v5616_v15 = vld [vmem:[#allocation8 + $0x1e8] sm:$0xff]  }
 0x2a7   : > { %4786 = vmatprep.subr.bf16.mxu0 %v5619_v9  ;;  %v2499_v10 = vrot.slane %v7619_v51, 4  ;;  %v7702_v9 = vshrl.u32 %v6927_v31, 16 }
 0x2a8   : > { %4857 = vmatpush3.bf16.msra.mxu1 %v5602_v46  ;;  %v2490_v46 = vrot.slane %v7616_v49, 4  ;;  %v2352_v49 = vshll.u32 %v6939_v20, 16  ;;  %v7699_v20 = vshll.u32 %v7018_v38, 16  ;;  %v7161_v24 = vsel %vm514_vm0, %v2466_v4, %v2474_v33 }
 0x2a9   : > { %4858 = vmatprep.subr.bf16.mxu1 %v5604_v27  ;;  %v2341_v27 = vshrl.u32 %v6933_v21, 16  ;;  %v2504_v21 = vrot.slane %v7618_v59, 3  ;;  %v7703_v59 = vshll.u32 %v6927_v31, 16  ;;  %v5620_v31 = vld [vmem:[#allocation8 + $0x1f0] sm:$0xff]  }
 0x2aa   : > { %v2491_v43 = vor.u32 %v2490_v46, %v2487_v5  ;;  %v2507_v53 = vrot.slane %v7699_v20, 4  ;;  %4787 = vmatpush3.bf16.msra.mxu0 %v5621_v44  ;;  %v7701_v5 = vshll.u32 %v6925_v61, 16  ;;  %v2368_v46 = vrot.slane %v7702_v9, 3 }
 0x2ab   : > { %2894 = vmatmul.mubr.bf16.gmra.mrb[120].mxu0 %v6993_v58  ;;  %5095 = vmatmul.mubr.bf16.gmra.mrb[64].mxu1 %v7128_v0  ;;  %v5612_v58 = vld [vmem:[#allocation8 + $0x1e0] sm:$0xff]   ;;  %v2371_v51 = vrot.slane %v7703_v59, 4  ;;  %v7707_v4 = vmov %v7703_v59 }
 0x2ac   : > { %4859 = vmatpush3.bf16.msra.mxu1 %v5606_v22  ;;  %2901 = vmatprep.mubr.bf16.mxu0 %v7023_v13  ;;  %v2496_v22 = vrot.slane %v7620_v8, 3  ;;  %v2363_v16 = vrot.slane %v7701_v5, 4  ;;  %v3364_v33 = vrot.slane %v7707_v4, 5  ;;  %v2351_v4 = vrot.slane %v2349_v25, 3 }
 0x2ad   : > { %4860 = vmatprep.subr.bf16.mxu1 %v5608_v19  ;;  %5098 = vmatprep.mubr.bf16.mxu1 %v7133_v32  ;;  %v7700_v19 = vshrl.u32 %v6925_v61, 16 }
 0x2ae   : > { %4788 = vmatprep.subr.bf16.mxu0 %v5623_v28  ;;  %v7176_v28 = vsel %vm514_vm0, %v2483_v12, %v2491_v43  ;;  %v2500_v59 = vor.u32 %v2499_v10, %v2496_v22  ;;  %v5622_v10 = vld [vmem:[#allocation8 + $0x1b0] sm:$0xff]  }
 0x2af   : > { %v2360_v56 = vrot.slane %v7700_v19, 3  ;;  %v7704_v44 = vmov %v7700_v19  ;;  %v7705_v19 = vmov %v7701_v5  ;;  %v7706_v5 = vmov %v7702_v9  ;;  %v5625_v9 = vld [vmem:[#allocation8 + $0x38] sm:$0xff]  }
 0x2b0   : > { %4861 = vmatpush3.bf16.msra.mxu1 %v5610_v42  ;;  %v3360_v20 = vrot.slane %v7704_v44, 4  ;;  %v3361_v8 = vrot.slane %v7705_v19, 5  ;;  %v3363_v42 = vrot.slane %v7706_v5, 4  ;;  %v5618_v44 = vld [vmem:[#allocation8 + $0x1a8] sm:$0xff]   ;;  %v2372_v19 = vor.u32 %v2371_v51, %v2368_v46  ;;  %4789 = vmatpush3.bf16.msra.mxu0 %v5625_v9  ;;  %v5624_v51 = vld [vmem:[#allocation8 + $0x1f8] sm:$0xff]  }
 0x2b1   : > { %4862 = vmatprep.subr.bf16.mxu1 %v5612_v58  ;;  %v2508_v58 = vor.u32 %v2507_v53, %v2504_v21  ;;  %v2364_v61 = vor.u32 %v2363_v16, %v2360_v56  ;;  %v2343_v5 = vrot.slane %v2341_v27, 3  ;;  %v3354_v21 = vrot.slane %v2344_v11, 5 }
 0x2b2   : > { %v3362_v12 = vor.u32 %v3361_v8, %v3360_v20  ;;  %v3365_v43 = vor.u32 %v3364_v33, %v3363_v42  ;;  %v3357_v53 = vrot.slane %v2352_v49, 5  ;;  %v7708_v46 = vshrl.u32 %v6929_v6, 16 }
 0x2b3   : > { %2902 = vmatmul.mubr.bf16.gmra.mrb[124].mxu0 %v6999_v60  ;;  %5099 = vmatmul.mubr.bf16.gmra.mrb[68].mxu1 %v7161_v24  ;;  %v2354_v60 = vrot.slane %v2352_v49, 4  ;;  %v2509_v22 = vsel %vm514_vm0, %v2500_v59, %v2508_v58  ;;  %v2347_v16 = vor.u32 %v2346_v35, %v2343_v5  ;;  %v7709_v42 = vshll.u32 %v6929_v6, 16  ;;  %v5626_v49 = vld [vmem:[#allocation8 + $0x1b8] sm:$0xff]  }
 0x2b4   : > { %4863 = vmatpush3.bf16.msra.mxu1 %v5614_v36  ;;  %2909 = vmatprep.mubr.bf16.mxu0 %v7032_v45  ;;  %v3353_v36 = vrot.slane %v2341_v27, 4  ;;  %v3356_v45 = vrot.slane %v2349_v25, 4  ;;  %v3366_v56 = vsel %vm1617_vm2, %v3362_v12, %v3365_v43  ;;  %v3367_v20 = vrot.slane %v7708_v46, 4 }
 0x2b5   : > { %4864 = vmatprep.subr.bf16.mxu1 %v5616_v15  ;;  %5102 = vmatprep.mubr.bf16.mxu1 %v7176_v28  ;;  %v2373_v15 = vsel %vm514_vm0, %v2364_v61, %v2372_v19  ;;  %v2355_v8 = vor.u32 %v2354_v60, %v2351_v4  ;;  %v3368_v33 = vrot.slane %v7709_v42, 5  ;;  %v7710_v9 = vshrl.u32 %v6931_v3, 16  ;;  %v5627_v61 = vld [vmem:[#allocation8 + $0x200] sm:$0xff]  }
 0x2b6   : > { %v7711_v25 = vshll.u32 %v6931_v3, 16  ;;  %v3355_v35 = vor.u32 %v3354_v21, %v3353_v36  ;;  %v3358_v59 = vor.u32 %v3357_v53, %v3356_v45  ;;  %v7712_v58 = vshrl.u32 %v6995_v55, 16 }
 0x2b7   : > { %v3370_v27 = vrot.slane %v7710_v9, 4  ;;  %v2356_v6 = vsel %vm514_vm0, %v2347_v16, %v2355_v8  ;;  %v7713_v19 = vshll.u32 %v6995_v55, 16  ;;  %v7714_v5 = vshrl.u32 %v7008_v29, 16 }
 0x2b8   : > { %4865 = vmatpush3.bf16.msra.mxu1 %v5618_v44  ;;  %v3371_v11 = vrot.slane %v7711_v25, 5  ;;  %v3409_v44 = vrot.slane %v7712_v58, 4  ;;  %v3369_v43 = vor.u32 %v3368_v33, %v3367_v20  ;;  %v7716_v60 = vshrl.u32 %v7014_v18, 16  ;;  %v5629_v58 = vld [vmem:[#allocation8 + $0x210] sm:$0xff]  }
 0x2b9   : > { %4866 = vmatprep.subr.bf16.mxu1 %v5620_v31  ;;  %v3410_v3 = vrot.slane %v7713_v19, 5  ;;  %v7715_v31 = vshll.u32 %v7008_v29, 16  ;;  %v7718_v53 = vshrl.u32 %v7018_v38, 16  ;;  %v3359_v29 = vsel %vm1617_vm2, %v3355_v35, %v3358_v59 }
 0x2ba   : > { %v3372_v4 = vor.u32 %v3371_v11, %v3370_v27  ;;  %v7720_v8 = vshrl.u32 %v6941_v37, 16  ;;  %v7721_v20 = vshll.u32 %v6941_v37, 16  ;;  %v7722_v9 = vshrl.u32 %v6943_v40, 16 }
 0x2bb   : > { %2910 = vmatmul.mubr.bf16.gmra.mrb[128].mxu0 %v7023_v13  ;;  %5103 = vmatmul.mubr.bf16.gmra.mrb[72].mxu1 %v2509_v22  ;;  %v3412_v13 = vrot.slane %v7714_v5, 4  ;;  %v3413_v12 = vrot.slane %v7715_v31, 5  ;;  %v3416_v22 = vrot.slane %v7716_v60, 4  ;;  %v3411_v21 = vor.u32 %v3410_v3, %v3409_v44 }
 0x2bc   : > { %4867 = vmatpush3.bf16.msra.mxu1 %v5622_v10  ;;  %3191 = vmatprep.mubr.bf16.mxu0 %v2373_v15  ;;  %v7717_v10 = vshll.u32 %v7014_v18, 16  ;;  %v3419_v55 = vrot.slane %v7718_v53, 4  ;;  %v3374_v46 = vrot.slane %v7720_v8, 4  ;;  %v3375_v42 = vrot.slane %v7721_v20, 5  ;;  %v5628_v18 = vld [vmem:[#allocation8 + $0x208] sm:$0xff]  }
 0x2bd   : > { %4868 = vmatprep.subr.bf16.mxu1 %v5624_v51  ;;  %3658 = vmatprep.mubr.bf16.mxu1 %v3366_v56  ;;  %v3414_v45 = vor.u32 %v3413_v12, %v3412_v13  ;;  %v7719_v51 = vshll.u32 %v7018_v38, 16  ;;  %v3377_v27 = vrot.slane %v7722_v9, 4  ;;  %v7723_v25 = vshll.u32 %v6943_v40, 16  ;;  %v5634_v9 = vld [vmem:[#allocation8 + $0x238] sm:$0xff]  }
 0x2be   : > { %v3417_v36 = vrot.slane %v7717_v10, 5  ;;  %v7224_v35 = vsel %vm1617_vm2, %v3369_v43, %v3372_v4  ;;  %v3376_v40 = vor.u32 %v3375_v42, %v3374_v46  ;;  %v7724_v44 = vshrl.u32 %v6954_v41, 16  ;;  %v5630_v43 = vld [vmem:[#allocation8 + $0x218] sm:$0xff]  }
 0x2bf   : > { %v3420_v16 = vrot.slane %v7719_v51, 5  ;;  %v3378_v11 = vrot.slane %v7723_v25, 5  ;;  %v7221_v38 = vsel %vm1617_vm2, %v3411_v21, %v3414_v45  ;;  %v7727_v31 = vshll.u32 %v6956_v39, 16 }
 0x2c0   : > { %4869 = vmatpush3.bf16.msra.mxu1 %v5626_v49  ;;  %v3418_v33 = vor.u32 %v3417_v36, %v3416_v22  ;;  %v3381_v19 = vrot.slane %v7724_v44, 4  ;;  %v5631_v22 = vld [vmem:[#allocation8 + $0x220] sm:$0xff]   ;;  %v7731_v45 = vshll.u32 %v6966_v23, 16  ;;  %v7733_v46 = vshll.u32 %v6972_v48, 16 }
 0x2c1   : > { %5106 = vmatprep.subr.bf16.mxu1 %v5627_v61  ;;  %v3421_v49 = vor.u32 %v3420_v16, %v3419_v55  ;;  %v3379_v59 = vor.u32 %v3378_v11, %v3377_v27  ;;  %v3385_v12 = vrot.slane %v7727_v31, 5  ;;  %v5632_v55 = vld [vmem:[#allocation8 + $0x228] sm:$0xff]  }
 0x2c2   : > { %v3392_v53 = vrot.slane %v7731_v45, 5  ;;  %v3396_v20 = vrot.slane %v7733_v46, 5 }
 0x2c3   : > { %3192 = vmatmul.mubr.bf16.vlgmr.msra.gmra.mrb[132].mxu0 %v2356_v6  ;;  %3659 = vmatmul.mubr.bf16.vlgmr.msra.gmra.mrb[76].mxu1 %v3359_v29  ;;  %v7227_v37 = vsel %vm1617_vm2, %v3418_v33, %v3421_v49  ;;  %v7234_v3 = vsel %vm1617_vm2, %v3376_v40, %v3379_v59  ;;  %v7725_v6 = vshll.u32 %v6954_v41, 16  ;;  %v7728_v41 = vshrl.u32 %v6964_v2, 16 }
 0x2c4   : > { %5107 = vmatpush3.bf16.msra.mxu1 %v5627_v61  ;;  %3199 = vmatprep.mubr.bf16.mxu0 %v7065_v26  ;;  %v7726_v61 = vshrl.u32 %v6956_v39, 16  ;;  %v7729_v39 = vshll.u32 %v6964_v2, 16  ;;  %v5633_v2 = vld [vmem:[#allocation8 + $0x230] sm:$0xff]   ;;  %v7732_v29 = vshrl.u32 %v6972_v48, 16  ;;  %v7735_v33 = vshll.u32 %v6974_v1, 16 }
 0x2c5   : > { %3666 = vmatprep.mubr.bf16.mxu1 %v7224_v35  ;;  %5108 = vmatprep.subr.bf16.mxu1 %v5628_v18  ;;  %v3382_v5 = vrot.slane %v7725_v6, 5  ;;  %v3388_v10 = vrot.slane %v7728_v41, 4  ;;  %v7736_v48 = vshrl.u32 %v6988_v50, 16  ;;  %v7737_v49 = vshll.u32 %v6988_v50, 16 }
 0x2c6   : > { %v3384_v13 = vrot.slane %v7726_v61, 4  ;;  %v3389_v21 = vrot.slane %v7729_v39, 5  ;;  %v3395_v8 = vrot.slane %v7732_v29, 4  ;;  %v7738_v59 = vshrl.u32 %v6990_v57, 16 }
 0x2c7   : > { %v3383_v4 = vor.u32 %v3382_v5, %v3381_v19  ;;  %v3402_v11 = vrot.slane %v7736_v48, 4  ;;  %v3403_v40 = vrot.slane %v7737_v49, 5 }
 0x2c8   : > { %5109 = vmatpush3.bf16.msra.mxu1 %v5628_v18  ;;  %v3386_v60 = vor.u32 %v3385_v12, %v3384_v13  ;;  %v3390_v51 = vor.u32 %v3389_v21, %v3388_v10  ;;  %v3399_v18 = vrot.slane %v7735_v33, 5  ;;  %v3397_v27 = vor.u32 %v3396_v20, %v3395_v8 }
 0x2c9   : > { %5110 = vmatprep.subr.bf16.mxu1 %v5629_v58  ;;  %v3404_v19 = vor.u32 %v3403_v40, %v3402_v11 }
 0x2ca   : > { %v3387_v36 = vsel %vm1617_vm2, %v3383_v4, %v3386_v60 }
 0x2cb   : > { %3200 = vmatmul.mubr.bf16.gmra.mrb[136].mxu0 %v2373_v15  ;;  %3667 = vmatmul.mubr.bf16.gmra.mrb[80].mxu1 %v3366_v56  ;;  %v7730_v15 = vshrl.u32 %v6966_v23, 16 }
 0x2cc   : > { %3207 = vmatprep.mubr.bf16.mxu0 %v7094_v54  ;;  %3674 = vmatprep.mubr.bf16.mxu1 %v7234_v3 }
 0x2cd   : > { %5111 = vmatpush3.bf16.msra.mxu1 %v5629_v58  ;;  %v3391_v56 = vrot.slane %v7730_v15, 4  ;;  %v7739_v58 = vshll.u32 %v6990_v57, 16 }
 0x2ce   : > { %5112 = vmatprep.subr.bf16.mxu1 %v5630_v43 }
 0x2cf   : > { %v3393_v16 = vor.u32 %v3392_v53, %v3391_v56  ;;  %v3406_v44 = vrot.slane %v7739_v58, 5 }
 0x2d1   : > { %5113 = vmatpush3.bf16.msra.mxu1 %v5630_v43  ;;  %v3394_v23 = vsel %vm1617_vm2, %v3390_v51, %v3393_v16 }
 0x2d2   : > { %5114 = vmatprep.subr.bf16.mxu1 %v5631_v22 }
 0x2d3   : > { %3208 = vmatmul.mubr.bf16.gmra.mrb[140].mxu0 %v7065_v26  ;;  %3675 = vmatmul.mubr.bf16.gmra.mrb[84].mxu1 %v7224_v35  ;;  %v7734_v26 = vshrl.u32 %v6974_v1, 16 }
 0x2d4   : > { %3215 = vmatprep.mubr.bf16.mxu0 %v7101_v14  ;;  %3682 = vmatprep.mubr.bf16.mxu1 %v3387_v36 }
 0x2d5   : > { %5115 = vmatpush3.bf16.msra.mxu1 %v5631_v22  ;;  %v3398_v42 = vrot.slane %v7734_v26, 4 }
 0x2d6   : > { %5116 = vmatprep.subr.bf16.mxu1 %v5632_v55 }
 0x2d7   : > { %v3400_v25 = vor.u32 %v3399_v18, %v3398_v42 }
 0x2d9   : > { %5117 = vmatpush3.bf16.msra.mxu1 %v5632_v55  ;;  %v3401_v1 = vsel %vm1617_vm2, %v3397_v27, %v3400_v25 }
 0x2da   : > { %5118 = vmatprep.subr.bf16.mxu1 %v5633_v2 }
 0x2db   : > { %3216 = vmatmul.mubr.bf16.gmra.mrb[144].mxu0 %v7094_v54  ;;  %3683 = vmatmul.mubr.bf16.gmra.mrb[88].mxu1 %v7234_v3  ;;  %v3405_v54 = vrot.slane %v7738_v59, 4 }
 0x2dc   : > { %3223 = vmatprep.mubr.bf16.mxu0 %v7128_v0  ;;  %3690 = vmatprep.mubr.bf16.mxu1 %v3394_v23 }
 0x2dd   : > { %5119 = vmatpush3.bf16.msra.mxu1 %v5633_v2  ;;  %v3407_v6 = vor.u32 %v3406_v44, %v3405_v54 }
 0x2de   : > { %5120 = vmatprep.subr.bf16.mxu1 %v5634_v9 }
 0x2df   : > { %v3408_v5 = vsel %vm1617_vm2, %v3404_v19, %v3407_v6 }
 0x2e1   : > { %5121 = vmatpush3.bf16.msra.mxu1 %v5634_v9 }
 0x2e3   : > { %3224 = vmatmul.mubr.bf16.gmra.mrb[148].mxu0 %v7101_v14  ;;  %3691 = vmatmul.mubr.bf16.gmra.mrb[92].mxu1 %v3387_v36 }
 0x2e4   : > { %3231 = vmatprep.mubr.bf16.mxu0 %v7133_v32  ;;  %3698 = vmatprep.mubr.bf16.mxu1 %v3401_v1 }
 0x2eb   : > { %3232 = vmatmul.mubr.bf16.gmra.mrb[152].mxu0 %v7128_v0  ;;  %3699 = vmatmul.mubr.bf16.gmra.mrb[96].mxu1 %v3394_v23 }
 0x2ec   : > { %3239 = vmatprep.mubr.bf16.mxu0 %v7161_v24  ;;  %3706 = vmatprep.mubr.bf16.mxu1 %v3408_v5 }
 0x2f3   : > { %3240 = vmatmul.mubr.bf16.gmra.mrb[156].mxu0 %v7133_v32  ;;  %3707 = vmatmul.mubr.bf16.gmra.mrb[100].mxu1 %v3401_v1 }
 0x2f4   : > { %3247 = vmatprep.mubr.bf16.mxu0 %v7176_v28  ;;  %3714 = vmatprep.mubr.bf16.mxu1 %v7221_v38 }
 0x2fb   : > { %3248 = vmatmul.mubr.bf16.gmra.mrb[160].mxu0 %v7161_v24  ;;  %3715 = vmatmul.mubr.bf16.gmra.mrb[104].mxu1 %v3408_v5 }
 0x2fc   : > { %5122 = vmatprep.mubr.bf16.mxu1 %v7224_v35 }
 0x303   : > { %5123 = vmatmul.mubr.bf16.vlgmr.msra.gmra.mrb[60].mxu1 %v7234_v3 }
 0x304   : > { %5126 = vmatprep.mubr.bf16.mxu1 %v3387_v36 }
 0x30b   : > { %5127 = vmatmul.mubr.bf16.gmra.mrb[64].mxu1 %v3394_v23 }
 0x30c   : > { %5130 = vmatprep.mubr.bf16.mxu1 %v3401_v1 }
 0x313   : > { %5131 = vmatmul.mubr.bf16.gmra.mrb[68].mxu1 %v3408_v5 }
 0x314   : > { %5134 = vmatprep.mubr.bf16.mxu1 %v7221_v38 }
 0x31b   : > { %5135 = vmatmul.mubr.bf16.gmra.mrb[72].mxu1 %v7227_v37 }
 0x356   : > { %v4710_v50 = vpop.f32.mrb[100].mxu0 }
 0x357   : > { %v4711_v57 = vpop.f32.mrb[101].mxu0 }
 0x358   : > { %v4712_v14 = vadd.f32 %v4711_v57, %v4710_v50  ;;  %v4713_v0 = vpop.f32.mrb[102].mxu0 }
 0x359   : > { %v4714_v32 = vpop.f32.mrb[103].mxu0 }
 0x35a   : > { %v4715_v28 = vadd.f32 %v4714_v32, %v4713_v0 }
 0x35e   : > { %v4716_v24 = vpop.f32.mrb[104].mxu0 }
 0x35f   : > { %v4717_v61 = vpop.f32.mrb[105].mxu0 }
 0x360   : > { %v7290_v13 = vadd.f32 %v4717_v61, %v4716_v24  ;;  %v4719_v35 = vpop.f32.mrb[106].mxu0 }
 0x361   : > { %v4720_v3 = vpop.f32.mrb[107].mxu0 }
 0x362   : > { %v7292_v31 = vadd.f32 %v4720_v3, %v4719_v35 }
 0x366   : > { %v4722_v12 = vpop.f32.mrb[108].mxu0 }
 0x367   : > { %v4723_v43 = vpop.f32.mrb[109].mxu0 }
 0x368   : > { %v7294_v4 = vadd.f32 %v4723_v43, %v4722_v12  ;;  %v4725_v38 = vpop.f32.mrb[110].mxu0 }
 0x369   : > { %v4726_v37 = vpop.f32.mrb[111].mxu0 }
 0x36a   : > { %v7296_v60 = vadd.f32 %v4726_v37, %v4725_v38 }
 0x36e   : > { %v4728_v22 = vpop.f32.mrb[112].mxu0 }
 0x36f   : > { %v4729_v41 = vpop.f32.mrb[113].mxu0 }
 0x370   : > { %v7298_v10 = vadd.f32 %v4729_v41, %v4728_v22  ;;  %v4731_v36 = vpop.f32.mrb[114].mxu0 }
 0x371   : > { %v4732_v39 = vpop.f32.mrb[115].mxu0 }
 0x372   : > { %v7300_v21 = vadd.f32 %v4732_v39, %v4731_v36 }
 0x376   : > { %v4734_v15 = vpop.f32.mrb[116].mxu0 }
 0x377   : > { %v4735_v56 = vpop.f32.mrb[117].mxu0 }
 0x378   : > { %v7302_v45 = vadd.f32 %v4735_v56, %v4734_v15  ;;  %v4737_v53 = vpop.f32.mrb[118].mxu0 }
 0x379   : > { %v4738_v55 = vpop.f32.mrb[119].mxu0 }
 0x37a   : > { %v7304_v51 = vadd.f32 %v4738_v55, %v4737_v53 }
 0x37e   : > { %v4740_v16 = vpop.f32.mrb[120].mxu0 }
 0x37f   : > { %v4741_v2 = vpop.f32.mrb[121].mxu0 }
 0x380   : > { %v7306_v29 = vadd.f32 %v4741_v2, %v4740_v16  ;;  %v4743_v8 = vpop.f32.mrb[122].mxu0 }
 0x381   : > { %v4744_v23 = vpop.f32.mrb[123].mxu0 }
 0x382   : > { %v7308_v46 = vadd.f32 %v4744_v23, %v4743_v8 }
 0x386   : > { %v4746_v20 = vpop.f32.mrb[124].mxu0 }
 0x387   : > { %v4747_v26 = vpop.f32.mrb[125].mxu0 }
 0x388   : > { %v7310_v42 = vadd.f32 %v4747_v26, %v4746_v20  ;;  %v4749_v33 = vpop.f32.mrb[126].mxu0 }
 0x389   : > { %v4750_v18 = vpop.f32.mrb[127].mxu0 }
 0x38a   : > { %v7312_v9 = vadd.f32 %v4750_v18, %v4749_v33 }
 0x38e   : > { %v4752_v27 = vpop.f32.mrb[128].mxu0 }
 0x38f   : > { %v4753_v25 = vpop.f32.mrb[129].mxu0 }
 0x390   : > { %v7314_v48 = vadd.f32 %v4753_v25, %v4752_v27  ;;  %v4755_v11 = vpop.f32.mrb[130].mxu0 }
 0x391   : > { %v4756_v1 = vpop.f32.mrb[131].mxu0 }
 0x392   : > { %v7316_v49 = vadd.f32 %v4756_v1, %v4755_v11 }
 0x396   : > { %v4790_v40 = vpop.f32.mrb[132].mxu0  ;;  %v4870_v59 = vpop.f32.mrb[76].mxu1 }
 0x397   : > { %v4791_v54 = vpop.f32.mrb[133].mxu0  ;;  %v4871_v58 = vpop.f32.mrb[77].mxu1 }
 0x398   : > { %v4792_v44 = vadd.f32 %v4791_v54, %v4790_v40  ;;  %v4872_v19 = vadd.f32 %v4871_v58, %v4870_v59  ;;  %v4793_v6 = vpop.f32.mrb[134].mxu0  ;;  %v4873_v5 = vpop.f32.mrb[78].mxu1 }
 0x399   : > { %v4794_v50 = vpop.f32.mrb[135].mxu0  ;;  %v4874_v57 = vpop.f32.mrb[79].mxu1 }
 0x39a   : > { %v5221_v0 = vadd.f32 %v4792_v44, %v4712_v14  ;;  %v4795_v32 = vadd.f32 %v4794_v50, %v4793_v6  ;;  %v4875_v24 = vadd.f32 %v4874_v57, %v4873_v5 }
 0x39c   : > { %v5227_v61 = vadd.f32 %v4795_v32, %v4715_v28  ;;  %v7318_v35 = vadd.f32 %v5221_v0, %v4872_v19 }
 0x39e   : > { %v4796_v3 = vpop.f32.mrb[136].mxu0  ;;  %v4876_v12 = vpop.f32.mrb[80].mxu1  ;;  %v7320_v43 = vadd.f32 %v5227_v61, %v4875_v24 }
 0x39f   : > { %v4797_v38 = vpop.f32.mrb[137].mxu0  ;;  %v4877_v37 = vpop.f32.mrb[81].mxu1 }
 0x3a0   : > { %v4798_v22 = vadd.f32 %v4797_v38, %v4796_v3  ;;  %v4878_v41 = vadd.f32 %v4877_v37, %v4876_v12  ;;  %v4799_v36 = vpop.f32.mrb[138].mxu0  ;;  %v4879_v39 = vpop.f32.mrb[82].mxu1 }
 0x3a1   : > { %v4800_v15 = vpop.f32.mrb[139].mxu0  ;;  %v4880_v56 = vpop.f32.mrb[83].mxu1 }
 0x3a2   : > { %v5218_v53 = vadd.f32 %v4798_v22, %v7290_v13  ;;  %v4801_v14 = vadd.f32 %v4800_v15, %v4799_v36  ;;  %v4881_v55 = vadd.f32 %v4880_v56, %v4879_v39 }
 0x3a4   : > { %v5224_v28 = vadd.f32 %v4801_v14, %v7292_v31  ;;  %v7324_v16 = vadd.f32 %v5218_v53, %v4878_v41 }
 0x3a6   : > { %v4802_v2 = vpop.f32.mrb[140].mxu0  ;;  %v4882_v8 = vpop.f32.mrb[84].mxu1  ;;  %v7326_v23 = vadd.f32 %v5224_v28, %v4881_v55 }
 0x3a7   : > { %v4803_v20 = vpop.f32.mrb[141].mxu0  ;;  %v4883_v26 = vpop.f32.mrb[85].mxu1 }
 0x3a8   : > { %v4804_v33 = vadd.f32 %v4803_v20, %v4802_v2  ;;  %v4884_v18 = vadd.f32 %v4883_v26, %v4882_v8  ;;  %v4805_v27 = vpop.f32.mrb[142].mxu0  ;;  %v4885_v25 = vpop.f32.mrb[86].mxu1 }
 0x3a9   : > { %v4806_v11 = vpop.f32.mrb[143].mxu0  ;;  %v4886_v1 = vpop.f32.mrb[87].mxu1 }
 0x3aa   : > { %v5233_v13 = vadd.f32 %v4804_v33, %v7294_v4  ;;  %v4807_v40 = vadd.f32 %v4806_v11, %v4805_v27  ;;  %v4887_v59 = vadd.f32 %v4886_v1, %v4885_v25 }
 0x3ac   : > { %v5239_v31 = vadd.f32 %v4807_v40, %v7296_v60  ;;  %v7330_v54 = vadd.f32 %v5233_v13, %v4884_v18 }
 0x3ae   : > { %v4808_v58 = vpop.f32.mrb[144].mxu0  ;;  %v4888_v44 = vpop.f32.mrb[88].mxu1  ;;  %v7332_v19 = vadd.f32 %v5239_v31, %v4887_v59 }
 0x3af   : > { %v4809_v6 = vpop.f32.mrb[145].mxu0  ;;  %v4889_v5 = vpop.f32.mrb[89].mxu1 }
 0x3b0   : > { %v4810_v50 = vadd.f32 %v4809_v6, %v4808_v58  ;;  %v4890_v57 = vadd.f32 %v4889_v5, %v4888_v44  ;;  %v4811_v0 = vpop.f32.mrb[146].mxu0  ;;  %v4891_v32 = vpop.f32.mrb[90].mxu1 }
 0x3b1   : > { %v4812_v24 = vpop.f32.mrb[147].mxu0  ;;  %v4892_v61 = vpop.f32.mrb[91].mxu1 }
 0x3b2   : > { %v5230_v4 = vadd.f32 %v4810_v50, %v7298_v10  ;;  %v4813_v3 = vadd.f32 %v4812_v24, %v4811_v0  ;;  %v4893_v12 = vadd.f32 %v4892_v61, %v4891_v32 }
 0x3b4   : > { %v5236_v60 = vadd.f32 %v4813_v3, %v7300_v21  ;;  %v7336_v38 = vadd.f32 %v5230_v4, %v4890_v57 }
 0x3b6   : > { %v4814_v37 = vpop.f32.mrb[148].mxu0  ;;  %v4894_v22 = vpop.f32.mrb[92].mxu1  ;;  %v7338_v41 = vadd.f32 %v5236_v60, %v4893_v12 }
 0x3b7   : > { %v4815_v36 = vpop.f32.mrb[149].mxu0  ;;  %v4895_v39 = vpop.f32.mrb[93].mxu1 }
 0x3b8   : > { %v4816_v15 = vadd.f32 %v4815_v36, %v4814_v37  ;;  %v4896_v56 = vadd.f32 %v4895_v39, %v4894_v22  ;;  %v4817_v53 = vpop.f32.mrb[150].mxu0  ;;  %v4897_v14 = vpop.f32.mrb[94].mxu1 }
 0x3b9   : > { %v4818_v55 = vpop.f32.mrb[151].mxu0  ;;  %v4898_v28 = vpop.f32.mrb[95].mxu1 }
 0x3ba   : > { %v5245_v10 = vadd.f32 %v4816_v15, %v7302_v45  ;;  %v4819_v2 = vadd.f32 %v4818_v55, %v4817_v53  ;;  %v4899_v8 = vadd.f32 %v4898_v28, %v4897_v14 }
 0x3bc   : > { %v5251_v21 = vadd.f32 %v4819_v2, %v7304_v51  ;;  %v7342_v20 = vadd.f32 %v5245_v10, %v4896_v56 }
 0x3be   : > { %v4820_v26 = vpop.f32.mrb[152].mxu0  ;;  %v4900_v33 = vpop.f32.mrb[96].mxu1  ;;  %v7344_v18 = vadd.f32 %v5251_v21, %v4899_v8 }
 0x3bf   : > { %v4821_v27 = vpop.f32.mrb[153].mxu0  ;;  %v4901_v25 = vpop.f32.mrb[97].mxu1 }
 0x3c0   : > { %v4822_v11 = vadd.f32 %v4821_v27, %v4820_v26  ;;  %v4902_v1 = vadd.f32 %v4901_v25, %v4900_v33  ;;  %v4823_v13 = vpop.f32.mrb[154].mxu0  ;;  %v4903_v40 = vpop.f32.mrb[98].mxu1 }
 0x3c1   : > { %v4824_v59 = vpop.f32.mrb[155].mxu0  ;;  %v4904_v31 = vpop.f32.mrb[99].mxu1 }
 0x3c2   : > { %v5242_v45 = vadd.f32 %v4822_v11, %v7306_v29  ;;  %v4825_v58 = vadd.f32 %v4824_v59, %v4823_v13  ;;  %v4905_v44 = vadd.f32 %v4904_v31, %v4903_v40  ;;  %v7365_v11 = vld [vmem:[%s7524_s5] ss:$0 sm:$0xff] }
 0x3c4   : > { %v5248_v51 = vadd.f32 %v4825_v58, %v7308_v46  ;;  %v7348_v6 = vadd.f32 %v5242_v45, %v4902_v1  ;;  %v3884_v45 = vunpack.c.h.bf16 %v6196_v62  ;;  %v3883_v62 = vunpack.c.l.bf16 %v6182_v52 }
 0x3c6   : > { %v4826_v5 = vpop.f32.mrb[156].mxu0  ;;  %v4906_v50 = vpop.f32.mrb[100].mxu1  ;;  %v7350_v57 = vadd.f32 %v5248_v51, %v4905_v44 }
 0x3c7   : > { %v4827_v0 = vpop.f32.mrb[157].mxu0  ;;  %v4907_v32 = vpop.f32.mrb[101].mxu1 }
 0x3c8   : > { %v4828_v24 = vadd.f32 %v4827_v0, %v4826_v5  ;;  %v4908_v61 = vadd.f32 %v4907_v32, %v4906_v50  ;;  %v4829_v4 = vpop.f32.mrb[158].mxu0  ;;  %v4909_v3 = vpop.f32.mrb[102].mxu1 }
 0x3c9   : > { %v4830_v12 = vpop.f32.mrb[159].mxu0  ;;  %v4910_v60 = vpop.f32.mrb[103].mxu1 }
 0x3ca   : > { %v5257_v29 = vadd.f32 %v4828_v24, %v7310_v42  ;;  %v4831_v37 = vadd.f32 %v4830_v12, %v4829_v4  ;;  %v4911_v22 = vadd.f32 %v4910_v60, %v4909_v3 }
 0x3cc   : > { %v5263_v46 = vadd.f32 %v4831_v37, %v7312_v9  ;;  %v7354_v36 = vadd.f32 %v5257_v29, %v4908_v61 }
 0x3ce   : > { %v4832_v39 = vpop.f32.mrb[160].mxu0  ;;  %v4912_v15 = vpop.f32.mrb[104].mxu1  ;;  %v7356_v56 = vadd.f32 %v5263_v46, %v4911_v22  ;;  %v3886_v22 = vunpack.c.h.bf16 %v6218_v17 }
 0x3cf   : > { %v4833_v53 = vpop.f32.mrb[161].mxu0  ;;  %v4913_v14 = vpop.f32.mrb[105].mxu1 }
 0x3d0   : > { %v4834_v55 = vadd.f32 %v4833_v53, %v4832_v39  ;;  %v4914_v28 = vadd.f32 %v4913_v14, %v4912_v15  ;;  %v4835_v10 = vpop.f32.mrb[162].mxu0  ;;  %v4915_v2 = vpop.f32.mrb[106].mxu1 }
 0x3d1   : > { %v4836_v8 = vpop.f32.mrb[163].mxu0  ;;  %v4916_v21 = vpop.f32.mrb[107].mxu1 }
 0x3d2   : > { %v5254_v42 = vadd.f32 %v4834_v55, %v7314_v48  ;;  %v4837_v26 = vadd.f32 %v4836_v8, %v4835_v10  ;;  %v4917_v33 = vadd.f32 %v4916_v21, %v4915_v2  ;;  %v7373_v48 = vld [vmem:[%s7740_s17] ss:$0 sm:$0xff]  ;;  %v7741_v2 = vld [vmem:[#allocation20_spill] sm:$0xff]  ;;  %s5727_s17 = scalar_lea.vmem %s5726_s1, 2048 }
 0x3d3   : > { %v3889_v8 = vunpack.c.l.bf16 %v7741_v2  ;;  %p5729_p5 = scmp.lt.s32.totalorder %s5727_s17, %s5721_s6 }
 0x3d4   : > { %v5260_v9 = vadd.f32 %v4837_v26, %v7316_v49  ;;  %v7360_v27 = vadd.f32 %v5254_v42, %v4914_v28  ;;  %v7742_v26 = vld [vmem:[#allocation19_spill] sm:$0xff] }
 0x3d5   : > { %p5730_p8 = por %p5729_p5, %p5728_p0 }
 0x3d6   : > { %v5124_v25 = vpop.f32.mrb[60].mxu1  ;;  %v7367_v1 = vadd.f32 %v5260_v9, %v4917_v33  ;;  %v3887_v33 = vunpack.c.l.bf16 %v7742_v26 }
 0x3d7   : > { %v5220_v13 = vadd.f32 %v7324_v16, %v5124_v25  ;;  %v3757_v40 = vpop.f32.mrb[61].mxu1  ;;  %v3882_v16 = vunpack.c.h.bf16 %v6174_v47  ;;  %p5731_p12 = pnand %p5730_p8, %p5724_p11 }
 0x3d8   : > { %v5223_v49 = vadd.f32 %v7318_v35, %v3757_v40  ;;  %v5125_v59 = vpop.f32.mrb[62].mxu1  ;;  %v3885_v35 = vunpack.c.l.bf16 %v6199_v63  ;;  %v3888_v63 = vunpack.c.h.bf16 %v6241_v34 }
 0x3d9   : > { %v3845_v31 = vmul.f32 %v5220_v13, %v7365_v11  ;;  %v5226_v58 = vadd.f32 %v7326_v23, %v5125_v59  ;;  %v3760_v44 = vpop.f32.mrb[63].mxu1 }
 0x3da   : > { %v3843_v51 = vmul.f32 %v5223_v49, %v7365_v11  ;;  %v5229_v5 = vadd.f32 %v7320_v43, %v3760_v44 }
 0x3db   : > { %v3868_v50 = vadd.f32 %v7373_v48, %v3845_v31  ;;  %v3846_v0 = vmul.f32 %v5226_v58, %v7365_v11  ;;  %v3892_v58 = vunpack.c.h.bf16 %v6295_v30 }
 0x3dc   : > { %v3866_v32 = vadd.f32 %v7373_v48, %v3843_v51  ;;  %v3844_v24 = vmul.f32 %v5229_v5, %v7365_v11  ;;  %v3890_v51 = vunpack.c.h.bf16 %v6278_v7 }
 0x3dd   : > { %v3900_v23 = vadd.f32 %v3884_v45, %v3868_v50  ;;  %v3869_v61 = vadd.f32 %v7373_v48, %v3846_v0 }
 0x3de   : > { %v3898_v4 = vadd.f32 %v3882_v16, %v3866_v32  ;;  %v3867_v47 = vadd.f32 %v7373_v48, %v3844_v24  ;;  %v5128_v3 = vpop.f32.mrb[64].mxu1 }
 0x3df   : > { %v3901_v43 = vadd.f32 %v3885_v35, %v3869_v61  ;;  %v5232_v12 = vadd.f32 %v7336_v38, %v5128_v3  ;;  %v3773_v60 = vpop.f32.mrb[65].mxu1  ;;  %v3916_v52 = vmax.f32 %v3900_v23, 0.0  ;;  %v7743_v61 = vld [vmem:[#allocation22_spill] sm:$0xff] }
 0x3e0   : > { %v3899_v29 = vadd.f32 %v3883_v62, %v3867_v47  ;;  %v5235_v37 = vadd.f32 %v7330_v54, %v3773_v60  ;;  %v5129_v46 = vpop.f32.mrb[66].mxu1  ;;  %v3914_v55 = vmax.f32 %v3898_v4, 0.0  ;;  %v3893_v4 = vunpack.c.l.bf16 %v7743_v61 }
 0x3e1   : > { %v3917_v39 = vmax.f32 %v3901_v43, 0.0  ;;  %v3849_v15 = vmul.f32 %v5232_v12, %v7365_v11  ;;  %v5238_v53 = vadd.f32 %v7338_v41, %v5129_v46  ;;  %v3776_v14 = vpop.f32.mrb[67].mxu1  ;;  %v7744_v43 = vld [vmem:[#allocation21_spill] sm:$0xff] }
 0x3e2   : > { %v3915_v38 = vmax.f32 %v3899_v29, 0.0  ;;  %v3847_v28 = vmul.f32 %v5235_v37, %v7365_v11  ;;  %v5241_v34 = vadd.f32 %v7332_v19, %v3776_v14  ;;  %v3891_v12 = vunpack.c.l.bf16 %v7744_v43 }
 0x3e3   : > { %v4373_v10 = vpack.c.bf16 %v3917_v39, %v3916_v52  ;;  %v3872_v54 = vadd.f32 %v7373_v48, %v3849_v15  ;;  %v3850_v17 = vmul.f32 %v5238_v53, %v7365_v11  ;;  %v7746_v15 = vld [vmem:[#allocation25_spill] sm:$0xff] }
 0x3e4   : > { %v4368_v21 = vpack.c.bf16 %v3915_v38, %v3914_v55  ;;  %v3870_v42 = vadd.f32 %v7373_v48, %v3847_v28  ;;  %v3848_v41 = vmul.f32 %v5241_v34, %v7365_v11  ;;  %v3896_v53 = vunpack.c.h.bf16 %v7746_v15  ;;  %v7747_v55 = vld [vmem:[#allocation23_spill] sm:$0xff] }
 0x3e5   : > { %4405 = vst [vmem:[%s6921_s20 + $0x8] sm:$0xff] %v4373_v10   ;;  %v3904_v9 = vadd.f32 %v3888_v63, %v3872_v54  ;;  %v3873_v25 = vadd.f32 %v7373_v48, %v3850_v17  ;;  %v3894_v38 = vunpack.c.h.bf16 %v7747_v55 }
 0x3e6   : > { %4369 = vst [vmem:[%s6921_s20] sm:$0xff] %v4368_v21   ;;  %v3902_v19 = vadd.f32 %v3886_v22, %v3870_v42  ;;  %v3871_v13 = vadd.f32 %v7373_v48, %v3848_v41  ;;  %v5132_v40 = vpop.f32.mrb[68].mxu1 }
 0x3e7   : > { %v3905_v49 = vadd.f32 %v3889_v8, %v3873_v25  ;;  %v5244_v59 = vadd.f32 %v7348_v6, %v5132_v40  ;;  %v3789_v31 = vpop.f32.mrb[69].mxu1  ;;  %v3920_v5 = vmax.f32 %v3904_v9, 0.0 }
 0x3e8   : > { %v3903_v45 = vadd.f32 %v3887_v33, %v3871_v13  ;;  %v5247_v44 = vadd.f32 %v7342_v20, %v3789_v31  ;;  %v5133_v16 = vpop.f32.mrb[70].mxu1  ;;  %v3918_v24 = vmax.f32 %v3902_v19, 0.0  ;;  %v7748_v33 = vld [vmem:[#allocation26_spill] sm:$0xff]  ;;  %v7749_v13 = vld [vmem:[#allocation24_spill] sm:$0xff] }
 0x3e9   : > { %v3921_v50 = vmax.f32 %v3905_v49, 0.0  ;;  %v3853_v0 = vmul.f32 %v5244_v59, %v7365_v11  ;;  %v5250_v35 = vadd.f32 %v7350_v57, %v5133_v16  ;;  %v3792_v32 = vpop.f32.mrb[71].mxu1  ;;  %v3897_v9 = vunpack.c.l.bf16 %v7748_v33 }
 0x3ea   : > { %v3919_v6 = vmax.f32 %v3903_v45, 0.0  ;;  %v3851_v62 = vmul.f32 %v5247_v44, %v7365_v11  ;;  %v5253_v30 = vadd.f32 %v7344_v18, %v3792_v32  ;;  %v3895_v40 = vunpack.c.l.bf16 %v7749_v13 }
 0x3eb   : > { %v4383_v23 = vpack.c.bf16 %v3921_v50, %v3920_v5  ;;  %v3876_v20 = vadd.f32 %v7373_v48, %v3853_v0  ;;  %v3854_v7 = vmul.f32 %v5250_v35, %v7365_v11 }
 0x3ec   : > { %v4378_v47 = vpack.c.bf16 %v3919_v6, %v3918_v24  ;;  %v3874_v3 = vadd.f32 %v7373_v48, %v3851_v62  ;;  %v3852_v57 = vmul.f32 %v5253_v30, %v7365_v11 }
 0x3ed   : > { %4407 = vst [vmem:[%s6921_s20 + $0x18] sm:$0xff] %v4383_v23   ;;  %v3908_v60 = vadd.f32 %v3892_v58, %v3876_v20  ;;  %v3877_v29 = vadd.f32 %v7373_v48, %v3854_v7 }
 0x3ee   : > { %4406 = vst [vmem:[%s6921_s20 + $0x10] sm:$0xff] %v4378_v47   ;;  %v3906_v18 = vadd.f32 %v3890_v51, %v3874_v3  ;;  %v3875_v63 = vadd.f32 %v7373_v48, %v3852_v57  ;;  %v5136_v37 = vpop.f32.mrb[72].mxu1 }
 0x3ef   : > { %v3909_v22 = vadd.f32 %v3893_v4, %v3877_v29  ;;  %v5256_v46 = vadd.f32 %v7360_v27, %v5136_v37  ;;  %v3805_v52 = vpop.f32.mrb[73].mxu1  ;;  %v3924_v34 = vmax.f32 %v3908_v60, 0.0 }
 0x3f0   : > { %v3907_v39 = vadd.f32 %v3891_v12, %v3875_v63  ;;  %v5259_v14 = vadd.f32 %v7354_v36, %v3805_v52  ;;  %v5137_v28 = vpop.f32.mrb[74].mxu1  ;;  %v3922_v27 = vmax.f32 %v3906_v18, 0.0 }
 0x3f1   : > { %v3925_v10 = vmax.f32 %v3909_v22, 0.0  ;;  %v3857_v54 = vmul.f32 %v5256_v46, %v7365_v11  ;;  %v5262_v17 = vadd.f32 %v7367_v1, %v5137_v28  ;;  %v3808_v2 = vpop.f32.mrb[75].mxu1 }
 0x3f2   : > { %v3923_v8 = vmax.f32 %v3907_v39, 0.0  ;;  %v3855_v21 = vmul.f32 %v5259_v14, %v7365_v11  ;;  %v5265_v42 = vadd.f32 %v7356_v56, %v3808_v2 }
 0x3f3   : > { %v4393_v36 = vpack.c.bf16 %v3925_v10, %v3924_v34  ;;  %v3880_v41 = vadd.f32 %v7373_v48, %v3857_v54  ;;  %v3858_v26 = vmul.f32 %v5262_v17, %v7365_v11 }
 0x3f4   : > { %v4388_v1 = vpack.c.bf16 %v3923_v8, %v3922_v27  ;;  %v3878_v25 = vadd.f32 %v7373_v48, %v3855_v21  ;;  %v3856_v19 = vmul.f32 %v5265_v42, %v7365_v11 }
 0x3f5   : > { %4409 = vst [vmem:[%s6921_s20 + $0x28] sm:$0xff] %v4393_v36   ;;  %v3912_v49 = vadd.f32 %v3896_v53, %v3880_v41  ;;  %v3881_v56 = vadd.f32 %v7373_v48, %v3858_v26 }
 0x3f6   : > { %4408 = vst [vmem:[%s6921_s20 + $0x20] sm:$0xff] %v4388_v1   ;;  %v3910_v59 = vadd.f32 %v3894_v38, %v3878_v25  ;;  %v3879_v31 = vadd.f32 %v7373_v48, %v3856_v19 }
 0x3f7   : > { %v3913_v45 = vadd.f32 %v3897_v9, %v3881_v56  ;;  %v3928_v11 = vmax.f32 %v3912_v49, 0.0 }
 0x3f8   : > { %v3911_v58 = vadd.f32 %v3895_v40, %v3879_v31  ;;  %v3926_v51 = vmax.f32 %v3910_v59, 0.0 }
 0x3f9   : > { %v3929_v44 = vmax.f32 %v3913_v45, 0.0 }
 0x3fa   : > { %v3927_v16 = vmax.f32 %v3911_v58, 0.0 }
 0x3fb   : > { %v4403_v5 = vpack.c.bf16 %v3929_v44, %v3928_v11 }
 0x3fc   : > { %v4398_v48 = vpack.c.bf16 %v3927_v16, %v3926_v51 }
 0x3fd   : > { %4411 = vst [vmem:[%s6921_s20 + $0x38] sm:$0xff] %v4403_v5  }
 0x3fe   : > { %4410 = vst [vmem:[%s6921_s20 + $0x30] sm:$0xff] %v4398_v48  }
 0x3ff   : > { %5734 = shalt.err (!%p5731_p12)
}
 0x400   : > { %s5735_s9 = scalar_lea.hbm %s7450_s27, 1024  ;;  %s5739_s24 = scalar_lea.hbm %s7751_s15, 4096 }
 0x401   : > { %p5736_p2 = scmp.ne.s32.totalorder %s7450_s27, %s5735_s9  ;;  %p5740_p1 = scmp.lt.u32.totalorder %s7450_s27, %s7751_s15 }
 0x402   : > { %p5741_p4 = scmp.lt.u32.totalorder %s5739_s24, %s5735_s9  ;;  %p5743_p7 = scmp.lt.u32.totalorder %s5735_s9, %s7450_s27 }
 0x403   : > { %p5737_p6 = pnand %p5736_p2, %p7752_p13 }
 0x404   : > { %p5742_p3 = por %p5741_p4, %p5740_p1 }
 0x405   : > { %p5738_p10 = pneg %p5737_p6 }
 0x406   : > { %p5744_p9 = por %p5743_p7, %p5742_p3 }
 0x408   : > { %p5745_p11 = pnand %p5744_p9, %p5738_p10 }
 0x40a   : > { %5748 = shalt.err (!%p5745_p11)
}
 0x40b   : > { %s5858_s16 = smov 64   ;;  %s5859_s8 = smov 4  }
 0x40c   : > { %5331 = dma.vmem_to_hbm [thread:$0]  (%p7752_p13), %s7452_s19, 1024, %s7450_s27, %s7458_s23, %s5858_s16, %s5858_s16, %s5859_s8  }
 0x40d PF: > { %s7753_s21 = sld [smem:[#allocation13_spill]]  ;;  %s7754_s6 = sld [smem:[#allocation17_spill]] }
 0x40e   : > { %p5353_p0 = scmp.ge.s32.totalorder %s5847_s11, 2 }
 0x413   : > { %s4042_s18 = sand.u32 1, %s7753_s21   ;;  %p7755_p5 = scmp.ne.s32.totalorder %s7754_s6, 0 }
 0x414   : > { %s4043_s1 = scalar_lea.sflag [#allocation5], %s4042_s18 }
 0x415   : > { %p5345_p8 = pnand %p5353_p0, %p7755_p5 }
 0x417   : > { %5802 = dma.done.wait (!%p5345_p8), %s4043_s1, 1024  }
 0x418   : > { %5804 = vsyncadd (!%p5345_p8), %s4043_s1, 4294966272  ;;  %s24_s11 = sadd.s32 1, %s5847_s11   ;;  %s7756_s30 = sld [smem:[#allocation15_spill]] }
 0x419   : > { %p21_p12 = scmp.ge.s32.totalorder %s24_s11, 6   ;;  %s7757_s9 = sld [smem:[#allocation18_spill]] }
 0x41a   : > { %s7758_s24 = smov %s5811_s25  ;;  %s7759_s25 = smov %s5815_s26 }
 0x41b   : > { %s7760_s26 = smov %s6081_s4  ;;  %s7761_s27 = smov %s5823_s28 }
 0x41c   : > { %s7762_s28 = smov %s5827_s29  ;;  %s7763_s29 = smov %s6076_s12 }
 0x41d   : > { %s7764_s8 = smov %s5843_s10  ;;  %s7765_s10 = smov %s7771_s22 }
 0x41e   :  { %23 = sbr.rel (!%p21_p12) target bundleno = 15 (0xf), region = 115 }
 0x425   :  { %4048 = vsyncpa [#allocation4], 1 }
 0x426   :  { %4050 = vsyncpa [#allocation4 + $0x1], 1 }
 0x427   :  { %4051 = vsyncpa [#allocation7], 1 }
 0x428   :  { %4052 = vsyncpa [#allocation5], 1 }
 0x429   :  { %4054 = vsyncpa [#allocation5 + $0x1], 1 }

</bundles_post_ra>
